<compile_context>
chip_gen: v7x
topology: tpu7x:2x2x1
jax: 0.10.0
libtpu: 0.0.40
codegen_flags: <defaults>
</compile_context>

<pallas_src>
import jax
import jax.numpy as jnp
from jax import lax
from jax.experimental import pallas as pl
from jax.experimental.pallas import tpu as pltpu

EPS_REC = 1e-4      # ReEig eigenvalue floor (util.rec_mat_v2)
LOG_FLOOR = 1e-12   # robustness floor before log (inactive for valid SPD inputs)


def _block_batch(B):
    """Batch-block size: whole batch if small, else blocks of 8 so large
    batches keep >= 2 parallel grid steps (both v7x TensorCores busy)."""
    if B <= 8 or B % 8 != 0:
        return B
    return 8


# --------------------------------------------------------------------------
# Pallas kernels (built via factories so static sizes are baked in)
# --------------------------------------------------------------------------
def _make_bimap1_kernel(tb, d_in, d_out):
    def kernel(xs_ref, w_ref, wt_ref, o_ref):
        # xs_ref: (tb*d_in, d_in) batch-stacked SPD inputs, w: (d_in, d_out)
        # One stacked MXU matmul for the whole batch block: Z_b = X_b @ W.
        z = jnp.dot(xs_ref[...], w_ref[...], preferred_element_type=jnp.float32)
        wt = wt_ref[...]          # W^T precomputed in wrapper: no in-kernel transpose
        for b in range(tb):       # tiny unrolled per-matrix epilogue
            zb = z[b * d_in:(b + 1) * d_in, :]              # (d_in, d_out)
            # W^T X_b W == W^T Z_b   (X_b symmetric)
            o_ref[b] = jnp.dot(wt, zb, preferred_element_type=jnp.float32)
    return kernel


def _make_reeig_bimap_kernel(tb, d_in, d_out, eps):
    def kernel(uts_ref, s_ref, w_ref, o_ref):
        # uts_ref: (tb*d_in, d_in) = stacked U_b^T,  s_ref: (tb*d_in, 1) eigenvalues
        # Fused ReEig + BiMap:  W^T (U max(S,eps) U^T) W = A^T diag(f) A,  A = U^T W
        a = jnp.dot(uts_ref[...], w_ref[...],
                    preferred_element_type=jnp.float32)     # stacked A  (tb*d_in, d_out)
        f = jnp.maximum(s_ref[...], eps)                    # ReEig rectification
        g = f * a                                           # diag(f) A  (lane broadcast)
        for b in range(tb):
            ab = a[b * d_in:(b + 1) * d_in, :]
            gb = g[b * d_in:(b + 1) * d_in, :]
            # A_b^T (diag(f_b) A_b)  -> (d_out, d_out)
            o_ref[b] = lax.dot_general(ab, gb, (((0,), (0,)), ((), ())),
                                       preferred_element_type=jnp.float32)
    return kernel


def _make_logeig_fc_kernel(tb, d, floor):
    def kernel(uts_ref, s_ref, fcw_ref, o_ref):
        # Fused LogEig + flatten + FC:
        #   X3_b = U_b log(S_b) U_b^T ;  logits_b = vec(X3_b) @ fc_w
        ut = uts_ref[...]                                   # (tb*d, d) stacked U^T
        g = jnp.log(jnp.maximum(s_ref[...], floor))         # (tb*d, 1)
        su = g * ut                                         # diag(log s) U^T, stacked
        fcw = fcw_ref[...]                                  # (d*d, C)
        for b in range(tb):
            utb = ut[b * d:(b + 1) * d, :]
            sub = su[b * d:(b + 1) * d, :]
            x3b = lax.dot_general(utb, sub, (((0,), (0,)), ((), ())),
                                  preferred_element_type=jnp.float32)   # (d, d)
            # vec(X3_b) @ fc_w  ==  sum_i  X3_b[i, :] @ fc_w[i*d:(i+1)*d, :]
            acc = jnp.dot(x3b[0:1, :], fcw[0:d, :],
                          preferred_element_type=jnp.float32)
            for i in range(1, d):
                acc = acc + jnp.dot(x3b[i:i + 1, :], fcw[i * d:(i + 1) * d, :],
                                    preferred_element_type=jnp.float32)
            o_ref[b:b + 1, :] = acc
    return kernel


# --------------------------------------------------------------------------
# Wrappers around pallas_call
# --------------------------------------------------------------------------
def bimap_first(x, w):
    """BiMap1:  M_b = W^T X_b W  for a batch of SPD matrices."""
    B, d_in, _ = x.shape
    d_out = w.shape[1]
    tb = _block_batch(B)
    nblk = B // tb
    xs = x.reshape(B * d_in, d_in)        # batch-stacked (free XLA reshape)
    wt = w.T                              # constant, computed once
    flops = 2 * B * d_in * d_in * d_out + 2 * B * d_in * d_out * d_out
    bytes_acc = 4 * (xs.size + w.size + wt.size + B * d_out * d_out)
    return pl.pallas_call(
        _make_bimap1_kernel(tb, d_in, d_out),
        out_shape=jax.ShapeDtypeStruct((B, d_out, d_out), jnp.float32),
        grid=(nblk,),
        in_specs=[
            pl.BlockSpec((tb * d_in, d_in), lambda i: (i, 0)),
            pl.BlockSpec((d_in, d_out), lambda i: (0, 0)),
            pl.BlockSpec((d_out, d_in), lambda i: (0, 0)),
        ],
        out_specs=pl.BlockSpec((tb, d_out, d_out), lambda i: (i, 0, 0)),
        compiler_params=pltpu.CompilerParams(dimension_semantics=("parallel",)),
        cost_estimate=pl.CostEstimate(flops=flops, transcendentals=0,
                                      bytes_accessed=bytes_acc),
    )(xs, w, wt)


def reeig_bimap(u, s, w, eps=EPS_REC):
    """Fused ReEig + BiMap:  W^T (U max(S,eps) U^T) W, given eigh(M) = (s, U)."""
    B, d_in, _ = u.shape
    d_out = w.shape[1]
    tb = _block_batch(B)
    nblk = B // tb
    uts = jnp.swapaxes(u, 1, 2).reshape(B * d_in, d_in)   # stacked U^T (cheap XLA)
    s_col = s.reshape(B * d_in, 1)
    flops = 2 * B * d_in * d_in * d_out + 2 * B * d_in * d_out * d_out
    bytes_acc = 4 * (uts.size + s_col.size + w.size + B * d_out * d_out)
    return pl.pallas_call(
        _make_reeig_bimap_kernel(tb, d_in, d_out, eps),
        out_shape=jax.ShapeDtypeStruct((B, d_out, d_out), jnp.float32),
        grid=(nblk,),
        in_specs=[
            pl.BlockSpec((tb * d_in, d_in), lambda i: (i, 0)),
            pl.BlockSpec((tb * d_in, 1), lambda i: (i, 0)),
            pl.BlockSpec((d_in, d_out), lambda i: (0, 0)),
        ],
        out_specs=pl.BlockSpec((tb, d_out, d_out), lambda i: (i, 0, 0)),
        compiler_params=pltpu.CompilerParams(dimension_semantics=("parallel",)),
        cost_estimate=pl.CostEstimate(flops=flops, transcendentals=0,
                                      bytes_accessed=bytes_acc),
    )(uts, s_col, w)


def logeig_fc(u, s, fc_w, floor=LOG_FLOOR):
    """Fused LogEig + flatten + FC, given eigh(M3) = (s, U)."""
    B, d, _ = u.shape
    num_classes = fc_w.shape[1]
    tb = _block_batch(B)
    nblk = B // tb
    uts = jnp.swapaxes(u, 1, 2).reshape(B * d, d)
    s_col = s.reshape(B * d, 1)
    flops = 2 * B * d * d * d + 2 * B * d * d * num_classes
    bytes_acc = 4 * (uts.size + s_col.size + fc_w.size + B * num_classes)
    return pl.pallas_call(
        _make_logeig_fc_kernel(tb, d, floor),
        out_shape=jax.ShapeDtypeStruct((B, num_classes), jnp.float32),
        grid=(nblk,),
        in_specs=[
            pl.BlockSpec((tb * d, d), lambda i: (i, 0)),
            pl.BlockSpec((tb * d, 1), lambda i: (i, 0)),
            pl.BlockSpec((d * d, num_classes), lambda i: (0, 0)),
        ],
        out_specs=pl.BlockSpec((tb, num_classes), lambda i: (i, 0)),
        compiler_params=pltpu.CompilerParams(dimension_semantics=("parallel",)),
        cost_estimate=pl.CostEstimate(flops=flops, transcendentals=B * d,
                                      bytes_accessed=bytes_acc),
    )(uts, s_col, fc_w)


# --------------------------------------------------------------------------
# Full SPDNetwork forward: 4 fused pallas_calls + 3 eigh calls
# --------------------------------------------------------------------------
def spdnet_forward(x, w1, w2, w3, fc_w):
    x = x.astype(jnp.float32)
    w1 = w1.astype(jnp.float32)
    w2 = w2.astype(jnp.float32)
    w3 = w3.astype(jnp.float32)
    fc_w = fc_w.astype(jnp.float32)

    m1 = bimap_first(x, w1)                 # BiMap1
    s1, u1 = jnp.linalg.eigh(m1)            # eigh in plain JAX (no Pallas eigensolver)
    m2 = reeig_bimap(u1, s1, w2)            # ReEig + BiMap2   (one fused kernel)
    s2, u2 = jnp.linalg.eigh(m2)
    m3 = reeig_bimap(u2, s2, w3)            # ReEig + BiMap3   (one fused kernel)
    s3, u3 = jnp.linalg.eigh(m3)
    return logeig_fc(u3, s3, fc_w)          # LogEig + flatten + FC (one fused kernel)


# --------------------------------------------------------------------------
# Pure-JAX reference (mirrors the PyTorch forward) for a sanity check
# --------------------------------------------------------------------------
def spdnet_reference(x, w1, w2, w3, fc_w, eps=EPS_REC):
    def bimap(x, w):
        return jnp.einsum('ji,bjk,kl->bil', w, x, w)

    def rec(x):
        s, u = jnp.linalg.eigh(x)
        s = jnp.maximum(s, eps)
        return jnp.einsum('bij,bj,bkj->bik', u, s, u)

    def logm(x):
        s, u = jnp.linalg.eigh(x)
        s = jnp.log(s)
        return jnp.einsum('bij,bj,bkj->bik', u, s, u)

    x1 = rec(bimap(x, w1))
    x2 = rec(bimap(x1, w2))
    x3 = logm(bimap(x2, w3))
    feat = x3.reshape(x.shape[0], -1)
    return feat @ fc_w


# --------------------------------------------------------------------------
# Deterministic parameters + demo
# --------------------------------------------------------------------------
def make_params(key, d0=16, d1=12, d2=8, d3=6, num_classes=7):
    k1, k2, k3, k4 = jax.random.split(key, 4)
    # Stiefel-like (column-orthonormal) BiMap weights via QR, as in SPDNet.
    w1 = jnp.linalg.qr(jax.random.normal(k1, (d0, d1), jnp.float32))[0]
    w2 = jnp.linalg.qr(jax.random.normal(k2, (d1, d2), jnp.float32))[0]
    w3 = jnp.linalg.qr(jax.random.normal(k3, (d2, d3), jnp.float32))[0]
    fc_w = 0.1 * jax.random.normal(k4, (d3 * d3, num_classes), jnp.float32)
    return w1, w2, w3, fc_w


def make_spd_input(key, batch=2, d0=16):
    a = jax.random.normal(key, (batch, d0, d0), jnp.float32)
    x = jnp.einsum('bij,bkj->bik', a, a) / d0 + 1e-3 * jnp.eye(d0)
    return x.astype(jnp.float32)


if __name__ == "__main__":
    key = jax.random.PRNGKey(0)
    k_param, k_input = jax.random.split(key)

    w1, w2, w3, fc_w = make_params(k_param)
    x = make_spd_input(k_input, batch=2, d0=16)   # [2, 16, 16] SPD matrices

    logits = jax.jit(spdnet_forward)(x, w1, w2, w3, fc_w)
    jax.block_until_ready(logits)

    assert logits.shape == (2, 7), logits.shape
    assert bool(jnp.all(jnp.isfinite(logits)))

    ref = spdnet_reference(x, w1, w2, w3, fc_w)
    assert bool(jnp.allclose(logits, ref, rtol=2e-2, atol=2e-2)), (logits, ref)

    print("KERNEL_OK")
</pallas_src>

<mosaic_0001>
module attributes {stable_mosaic.version = 11 : i64} {
  func.func @kernel(%arg0: i32, %arg1: memref<32x16xf32, #tpu.memory_space<vmem>>, %arg2: memref<16x12xf32, #tpu.memory_space<vmem>>, %arg3: memref<12x16xf32, #tpu.memory_space<vmem>>, %arg4: memref<2x12x12xf32, #tpu.memory_space<vmem>>) attributes {dimension_semantics = [#tpu.dimension_semantics<parallel>], iteration_bounds = array<i64: 1>, scalar_prefetch = 0 : i64, scratch_operands = 0 : i64, tpu.core_type = #tpu.core_type<tc>, window_params = [{transform_indices = @transform_0, window_bounds = array<i64: 32, 16>}, {pipeline_mode = #tpu.pipeline_mode<synchronous>, transform_indices = @transform_1, window_bounds = array<i64: 16, 12>}, {pipeline_mode = #tpu.pipeline_mode<synchronous>, transform_indices = @transform_2, window_bounds = array<i64: 12, 16>}, {transform_indices = @transform_3, window_bounds = array<i64: 2, 12, 12>}]} {
    %c0 = arith.constant 0 : index
    %c0_0 = arith.constant 0 : index
    %0 = vector.load %arg1[%c0, %c0_0] : memref<32x16xf32, #tpu.memory_space<vmem>>, vector<32x16xf32>
    %c0_1 = arith.constant 0 : index
    %c0_2 = arith.constant 0 : index
    %1 = vector.load %arg2[%c0_1, %c0_2] : memref<16x12xf32, #tpu.memory_space<vmem>>, vector<16x12xf32>
    %cst = arith.constant dense<0.000000e+00> : vector<32x12xf32>
    %2 = tpu.matmul %0, %1, %cst {dimension_numbers = #tpu.dot_dimension_numbers<[1], [0], [0], [1], [0, 0, 1, 1], [], []>} : vector<32x16xf32>, vector<16x12xf32>, vector<32x12xf32> -> vector<32x12xf32>
    %c0_3 = arith.constant 0 : index
    %c0_4 = arith.constant 0 : index
    %3 = vector.load %arg3[%c0_3, %c0_4] : memref<12x16xf32, #tpu.memory_space<vmem>>, vector<12x16xf32>
    %4 = vector.extract_strided_slice %2 {offsets = [0, 0], sizes = [16, 12], strides = [1, 1]} : vector<32x12xf32> to vector<16x12xf32>
    %cst_5 = arith.constant dense<0.000000e+00> : vector<12x12xf32>
    %5 = tpu.matmul %3, %4, %cst_5 {dimension_numbers = #tpu.dot_dimension_numbers<[1], [0], [0], [1], [0, 0, 1, 1], [], []>} : vector<12x16xf32>, vector<16x12xf32>, vector<12x12xf32> -> vector<12x12xf32>
    %c0_6 = arith.constant 0 : index
    %c0_7 = arith.constant 0 : index
    %c0_8 = arith.constant 0 : index
    %6 = vector.load %arg4[%c0_6, %c0_7, %c0_8] : memref<2x12x12xf32, #tpu.memory_space<vmem>>, vector<1x12x12xf32>
    %7 = vector.shape_cast %6 : vector<1x12x12xf32> to vector<12x12xf32>
    %8 = vector.shape_cast %5 : vector<12x12xf32> to vector<1x12x12xf32>
    tpu.vector_store %arg4[%c0_6, %c0_7, %c0_8], %8 {strides = array<i32>} : memref<2x12x12xf32, #tpu.memory_space<vmem>>, vector<1x12x12xf32>,
    %9 = vector.extract_strided_slice %2 {offsets = [16, 0], sizes = [16, 12], strides = [1, 1]} : vector<32x12xf32> to vector<16x12xf32>
    %cst_9 = arith.constant dense<0.000000e+00> : vector<12x12xf32>
    %10 = tpu.matmul %3, %9, %cst_9 {dimension_numbers = #tpu.dot_dimension_numbers<[1], [0], [0], [1], [0, 0, 1, 1], [], []>} : vector<12x16xf32>, vector<16x12xf32>, vector<12x12xf32> -> vector<12x12xf32>
    %c1 = arith.constant 1 : index
    %c0_10 = arith.constant 0 : index
    %c0_11 = arith.constant 0 : index
    %11 = vector.load %arg4[%c1, %c0_10, %c0_11] : memref<2x12x12xf32, #tpu.memory_space<vmem>>, vector<1x12x12xf32>
    %12 = vector.shape_cast %11 : vector<1x12x12xf32> to vector<12x12xf32>
    %13 = vector.shape_cast %10 : vector<12x12xf32> to vector<1x12x12xf32>
    tpu.vector_store %arg4[%c1, %c0_10, %c0_11], %13 {strides = array<i32>} : memref<2x12x12xf32, #tpu.memory_space<vmem>>, vector<1x12x12xf32>,
    return
  }
  func.func @transform_0(%arg0: i32) -> (i32, i32) {
    %c0_i32 = arith.constant 0 : i32
    %c0_i32_0 = arith.constant 0 : i32
    return %arg0, %c0_i32 : i32, i32
  }
  func.func @transform_1(%arg0: i32) -> (i32, i32) {
    %c0_i32 = arith.constant 0 : i32
    %c0_i32_0 = arith.constant 0 : i32
    %c0_i32_1 = arith.constant 0 : i32
    return %c0_i32, %c0_i32_0 : i32, i32
  }
  func.func @transform_2(%arg0: i32) -> (i32, i32) {
    %c0_i32 = arith.constant 0 : i32
    %c0_i32_0 = arith.constant 0 : i32
    %c0_i32_1 = arith.constant 0 : i32
    return %c0_i32, %c0_i32_0 : i32, i32
  }
  func.func @transform_3(%arg0: i32) -> (i32, i32, i32) {
    %c0_i32 = arith.constant 0 : i32
    %c0_i32_0 = arith.constant 0 : i32
    %c0_i32_1 = arith.constant 0 : i32
    return %arg0, %c0_i32, %c0_i32_0 : i32, i32, i32
  }
}

module attributes {stable_mosaic.version = 11 : i64} {
  func.func @kernel(%arg0: i32, %arg1: memref<24x12xf32, #tpu.memory_space<vmem>>, %arg2: memref<24x1xf32, #tpu.memory_space<vmem>>, %arg3: memref<12x8xf32, #tpu.memory_space<vmem>>, %arg4: memref<2x8x8xf32, #tpu.memory_space<vmem>>) attributes {dimension_semantics = [#tpu.dimension_semantics<parallel>], iteration_bounds = array<i64: 1>, scalar_prefetch = 0 : i64, scratch_operands = 0 : i64, tpu.core_type = #tpu.core_type<tc>, window_params = [{transform_indices = @transform_0, window_bounds = array<i64: 24, 12>}, {transform_indices = @transform_1, window_bounds = array<i64: 24, 1>}, {pipeline_mode = #tpu.pipeline_mode<synchronous>, transform_indices = @transform_2, window_bounds = array<i64: 12, 8>}, {transform_indices = @transform_3, window_bounds = array<i64: 2, 8, 8>}]} {
    %c0 = arith.constant 0 : index
    %c0_0 = arith.constant 0 : index
    %0 = vector.load %arg1[%c0, %c0_0] : memref<24x12xf32, #tpu.memory_space<vmem>>, vector<24x12xf32>
    %c0_1 = arith.constant 0 : index
    %c0_2 = arith.constant 0 : index
    %1 = vector.load %arg3[%c0_1, %c0_2] : memref<12x8xf32, #tpu.memory_space<vmem>>, vector<12x8xf32>
    %cst = arith.constant dense<0.000000e+00> : vector<24x8xf32>
    %2 = tpu.matmul %0, %1, %cst {dimension_numbers = #tpu.dot_dimension_numbers<[1], [0], [0], [1], [0, 0, 1, 1], [], []>} : vector<24x12xf32>, vector<12x8xf32>, vector<24x8xf32> -> vector<24x8xf32>
    %c0_3 = arith.constant 0 : index
    %c0_4 = arith.constant 0 : index
    %3 = vector.load %arg2[%c0_3, %c0_4] : memref<24x1xf32, #tpu.memory_space<vmem>>, vector<24x1xf32>
    %cst_5 = arith.constant 9.99999974E-5 : f32
    %4 = vector.broadcast %cst_5 : f32 to vector<24x1xf32>
    %5 = arith.maximumf %3, %4 : vector<24x1xf32>
    %6 = vector.broadcast %5 : vector<24x1xf32> to vector<24x8xf32>
    %7 = arith.mulf %6, %2 : vector<24x8xf32>
    %8 = vector.extract_strided_slice %2 {offsets = [0, 0], sizes = [12, 8], strides = [1, 1]} : vector<24x8xf32> to vector<12x8xf32>
    %9 = vector.extract_strided_slice %7 {offsets = [0, 0], sizes = [12, 8], strides = [1, 1]} : vector<24x8xf32> to vector<12x8xf32>
    %cst_6 = arith.constant dense<0.000000e+00> : vector<8x8xf32>
    %10 = tpu.matmul %8, %9, %cst_6 {dimension_numbers = #tpu.dot_dimension_numbers<[0], [0], [1], [1], [0, 1, 1, 1], [], []>} : vector<12x8xf32>, vector<12x8xf32>, vector<8x8xf32> -> vector<8x8xf32>
    %c0_7 = arith.constant 0 : index
    %c0_8 = arith.constant 0 : index
    %c0_9 = arith.constant 0 : index
    %11 = vector.load %arg4[%c0_7, %c0_8, %c0_9] : memref<2x8x8xf32, #tpu.memory_space<vmem>>, vector<1x8x8xf32>
    %12 = vector.shape_cast %11 : vector<1x8x8xf32> to vector<8x8xf32>
    %13 = vector.shape_cast %10 : vector<8x8xf32> to vector<1x8x8xf32>
    tpu.vector_store %arg4[%c0_7, %c0_8, %c0_9], %13 {strides = array<i32>} : memref<2x8x8xf32, #tpu.memory_space<vmem>>, vector<1x8x8xf32>,
    %14 = vector.extract_strided_slice %2 {offsets = [12, 0], sizes = [12, 8], strides = [1, 1]} : vector<24x8xf32> to vector<12x8xf32>
    %15 = vector.extract_strided_slice %7 {offsets = [12, 0], sizes = [12, 8], strides = [1, 1]} : vector<24x8xf32> to vector<12x8xf32>
    %cst_10 = arith.constant dense<0.000000e+00> : vector<8x8xf32>
    %16 = tpu.matmul %14, %15, %cst_10 {dimension_numbers = #tpu.dot_dimension_numbers<[0], [0], [1], [1], [0, 1, 1, 1], [], []>} : vector<12x8xf32>, vector<12x8xf32>, vector<8x8xf32> -> vector<8x8xf32>
    %c1 = arith.constant 1 : index
    %c0_11 = arith.constant 0 : index
    %c0_12 = arith.constant 0 : index
    %17 = vector.load %arg4[%c1, %c0_11, %c0_12] : memref<2x8x8xf32, #tpu.memory_space<vmem>>, vector<1x8x8xf32>
    %18 = vector.shape_cast %17 : vector<1x8x8xf32> to vector<8x8xf32>
    %19 = vector.shape_cast %16 : vector<8x8xf32> to vector<1x8x8xf32>
    tpu.vector_store %arg4[%c1, %c0_11, %c0_12], %19 {strides = array<i32>} : memref<2x8x8xf32, #tpu.memory_space<vmem>>, vector<1x8x8xf32>,
    return
  }
  func.func @transform_0(%arg0: i32) -> (i32, i32) {
    %c0_i32 = arith.constant 0 : i32
    %c0_i32_0 = arith.constant 0 : i32
    return %arg0, %c0_i32 : i32, i32
  }
  func.func @transform_1(%arg0: i32) -> (i32, i32) {
    %c0_i32 = arith.constant 0 : i32
    %c0_i32_0 = arith.constant 0 : i32
    return %arg0, %c0_i32 : i32, i32
  }
  func.func @transform_2(%arg0: i32) -> (i32, i32) {
    %c0_i32 = arith.constant 0 : i32
    %c0_i32_0 = arith.constant 0 : i32
    %c0_i32_1 = arith.constant 0 : i32
    return %c0_i32, %c0_i32_0 : i32, i32
  }
  func.func @transform_3(%arg0: i32) -> (i32, i32, i32) {
    %c0_i32 = arith.constant 0 : i32
    %c0_i32_0 = arith.constant 0 : i32
    %c0_i32_1 = arith.constant 0 : i32
    return %arg0, %c0_i32, %c0_i32_0 : i32, i32, i32
  }
}

module attributes {stable_mosaic.version = 11 : i64} {
  func.func @kernel(%arg0: i32, %arg1: memref<16x8xf32, #tpu.memory_space<vmem>>, %arg2: memref<16x1xf32, #tpu.memory_space<vmem>>, %arg3: memref<8x6xf32, #tpu.memory_space<vmem>>, %arg4: memref<2x6x6xf32, #tpu.memory_space<vmem>>) attributes {dimension_semantics = [#tpu.dimension_semantics<parallel>], iteration_bounds = array<i64: 1>, scalar_prefetch = 0 : i64, scratch_operands = 0 : i64, tpu.core_type = #tpu.core_type<tc>, window_params = [{transform_indices = @transform_0, window_bounds = array<i64: 16, 8>}, {transform_indices = @transform_1, window_bounds = array<i64: 16, 1>}, {pipeline_mode = #tpu.pipeline_mode<synchronous>, transform_indices = @transform_2, window_bounds = array<i64: 8, 6>}, {transform_indices = @transform_3, window_bounds = array<i64: 2, 6, 6>}]} {
    %c0 = arith.constant 0 : index
    %c0_0 = arith.constant 0 : index
    %0 = vector.load %arg1[%c0, %c0_0] : memref<16x8xf32, #tpu.memory_space<vmem>>, vector<16x8xf32>
    %c0_1 = arith.constant 0 : index
    %c0_2 = arith.constant 0 : index
    %1 = vector.load %arg3[%c0_1, %c0_2] : memref<8x6xf32, #tpu.memory_space<vmem>>, vector<8x6xf32>
    %cst = arith.constant dense<0.000000e+00> : vector<16x6xf32>
    %2 = tpu.matmul %0, %1, %cst {dimension_numbers = #tpu.dot_dimension_numbers<[1], [0], [0], [1], [0, 0, 1, 1], [], []>} : vector<16x8xf32>, vector<8x6xf32>, vector<16x6xf32> -> vector<16x6xf32>
    %c0_3 = arith.constant 0 : index
    %c0_4 = arith.constant 0 : index
    %3 = vector.load %arg2[%c0_3, %c0_4] : memref<16x1xf32, #tpu.memory_space<vmem>>, vector<16x1xf32>
    %cst_5 = arith.constant 9.99999974E-5 : f32
    %4 = vector.broadcast %cst_5 : f32 to vector<16x1xf32>
    %5 = arith.maximumf %3, %4 : vector<16x1xf32>
    %6 = vector.broadcast %5 : vector<16x1xf32> to vector<16x6xf32>
    %7 = arith.mulf %6, %2 : vector<16x6xf32>
    %8 = vector.extract_strided_slice %2 {offsets = [0, 0], sizes = [8, 6], strides = [1, 1]} : vector<16x6xf32> to vector<8x6xf32>
    %9 = vector.extract_strided_slice %7 {offsets = [0, 0], sizes = [8, 6], strides = [1, 1]} : vector<16x6xf32> to vector<8x6xf32>
    %cst_6 = arith.constant dense<0.000000e+00> : vector<6x6xf32>
    %10 = tpu.matmul %8, %9, %cst_6 {dimension_numbers = #tpu.dot_dimension_numbers<[0], [0], [1], [1], [0, 1, 1, 1], [], []>} : vector<8x6xf32>, vector<8x6xf32>, vector<6x6xf32> -> vector<6x6xf32>
    %c0_7 = arith.constant 0 : index
    %c0_8 = arith.constant 0 : index
    %c0_9 = arith.constant 0 : index
    %11 = vector.load %arg4[%c0_7, %c0_8, %c0_9] : memref<2x6x6xf32, #tpu.memory_space<vmem>>, vector<1x6x6xf32>
    %12 = vector.shape_cast %11 : vector<1x6x6xf32> to vector<6x6xf32>
    %13 = vector.shape_cast %10 : vector<6x6xf32> to vector<1x6x6xf32>
    tpu.vector_store %arg4[%c0_7, %c0_8, %c0_9], %13 {strides = array<i32>} : memref<2x6x6xf32, #tpu.memory_space<vmem>>, vector<1x6x6xf32>,
    %14 = vector.extract_strided_slice %2 {offsets = [8, 0], sizes = [8, 6], strides = [1, 1]} : vector<16x6xf32> to vector<8x6xf32>
    %15 = vector.extract_strided_slice %7 {offsets = [8, 0], sizes = [8, 6], strides = [1, 1]} : vector<16x6xf32> to vector<8x6xf32>
    %cst_10 = arith.constant dense<0.000000e+00> : vector<6x6xf32>
    %16 = tpu.matmul %14, %15, %cst_10 {dimension_numbers = #tpu.dot_dimension_numbers<[0], [0], [1], [1], [0, 1, 1, 1], [], []>} : vector<8x6xf32>, vector<8x6xf32>, vector<6x6xf32> -> vector<6x6xf32>
    %c1 = arith.constant 1 : index
    %c0_11 = arith.constant 0 : index
    %c0_12 = arith.constant 0 : index
    %17 = vector.load %arg4[%c1, %c0_11, %c0_12] : memref<2x6x6xf32, #tpu.memory_space<vmem>>, vector<1x6x6xf32>
    %18 = vector.shape_cast %17 : vector<1x6x6xf32> to vector<6x6xf32>
    %19 = vector.shape_cast %16 : vector<6x6xf32> to vector<1x6x6xf32>
    tpu.vector_store %arg4[%c1, %c0_11, %c0_12], %19 {strides = array<i32>} : memref<2x6x6xf32, #tpu.memory_space<vmem>>, vector<1x6x6xf32>,
    return
  }
  func.func @transform_0(%arg0: i32) -> (i32, i32) {
    %c0_i32 = arith.constant 0 : i32
    %c0_i32_0 = arith.constant 0 : i32
    return %arg0, %c0_i32 : i32, i32
  }
  func.func @transform_1(%arg0: i32) -> (i32, i32) {
    %c0_i32 = arith.constant 0 : i32
    %c0_i32_0 = arith.constant 0 : i32
    return %arg0, %c0_i32 : i32, i32
  }
  func.func @transform_2(%arg0: i32) -> (i32, i32) {
    %c0_i32 = arith.constant 0 : i32
    %c0_i32_0 = arith.constant 0 : i32
    %c0_i32_1 = arith.constant 0 : i32
    return %c0_i32, %c0_i32_0 : i32, i32
  }
  func.func @transform_3(%arg0: i32) -> (i32, i32, i32) {
    %c0_i32 = arith.constant 0 : i32
    %c0_i32_0 = arith.constant 0 : i32
    %c0_i32_1 = arith.constant 0 : i32
    return %arg0, %c0_i32, %c0_i32_0 : i32, i32, i32
  }
}

module attributes {stable_mosaic.version = 11 : i64} {
  func.func @kernel(%arg0: i32, %arg1: memref<12x6xf32, #tpu.memory_space<vmem>>, %arg2: memref<12x1xf32, #tpu.memory_space<vmem>>, %arg3: memref<36x7xf32, #tpu.memory_space<vmem>>, %arg4: memref<2x7xf32, #tpu.memory_space<vmem>>) attributes {dimension_semantics = [#tpu.dimension_semantics<parallel>], iteration_bounds = array<i64: 1>, scalar_prefetch = 0 : i64, scratch_operands = 0 : i64, tpu.core_type = #tpu.core_type<tc>, window_params = [{transform_indices = @transform_0, window_bounds = array<i64: 12, 6>}, {transform_indices = @transform_1, window_bounds = array<i64: 12, 1>}, {pipeline_mode = #tpu.pipeline_mode<synchronous>, transform_indices = @transform_2, window_bounds = array<i64: 36, 7>}, {transform_indices = @transform_3, window_bounds = array<i64: 2, 7>}]} {
    %c0 = arith.constant 0 : index
    %c0_0 = arith.constant 0 : index
    %0 = vector.load %arg1[%c0, %c0_0] : memref<12x6xf32, #tpu.memory_space<vmem>>, vector<12x6xf32>
    %c0_1 = arith.constant 0 : index
    %c0_2 = arith.constant 0 : index
    %1 = vector.load %arg2[%c0_1, %c0_2] : memref<12x1xf32, #tpu.memory_space<vmem>>, vector<12x1xf32>
    %cst = arith.constant 9.99999996E-13 : f32
    %2 = vector.broadcast %cst : f32 to vector<12x1xf32>
    %3 = arith.maximumf %1, %2 : vector<12x1xf32>
    %4 = math.log %3 : vector<12x1xf32>
    %5 = vector.broadcast %4 : vector<12x1xf32> to vector<12x6xf32>
    %6 = arith.mulf %5, %0 : vector<12x6xf32>
    %c0_3 = arith.constant 0 : index
    %c0_4 = arith.constant 0 : index
    %7 = vector.load %arg3[%c0_3, %c0_4] : memref<36x7xf32, #tpu.memory_space<vmem>>, vector<36x7xf32>
    %8 = vector.extract_strided_slice %0 {offsets = [0, 0], sizes = [6, 6], strides = [1, 1]} : vector<12x6xf32> to vector<6x6xf32>
    %9 = vector.extract_strided_slice %6 {offsets = [0, 0], sizes = [6, 6], strides = [1, 1]} : vector<12x6xf32> to vector<6x6xf32>
    %cst_5 = arith.constant dense<0.000000e+00> : vector<6x6xf32>
    %10 = tpu.matmul %8, %9, %cst_5 {dimension_numbers = #tpu.dot_dimension_numbers<[0], [0], [1], [1], [0, 1, 1, 1], [], []>} : vector<6x6xf32>, vector<6x6xf32>, vector<6x6xf32> -> vector<6x6xf32>
    %11 = vector.extract_strided_slice %10 {offsets = [0, 0], sizes = [1, 6], strides = [1, 1]} : vector<6x6xf32> to vector<1x6xf32>
    %12 = vector.extract_strided_slice %7 {offsets = [0, 0], sizes = [6, 7], strides = [1, 1]} : vector<36x7xf32> to vector<6x7xf32>
    %cst_6 = arith.constant dense<0.000000e+00> : vector<1x7xf32>
    %13 = tpu.matmul %11, %12, %cst_6 {dimension_numbers = #tpu.dot_dimension_numbers<[1], [0], [0], [1], [0, 0, 1, 1], [], []>} : vector<1x6xf32>, vector<6x7xf32>, vector<1x7xf32> -> vector<1x7xf32>
    %14 = vector.extract_strided_slice %10 {offsets = [1, 0], sizes = [1, 6], strides = [1, 1]} : vector<6x6xf32> to vector<1x6xf32>
    %15 = vector.extract_strided_slice %7 {offsets = [6, 0], sizes = [6, 7], strides = [1, 1]} : vector<36x7xf32> to vector<6x7xf32>
    %cst_7 = arith.constant dense<0.000000e+00> : vector<1x7xf32>
    %16 = tpu.matmul %14, %15, %cst_7 {dimension_numbers = #tpu.dot_dimension_numbers<[1], [0], [0], [1], [0, 0, 1, 1], [], []>} : vector<1x6xf32>, vector<6x7xf32>, vector<1x7xf32> -> vector<1x7xf32>
    %17 = arith.addf %13, %16 : vector<1x7xf32>
    %18 = vector.extract_strided_slice %10 {offsets = [2, 0], sizes = [1, 6], strides = [1, 1]} : vector<6x6xf32> to vector<1x6xf32>
    %19 = vector.extract_strided_slice %7 {offsets = [12, 0], sizes = [6, 7], strides = [1, 1]} : vector<36x7xf32> to vector<6x7xf32>
    %cst_8 = arith.constant dense<0.000000e+00> : vector<1x7xf32>
    %20 = tpu.matmul %18, %19, %cst_8 {dimension_numbers = #tpu.dot_dimension_numbers<[1], [0], [0], [1], [0, 0, 1, 1], [], []>} : vector<1x6xf32>, vector<6x7xf32>, vector<1x7xf32> -> vector<1x7xf32>
    %21 = arith.addf %17, %20 : vector<1x7xf32>
    %22 = vector.extract_strided_slice %10 {offsets = [3, 0], sizes = [1, 6], strides = [1, 1]} : vector<6x6xf32> to vector<1x6xf32>
    %23 = vector.extract_strided_slice %7 {offsets = [18, 0], sizes = [6, 7], strides = [1, 1]} : vector<36x7xf32> to vector<6x7xf32>
    %cst_9 = arith.constant dense<0.000000e+00> : vector<1x7xf32>
    %24 = tpu.matmul %22, %23, %cst_9 {dimension_numbers = #tpu.dot_dimension_numbers<[1], [0], [0], [1], [0, 0, 1, 1], [], []>} : vector<1x6xf32>, vector<6x7xf32>, vector<1x7xf32> -> vector<1x7xf32>
    %25 = arith.addf %21, %24 : vector<1x7xf32>
    %26 = vector.extract_strided_slice %10 {offsets = [4, 0], sizes = [1, 6], strides = [1, 1]} : vector<6x6xf32> to vector<1x6xf32>
    %27 = vector.extract_strided_slice %7 {offsets = [24, 0], sizes = [6, 7], strides = [1, 1]} : vector<36x7xf32> to vector<6x7xf32>
    %cst_10 = arith.constant dense<0.000000e+00> : vector<1x7xf32>
    %28 = tpu.matmul %26, %27, %cst_10 {dimension_numbers = #tpu.dot_dimension_numbers<[1], [0], [0], [1], [0, 0, 1, 1], [], []>} : vector<1x6xf32>, vector<6x7xf32>, vector<1x7xf32> -> vector<1x7xf32>
    %29 = arith.addf %25, %28 : vector<1x7xf32>
    %30 = vector.extract_strided_slice %10 {offsets = [5, 0], sizes = [1, 6], strides = [1, 1]} : vector<6x6xf32> to vector<1x6xf32>
    %31 = vector.extract_strided_slice %7 {offsets = [30, 0], sizes = [6, 7], strides = [1, 1]} : vector<36x7xf32> to vector<6x7xf32>
    %cst_11 = arith.constant dense<0.000000e+00> : vector<1x7xf32>
    %32 = tpu.matmul %30, %31, %cst_11 {dimension_numbers = #tpu.dot_dimension_numbers<[1], [0], [0], [1], [0, 0, 1, 1], [], []>} : vector<1x6xf32>, vector<6x7xf32>, vector<1x7xf32> -> vector<1x7xf32>
    %33 = arith.addf %29, %32 : vector<1x7xf32>
    %c0_12 = arith.constant 0 : index
    %c0_13 = arith.constant 0 : index
    %34 = vector.load %arg4[%c0_12, %c0_13] : memref<2x7xf32, #tpu.memory_space<vmem>>, vector<1x7xf32>
    tpu.vector_store %arg4[%c0_12, %c0_13], %33 {strides = array<i32>} : memref<2x7xf32, #tpu.memory_space<vmem>>, vector<1x7xf32>,
    %35 = vector.extract_strided_slice %0 {offsets = [6, 0], sizes = [6, 6], strides = [1, 1]} : vector<12x6xf32> to vector<6x6xf32>
    %36 = vector.extract_strided_slice %6 {offsets = [6, 0], sizes = [6, 6], strides = [1, 1]} : vector<12x6xf32> to vector<6x6xf32>
    %cst_14 = arith.constant dense<0.000000e+00> : vector<6x6xf32>
    %37 = tpu.matmul %35, %36, %cst_14 {dimension_numbers = #tpu.dot_dimension_numbers<[0], [0], [1], [1], [0, 1, 1, 1], [], []>} : vector<6x6xf32>, vector<6x6xf32>, vector<6x6xf32> -> vector<6x6xf32>
    %38 = vector.extract_strided_slice %37 {offsets = [0, 0], sizes = [1, 6], strides = [1, 1]} : vector<6x6xf32> to vector<1x6xf32>
    %39 = vector.extract_strided_slice %7 {offsets = [0, 0], sizes = [6, 7], strides = [1, 1]} : vector<36x7xf32> to vector<6x7xf32>
    %cst_15 = arith.constant dense<0.000000e+00> : vector<1x7xf32>
    %40 = tpu.matmul %38, %39, %cst_15 {dimension_numbers = #tpu.dot_dimension_numbers<[1], [0], [0], [1], [0, 0, 1, 1], [], []>} : vector<1x6xf32>, vector<6x7xf32>, vector<1x7xf32> -> vector<1x7xf32>
    %41 = vector.extract_strided_slice %37 {offsets = [1, 0], sizes = [1, 6], strides = [1, 1]} : vector<6x6xf32> to vector<1x6xf32>
    %42 = vector.extract_strided_slice %7 {offsets = [6, 0], sizes = [6, 7], strides = [1, 1]} : vector<36x7xf32> to vector<6x7xf32>
    %cst_16 = arith.constant dense<0.000000e+00> : vector<1x7xf32>
    %43 = tpu.matmul %41, %42, %cst_16 {dimension_numbers = #tpu.dot_dimension_numbers<[1], [0], [0], [1], [0, 0, 1, 1], [], []>} : vector<1x6xf32>, vector<6x7xf32>, vector<1x7xf32> -> vector<1x7xf32>
    %44 = arith.addf %40, %43 : vector<1x7xf32>
    %45 = vector.extract_strided_slice %37 {offsets = [2, 0], sizes = [1, 6], strides = [1, 1]} : vector<6x6xf32> to vector<1x6xf32>
    %46 = vector.extract_strided_slice %7 {offsets = [12, 0], sizes = [6, 7], strides = [1, 1]} : vector<36x7xf32> to vector<6x7xf32>
    %cst_17 = arith.constant dense<0.000000e+00> : vector<1x7xf32>
    %47 = tpu.matmul %45, %46, %cst_17 {dimension_numbers = #tpu.dot_dimension_numbers<[1], [0], [0], [1], [0, 0, 1, 1], [], []>} : vector<1x6xf32>, vector<6x7xf32>, vector<1x7xf32> -> vector<1x7xf32>
    %48 = arith.addf %44, %47 : vector<1x7xf32>
    %49 = vector.extract_strided_slice %37 {offsets = [3, 0], sizes = [1, 6], strides = [1, 1]} : vector<6x6xf32> to vector<1x6xf32>
    %50 = vector.extract_strided_slice %7 {offsets = [18, 0], sizes = [6, 7], strides = [1, 1]} : vector<36x7xf32> to vector<6x7xf32>
    %cst_18 = arith.constant dense<0.000000e+00> : vector<1x7xf32>
    %51 = tpu.matmul %49, %50, %cst_18 {dimension_numbers = #tpu.dot_dimension_numbers<[1], [0], [0], [1], [0, 0, 1, 1], [], []>} : vector<1x6xf32>, vector<6x7xf32>, vector<1x7xf32> -> vector<1x7xf32>
    %52 = arith.addf %48, %51 : vector<1x7xf32>
    %53 = vector.extract_strided_slice %37 {offsets = [4, 0], sizes = [1, 6], strides = [1, 1]} : vector<6x6xf32> to vector<1x6xf32>
    %54 = vector.extract_strided_slice %7 {offsets = [24, 0], sizes = [6, 7], strides = [1, 1]} : vector<36x7xf32> to vector<6x7xf32>
    %cst_19 = arith.constant dense<0.000000e+00> : vector<1x7xf32>
    %55 = tpu.matmul %53, %54, %cst_19 {dimension_numbers = #tpu.dot_dimension_numbers<[1], [0], [0], [1], [0, 0, 1, 1], [], []>} : vector<1x6xf32>, vector<6x7xf32>, vector<1x7xf32> -> vector<1x7xf32>
    %56 = arith.addf %52, %55 : vector<1x7xf32>
    %57 = vector.extract_strided_slice %37 {offsets = [5, 0], sizes = [1, 6], strides = [1, 1]} : vector<6x6xf32> to vector<1x6xf32>
    %58 = vector.extract_strided_slice %7 {offsets = [30, 0], sizes = [6, 7], strides = [1, 1]} : vector<36x7xf32> to vector<6x7xf32>
    %cst_20 = arith.constant dense<0.000000e+00> : vector<1x7xf32>
    %59 = tpu.matmul %57, %58, %cst_20 {dimension_numbers = #tpu.dot_dimension_numbers<[1], [0], [0], [1], [0, 0, 1, 1], [], []>} : vector<1x6xf32>, vector<6x7xf32>, vector<1x7xf32> -> vector<1x7xf32>
    %60 = arith.addf %56, %59 : vector<1x7xf32>
    %c1 = arith.constant 1 : index
    %c0_21 = arith.constant 0 : index
    %61 = vector.load %arg4[%c1, %c0_21] : memref<2x7xf32, #tpu.memory_space<vmem>>, vector<1x7xf32>
    tpu.vector_store %arg4[%c1, %c0_21], %60 {strides = array<i32>} : memref<2x7xf32, #tpu.memory_space<vmem>>, vector<1x7xf32>,
    return
  }
  func.func @transform_0(%arg0: i32) -> (i32, i32) {
    %c0_i32 = arith.constant 0 : i32
    %c0_i32_0 = arith.constant 0 : i32
    return %arg0, %c0_i32 : i32, i32
  }
  func.func @transform_1(%arg0: i32) -> (i32, i32) {
    %c0_i32 = arith.constant 0 : i32
    %c0_i32_0 = arith.constant 0 : i32
    return %arg0, %c0_i32 : i32, i32
  }
  func.func @transform_2(%arg0: i32) -> (i32, i32) {
    %c0_i32 = arith.constant 0 : i32
    %c0_i32_0 = arith.constant 0 : i32
    %c0_i32_1 = arith.constant 0 : i32
    return %c0_i32, %c0_i32_0 : i32, i32
  }
  func.func @transform_3(%arg0: i32) -> (i32, i32) {
    %c0_i32 = arith.constant 0 : i32
    %c0_i32_0 = arith.constant 0 : i32
    return %arg0, %c0_i32 : i32, i32
  }
}

</mosaic_0001>

<bundles_post_ra>
// kernel: custom-call.6
= control target key start
LH: loop header
LB: loop body
LE: loop exit
PB: predicated region body
PF: predicated region fallthrough
CT: control target
= control target key end

     0   :  { %s1672_s30 = smov 0   ;;  %s1674_s10 = smov 0   ;;  %s1999_s0 = inlined_call_operand.vmem [shape: f32[2,6,6], index: 0, kind: input, shape index: {}]   ;;  %s2000_s1 = inlined_call_operand.vmem [shape: f32[2,6,6], index: 1, kind: input, shape index: {}]   ;;  %s2001_s2 = inlined_call_operand.vmem [shape: f32[2,6,6], index: 2, kind: input, shape index: {}]   ;;  %s2002_s3 = inlined_call_operand.vmem [shape: f32[2,6,6], index: 3, kind: input, shape index: {}]   ;;  %s2003_s4 = inlined_call_operand.vmem [shape: f32[2,6], index: 4, kind: output, shape index: {0}]   ;;  %s2004_s5 = inlined_call_operand.vmem [shape: f32[2,6], index: 5, kind: output, shape index: {1}]   ;;  %s2005_s6 = inlined_call_operand.vmem [shape: f32[2,6,6], index: 6, kind: output, shape index: {2}]   ;;  %s2006_s7 = inlined_call_operand.vmem [shape: f32[2,6,6], index: 7, kind: output, shape index: {3}]   ;;  %s2007_s8 = inlined_call_operand.vmem [shape: f32[2,6,6], index: 8, kind: output, shape index: {4}]   ;;  %s2008_s9 = inlined_call_operand.vmem [shape: f32[2,6,6], index: 9, kind: output, shape index: {5}]  }
   0x1   :  { %s1676_s11 = smov 0  }
   0x2 LB: > { %s1688_s12 = sadd.s32 4294967295, %s1609_s11   ;;  %s1691_s13 = sadd.s32 1, %s1609_s11   ;;  %s1609_s11 = sphi %s1676_s11, %s2017_s11   ;;  %s1605_s10 = sphi %s1674_s10, %s2016_s10   ;;  %s1601_s30 = sphi %s1672_s30, %s2015_s30  }
   0x3   : > { %s20_s14 = sshrl.u32 %s1609_s11, 3  ;;  %s21_s15 = sshrl.u32 %s1691_s13, 3 }
   0x4   : > { %s22_s16 = ssub.s32 %s20_s14, %s21_s15  ;;  %s25_s17 = sadd.s32 1, %s1605_s10 }
   0x5   : > { %p23_p0 = scmp.eq.s32.totalorder %s22_s16, 0  ;;  %p35_p1 = scmp.ne.s32.totalorder %s1605_s10, %s1601_s30 }
   0x6   : > { %p36_p2 = scmp.eq.s32.totalorder %s1688_s12, 1  ;;  %p1470_p4 = scmp.ge.s32.totalorder %s1609_s11, 2 }
   0x7   : > { %s1700_s18 = scalar_select %p23_p0, %s1605_s10, %s25_s17  }
   0x8   : > { %p1702_p3 = por %p36_p2, %p35_p1  ;;  %86 = sbr.rel (%p1470_p4) target bundleno = 17 (0x11), region = 16 }
   0x9   : > { %2009 = sst [smem:[#allocation25_spill]] %s1700_s18  ;;  %s88_s20 = sand.u32 (!%p1470_p4), 1, %s1609_s11  }
   0xa   : > { %s1472_s21 = sshll.u32 (!%p1470_p4), %s1609_s11, 3  ;;  %s1471_s22 = sshll.u32 (!%p1470_p4), %s88_s20, 3 }
   0xb   : > { %s92_s25 = scalar_lea.vmem (!%p1470_p4), %s1999_s0, %s1472_s21  ;;  %s90_s26 = scalar_lea.vmem (!%p1470_p4), [#allocation0], %s1471_s22 }
   0xc   : > { %v120_v0 = vld [vmem:[%s92_s25] sm:$0xff] (!%p1470_p4)  ;;  %s130_s29 = scalar_lea.vmem (!%p1470_p4), %s2000_s1, %s1472_s21  ;;  %s168_s16 = scalar_lea.vmem (!%p1470_p4), %s2001_s2, %s1472_s21 }
   0xd   : > { %121 = vst [vmem:[%s90_s26] sm:$0xff] (!%p1470_p4), %v120_v0  ;;  %v158_v1 = vld [vmem:[%s130_s29] sm:$0xff] (!%p1470_p4)  ;;  %s128_s17 = scalar_lea.vmem (!%p1470_p4), [#allocation1], %s1471_s22  ;;  %s206_s23 = scalar_lea.vmem (!%p1470_p4), %s2002_s3, %s1472_s21 }
   0xe   : > { %159 = vst [vmem:[%s128_s17] sm:$0xff] (!%p1470_p4), %v158_v1  ;;  %v196_v2 = vld [vmem:[%s168_s16] sm:$0xff] (!%p1470_p4)  ;;  %s166_s24 = scalar_lea.vmem (!%p1470_p4), [#allocation2], %s1471_s22  ;;  %s204_s25 = scalar_lea.vmem (!%p1470_p4), [#allocation3], %s1471_s22 }
   0xf   : > { %197 = vst [vmem:[%s166_s24] sm:$0xff] %v196_v2  ;;  %v234_v3 = vld [vmem:[%s206_s23] sm:$0xff] }
  0x10   : > { %235 = vst [vmem:[%s204_s25] sm:$0xff] %v234_v3 }
  0x11 PF: > { %p1479_p5 = scmp.ge.s32.totalorder %s1609_s11, 1  ;;  %p240_p6 = scmp.lt.s32.totalorder %s1609_s11, 3 }
  0x13   : > { %p241_p7 = pnand %p1479_p5, %p240_p6 }
  0x15   : > { %244 = sbr.rel (%p241_p7) target bundleno = 992 (0x3e0), region = 156 }
  0x1c   : > { %s247_s26 = sand.u32 1, %s1688_s12   ;;  %s281_s27 = sand.u32 1, %s1601_s30   ;;  %v325_v4 = vlaneseq  ;;  %v1619_v11 = vmov 0.0  }
  0x1d   : > { %s1480_s28 = sshll.u32 %s247_s26, 3  ;;  %s1725_s18 = sshll.u32 %s281_s27, 1 }
  0x1e   : > { %v1727_v5 = vand.u32 127, %v325_v4  ;;  %v1729_v6 = vshrl.u32 %v325_v4, 7  ;;  %s249_s21 = scalar_lea.vmem [#allocation0], %s1480_s28  ;;  %s253_s22 = scalar_lea.vmem [#allocation1], %s1480_s28 }
  0x1f   : > { %v309_v7 = vld [vmem:[%s249_s21] sm:$0xff]  ;;  %v312_v8 = vld [vmem:[%s253_s22] sm:$0xff]  ;;  %s257_s29 = scalar_lea.vmem [#allocation2], %s1480_s28  ;;  %s261_s11 = scalar_lea.vmem [#allocation3], %s1480_s28 }
  0x20   : > { %v315_v9 = vld [vmem:[%s257_s29] sm:$0xff]  ;;  %v318_v10 = vld [vmem:[%s261_s11] sm:$0xff]  ;;  %s1731_s14 = scalar_lea.vmem [#allocation8], %s1480_s28  ;;  %s1734_s30 = scalar_lea.vmem [#allocation9], %s1480_s28  ;;  %v327_v5 = vmov %v1727_v5  ;;  %v330_v6 = vmov %v1729_v6  ;;  %vm1359_vm2 = vcmp.lt.s32.totalorder %v1727_v5, 6 }
  0x21   : > { %320 = vst [vmem:[%s1731_s14] sm:$0xff] %v1619_v11  ;;  %321 = vst [vmem:[%s1734_s30] sm:$0xff] %v1619_v11  ;;  %s308_s15 = smov [#allocation12]  ;;  %s311_s16 = smov [#allocation13]  ;;  %v340_v5 = vmov %v1727_v5  ;;  %v343_v6 = vmov %v1729_v6  ;;  %vm334_vm0 = vcmp.eq.s32.totalorder %v330_v6, %v327_v5 }
  0x22   : > { %s1737_s17 = scalar_lea.vmem [#allocation10], %s1480_s28  ;;  %s1740_s20 = scalar_lea.vmem [#allocation11], %s1480_s28  ;;  %310 = vst [vmem:[%s308_s15] sm:$0xff] %v309_v7  ;;  %313 = vst [vmem:[%s311_s16] sm:$0xff] %v312_v8  ;;  %vm347_vm1 = vcmp.eq.s32.totalorder %v343_v6, %v340_v5  ;;  %v1351_v5 = vmov %v1727_v5  ;;  %v1354_v6 = vmov %v1729_v6 }
  0x23   : > { %322 = vst [vmem:[%s1737_s17] sm:$0xff] %v1619_v11  ;;  %323 = vst [vmem:[%s1740_s20] sm:$0xff] %v1619_v11  ;;  %s314_s23 = smov [#allocation14]  ;;  %s317_s24 = smov [#allocation15]  ;;  %vm1364_vm3 = vcmp.eq.s32.totalorder %v1354_v6, %v1351_v5  ;;  %v1402_v5 = vmov %v1727_v5  ;;  %v1371_v6 = vmov %v1729_v6 }
  0x24   : > { %316 = vst [vmem:[%s314_s23] sm:$0xff] %v315_v9  ;;  %319 = vst [vmem:[%s317_s24] sm:$0xff] %v318_v10  ;;  %s324_s14 = smov %s1731_s14  ;;  %s337_s20 = smov %s1740_s20  ;;  %v1368_v5 = vmov %v1727_v5  ;;  %v1405_v6 = vmov %v1729_v6 }
  0x25   : > { %s283_s25 = scalar_lea.vmem [#allocation5], %s1725_s18  ;;  %s1355_s27 = smov [#allocation12]  ;;  %v1385_v5 = vmov %v1727_v5  ;;  %v1388_v6 = vmov %v1729_v6  ;;  %vm1415_vm4 = vcmp.eq.s32.totalorder %v1405_v6, %v1402_v5 }
  0x26   : > { %s1372_s28 = smov [#allocation13]  ;;  %s1389_s21 = smov [#allocation14] }
  0x27   : > { %s1406_s22 = smov [#allocation15] }
  0x28   : > { %v331_v12 = vld [vmem:[%s324_s14] sm:$0x3f] }
  0x29   : > { %v335_v13 = vsel %vm334_vm0, 1.0, %v331_v12  ;;  %v1361_v16 = vld [vmem:[%s1355_s27] sm:$0x3f] }
  0x2a   : > { %v344_v14 = vld [vmem:[%s337_s20] sm:$0x3f]  ;;  %336 = vst [vmem:[%s324_s14] sm:$0x3f] %v335_v13  ;;  %v1362_v18 = vsel %vm1359_vm2, %v1361_v16, 0.0 }
  0x2b   : > { %v348_v15 = vsel %vm347_vm1, 1.0, %v344_v14  ;;  %v1378_v17 = vld [vmem:[%s1372_s28] sm:$0x3f]  ;;  %v1363_v22 = vmul.f32 %v1362_v18, %v1362_v18 }
  0x2c   : > { %349 = vst [vmem:[%s337_s20] sm:$0x3f] %v348_v15  ;;  %v1379_v19 = vsel %vm1359_vm2, %v1378_v17, 0.0  ;;  %v1395_v20 = vld [vmem:[%s1389_s21] sm:$0x3f] }
  0x2d   : > { %v1412_v21 = vld [vmem:[%s1406_s22] sm:$0x3f]  ;;  %v1380_v23 = vmul.f32 %v1379_v19, %v1379_v19  ;;  %v1396_v24 = vsel %vm1359_vm2, %v1395_v20, 0.0  ;;  %v1365_v29 = vsel %vm1364_vm3, 0.0, %v1363_v22 }
  0x2e   : > { %v1413_v25 = vsel %vm1359_vm2, %v1412_v21, 0.0  ;;  %v1397_v26 = vmul.f32 %v1396_v24, %v1396_v24 }
  0x2f   : > { %v1382_v27 = vadd.f32 %v1380_v23, %v1363_v22  ;;  %v1414_v28 = vmul.f32 %v1413_v25, %v1413_v25  ;;  %v1381_v30 = vadd.f32 %v1380_v23, %v1365_v29 }
  0x31   : > { %v1399_v31 = vadd.f32 %v1397_v26, %v1382_v27  ;;  %v1398_v32 = vadd.f32 %v1397_v26, %v1381_v30  ;;  %v1416_v33 = vsel %vm1415_vm4, 0.0, %v1414_v28 }
  0x33   : > { %v1418_v34 = vadd.f32 %v1414_v28, %v1399_v31  ;;  %v1417_v35 = vadd.f32 %v1416_v33, %v1398_v32 }
  0x35   : > { %1419 = vadd.xlane.f32.xlu0 %v1418_v34 }
  0x39   : > { %1427 = vadd.xlane.f32.xlu0 %v1417_v35 }
  0xc2   : > { %v1420_v36 = vpop.xlane.xlu0 %1419 }
  0xc3   : > { %v1421_v37 = vrot.slane %v1420_v36, 4 }
  0xc5   : > { %v1422_v38 = vadd.f32 %v1421_v37, %v1420_v36 }
  0xc6   : > { %v1428_v39 = vpop.xlane.xlu0 %1427 }
  0xc7   : > { %v1423_v40 = vrot.slane %v1422_v38, 2  ;;  %v1429_v41 = vrot.slane %v1428_v39, 4 }
  0xc9   : > { %v1430_v42 = vadd.f32 %v1429_v41, %v1428_v39  ;;  %v1424_v43 = vadd.f32 %v1423_v40, %v1422_v38 }
  0xcb   : > { %v1431_v44 = vrot.slane %v1430_v42, 2  ;;  %v1425_v46 = vrot.slane %v1424_v43, 1 }
  0xcd   : > { %v1432_v45 = vadd.f32 %v1431_v44, %v1430_v42  ;;  %v1426_v49 = vadd.f32 %v1425_v46, %v1424_v43 }
  0xcf   : > { %v1433_v47 = vrot.slane %v1432_v45, 1 }
  0xd1   : > { %v1434_v48 = vadd.f32 %v1433_v47, %v1432_v45 }
  0xd3   : > { %1520 = vpush %v1434_v48 }
  0xd4   : > { %1522 = vpush %v1426_v49 }
 0x104   : > { %s1521_s29 = spop %1520 }
 0x105   : > { %s1523_s11 = spop %1522 }
 0x106   : > { %s1437_s15 = smul.f32 1e-10, %s1523_s11 }
 0x108   : > { %p1438_p8 = scmp.le.f32.partialorder %s1521_s29, %s1437_s15 }
 0x109   : > { %s1769_s16 = smov (!%p1438_p8), 0  }
 0x10a   : > { %1441 = sbr.rel (%p1438_p8) target bundleno = 948 (0x3b4), region = 499 }
 0x111 LB: >> { %s1774_s23 = smov 0   ;;  %s1613_s16 = sphi %s1769_s16, %s2011_s16  }
 0x112 LB: >>> { %s454_s24 = smov [#allocation12]  ;;  %v458_v5 = vmov %v1727_v5  ;;  %v461_v6 = vmov %v1729_v6  ;;  %s474_s27 = smov [#allocation13]  ;;  %vm777_vm14 = vcmp.eq.s32.totalorder %v1729_v6, 0  ;;  %vm789_vm15 = vcmp.eq.s32.totalorder %v1729_v6, 5  ;;  %s1617_s23 = sphi %s1774_s23, %s453_s23  }
 0x113   : >>> { %v478_v5 = vmov %v1727_v5  ;;  %v481_v6 = vmov %v1729_v6  ;;  %v462_v50 = vld [vmem:[%s454_s24] sm:$0x3f]  ;;  %vm465_vm5 = vcmp.eq.s32.totalorder %v461_v6, %v458_v5  ;;  %s494_s28 = smov [#allocation15]  ;;  %s455_s21 = smov [#allocation16] }
 0x114   : >>> { %vm485_vm6 = vcmp.eq.s32.totalorder %v481_v6, %v478_v5  ;;  %v498_v5 = vmov %v1727_v5  ;;  %v501_v6 = vmov %v1729_v6  ;;  %v466_v51 = vsel %vm465_vm5, %v462_v50, 0.0  ;;  %v482_v52 = vld [vmem:[%s474_s27] sm:$0x3f]  ;;  %s475_s22 = smov [#allocation17]  ;;  %s495_s29 = smov [#allocation18] }
 0x115   : >>> { %vm505_vm7 = vcmp.eq.s32.totalorder %v501_v6, %v498_v5  ;;  %v467_v53 = vrot.slane %v466_v51, 4  ;;  %v486_v54 = vsel %vm485_vm6, %v482_v52, 0.0  ;;  %v502_v55 = vld [vmem:[%s494_s28] sm:$0x3f]  ;;  %s518_s11 = smov [#allocation17]  ;;  %s516_s15 = smov [#allocation16]  ;;  %v567_v5 = vmov %v1727_v5 }
 0x116   : >>> { %v487_v56 = vrot.slane %v486_v54, 4  ;;  %v506_v57 = vsel %vm505_vm7, %v502_v55, 0.0  ;;  %s520_s24 = smov [#allocation18]  ;;  %s555_s27 = smov [#allocation19]  ;;  %v570_v6 = vmov %v1729_v6  ;;  %v582_v5 = vmov %v1727_v5 }
 0x117   : >>> { %v468_v58 = vadd.f32 %v467_v53, %v466_v51  ;;  %v507_v59 = vrot.slane %v506_v57, 4  ;;  %s557_s28 = smov [#allocation20]  ;;  %v585_v6 = vmov %v1729_v6  ;;  %vm572_vm12 = vcmp.eq.s32.totalorder %v570_v6, %v567_v5  ;;  %s1798_s14 = smov %s1731_s14 }
 0x118   : >>> { %v488_v60 = vadd.f32 %v487_v56, %v486_v54  ;;  %vm587_vm13 = vcmp.eq.s32.totalorder %v585_v6, %v582_v5  ;;  %s1801_s30 = smov %s1734_s30  ;;  %s1804_s17 = smov %s1737_s17  ;;  %v825_v53 = vld [vmem:[%s1798_s14] sm:$0x3f]  ;;  %v680_v5 = vmov %v1727_v5  ;;  %v683_v6 = vmov %v1729_v6 }
 0x119   : >>> { %v469_v61 = vrot.slane %v468_v58, 2  ;;  %v508_v62 = vadd.f32 %v507_v59, %v506_v57  ;;  %s1809_s20 = smov %s1740_s20  ;;  %v826_v54 = vld [vmem:[%s1801_s30] sm:$0x3f]  ;;  %s819_s26 = smov [#allocation24]  ;;  %v694_v5 = vmov %v1727_v5  ;;  %v697_v6 = vmov %v1729_v6 }
 0x11a   : >>> { %v489_v63 = vrot.slane %v488_v60, 2  ;;  %v827_v55 = vld [vmem:[%s1804_s17] sm:$0x3f]  ;;  %vm687_vm0 = vcmp.eq.s32.totalorder %v683_v6, %v680_v5  ;;  %v653_v5 = vmov %v1727_v5  ;;  %v656_v6 = vmov %v1729_v6  ;;  %s453_s23 = sadd.s32 1, %s1617_s23  }
 0x11b   : >>> { %v470_v0 = vadd.f32 %v469_v61, %v468_v58  ;;  %v509_v1 = vrot.slane %v508_v62, 2  ;;  %v828_v57 = vld [vmem:[%s1809_s20] sm:$0x3f]  ;;  %v667_v5 = vmov %v1727_v5  ;;  %v670_v6 = vmov %v1729_v6  ;;  %p450_p9 = scmp.ge.s32.totalorder %s453_s23, 11  }
 0x11c   : >>> { %v490_v2 = vadd.f32 %v489_v63, %v488_v60  ;;  %vm702_vm1 = vcmp.eq.s32.totalorder %v697_v6, %v694_v5  ;;  %vm661_vm3 = vcmp.eq.s32.totalorder %v656_v6, %v653_v5  ;;  %vm674_vm4 = vcmp.eq.s32.totalorder %v670_v6, %v667_v5 }
 0x11d   : >>> { %v471_v3 = vrot.slane %v470_v0, 1  ;;  %v510_v4 = vadd.f32 %v509_v1, %v508_v62  ;;  %vm716_vm5 = vcmp.eq.s32.totalorder %v1727_v5, 0  ;;  %vm720_vm6 = vcmp.eq.s32.totalorder %v1727_v5, 1 }
 0x11e   : >>> { %v491_v7 = vrot.slane %v490_v2, 1  ;;  %vm733_vm7 = vcmp.eq.s32.totalorder %v1727_v5, 5  ;;  %v354_v5 = vmov (%p450_p9), %v1727_v5  ;;  %v357_v6 = vmov (%p450_p9), %v1729_v6 }
 0x11f   : >>> { %v472_v8 = vadd.f32 %v471_v3, %v470_v0  ;;  %v511_v9 = vrot.slane %v510_v4, 1  ;;  %v407_v5 = vmov (%p450_p9), %v1727_v5 }
 0x120   : >>> { %v492_v10 = vadd.f32 %v491_v7, %v490_v2 }
 0x121   : >>> { %473 = vst [vmem:[%s455_s21] sm:$0x1] %v472_v8  ;;  %v512_v11 = vadd.f32 %v511_v9, %v510_v4  ;;  %s514_s21 = smov [#allocation21] }
 0x122   : >>> { %493 = vst [vmem:[%s475_s22] sm:$0x1] %v492_v10  ;;  %s515_s22 = smov [#allocation22]  ;;  %s559_s21 = smov %s514_s21 }
 0x123   : >>> { %513 = vst [vmem:[%s495_s29] sm:$0x1] %v512_v11  ;;  %s561_s22 = smov %s515_s22  ;;  %s563_s29 = smov [#allocation21] }
 0x128   : >>> { %v517_v14 = vld [vmem:[%s516_s15] sm:$0xff]  ;;  %s576_s15 = smov [#allocation23] }
 0x129   : >>> { %v519_v12 = vld [vmem:[%s518_s11] sm:$0xff]  ;;  %v540_v27 = vand.u32 2147483647, %v517_v14  ;;  %s578_s11 = smov [#allocation22] }
 0x12a   : >>> { %v523_v13 = vmul.f32 2.0, %v519_v12  ;;  %v521_v15 = vld [vmem:[%s520_s24] sm:$0xff]  ;;  %v541_v32 = vand.u32 2147483647, %v519_v12  ;;  %s593_s24 = smov [#allocation23] }
 0x12b   : >>> { %v522_v16 = vsub.f32 %v521_v15, %v517_v14  ;;  %v542_v28 = vand.u32 2147483647, %v521_v15 }
 0x12c   : >>> { %1571 = vrcp.f32 %v523_v13 }
 0x12d   : >>> { %v543_v31 = vmin.f32 %v540_v27, %v542_v28 }
 0x12f   : >>> { %v544_v33 = vmul.f32 1.1920929e-08, %v543_v31 }
 0x131   : >>> { %vm545_vm11 = vcmp.le.f32.partialorder %v541_v32, %v544_v33 }
 0x136   : >>> { %v1572_v17 = vpop.eup %1571 }
 0x137   : >>> { %v525_v18 = vmul.f32 %v1572_v17, %v522_v16 }
 0x139   : >>> { %v527_v19 = vmul.f32 %v525_v18, %v525_v18  ;;  %vm526_vm10 = vcmp.ge.f32.partialorder %v525_v18, 0.0 }
 0x13b   : >>> { %v528_v20 = vadd.f32 1.0, %v527_v19 }
 0x13d   : >>> { %1573 = vrsqrt.f32 %v528_v20  ;;  %vm531_vm8 = vcmp.eq.f32.partialorder %v528_v20, inf  ;;  %v534_v22 = vand.u32 2147483648, %v528_v20  ;;  %vm533_vm9 = vcmp.eq.f32.partialorder %v528_v20, 0.0 }
 0x147   : >>> { %v1574_v21 = vpop.eup %1573 }
 0x148   : >>> { %v530_v23 = vmul.f32 %v1574_v21, %v528_v20 }
 0x14a   : >>> { %v532_v24 = vsel %vm531_vm8, %v528_v20, %v530_v23  ;;  %vm369_vm8 = vcmp.eq.s32.totalorder (%p450_p9), %v357_v6, %v354_v5  ;;  %v410_v6 = vmov (%p450_p9), %v1729_v6  ;;  %v373_v5 = vmov (%p450_p9), %v1727_v5 }
 0x14b   : >>> { %v535_v25 = vsel %vm533_vm9, %v534_v22, %v532_v24  ;;  %v376_v6 = vmov (%p450_p9), %v1729_v6  ;;  %v390_v5 = vmov (%p450_p9), %v1727_v5  ;;  %vm422_vm9 = vcmp.eq.s32.totalorder (%p450_p9), %v410_v6, %v407_v5 }
 0x14c   : >>> { %v536_v26 = vxor.u32 2147483648, %v535_v25  ;;  %v393_v6 = vmov (%p450_p9), %v1729_v6 }
 0x14e   : >>> { %v537_v29 = vsel %vm526_vm10, %v535_v25, %v536_v26 }
 0x14f   : >>> { %v538_v30 = vadd.f32 %v537_v29, %v525_v18 }
 0x151   : >>> { %1575 = vrcp.f32 %v538_v30 }
 0x15b   : >>> { %v1576_v34 = vpop.eup %1575 }
 0x15c   : >>> { %v546_v35 = vsel %vm545_vm11, 0.0, %v1576_v34 }
 0x15d   : >>> { %v547_v36 = vmul.f32 %v546_v35, %v546_v35  ;;  %v551_v37 = vmul.f32 %v546_v35, %v519_v12 }
 0x15f   : >>> { %v548_v38 = vadd.f32 1.0, %v547_v36  ;;  %v552_v39 = vsub.f32 %v517_v14, %v551_v37  ;;  %v554_v40 = vadd.f32 %v551_v37, %v521_v15 }
 0x161   : >>> { %1577 = vrsqrt.f32 %v548_v38  ;;  %556 = vst [vmem:[%s555_s27] sm:$0xff] %v552_v39  ;;  %558 = vst [vmem:[%s557_s28] sm:$0xff] %v554_v40  ;;  %s1789_s27 = smov [#allocation12]  ;;  %s591_s28 = smov [#allocation24] }
 0x162   : >>> { %v601_v49 = vld [vmem:[%s1789_s27] sm:$0x3f] }
 0x16b   : >>> { %v1578_v41 = vpop.eup %1577 }
 0x16c   : >>> { %560 = vst [vmem:[%s559_s21] sm:$0xff] %v1578_v41  ;;  %v550_v42 = vmul.f32 %v1578_v41, %v546_v35  ;;  %s1791_s21 = smov [#allocation13] }
 0x16d   : >>> { %v602_v50 = vld [vmem:[%s1791_s21] sm:$0x3f] }
 0x16e   : >>> { %562 = vst [vmem:[%s561_s22] sm:$0xff] %v550_v42  ;;  %s1793_s22 = smov [#allocation14] }
 0x16f   : >>> { %v603_v51 = vld [vmem:[%s1793_s22] sm:$0x3f] }
 0x173   : >>> { %v564_v43 = vld [vmem:[%s563_s29] ss:$0 sm:$0xff]  ;;  %s1795_s29 = smov [#allocation15] }
 0x174   : >>> { %v573_v44 = vsel %vm572_vm12, %v564_v43, 0.0  ;;  %v604_v52 = vld [vmem:[%s1795_s29] sm:$0x3f] }
 0x175   : >>> { %574 = vadd.xlane.f32.xlu0 %v573_v44  ;;  %v579_v45 = vld [vmem:[%s578_s11] ss:$0 sm:$0xff]  ;;  %s817_s11 = smov [#allocation23] }
 0x176   : >>> { %v588_v46 = vsel %vm587_vm13, %v579_v45, 0.0 }
 0x179   : >>> { %589 = vadd.xlane.f32.xlu0 %v588_v46 }
 0x202   : >>> { %v575_v47 = vpop.xlane.xlu0 %574 }
 0x203   : >>> { %577 = vst [vmem:[%s576_s15] sm:$0xff] %v575_v47  ;;  %s595_s15 = smov [#allocation24] }
 0x206   : >>> { %v590_v48 = vpop.xlane.xlu0 %589 }
 0x207   : >>> { %592 = vst [vmem:[%s591_s28] sm:$0xff] %v590_v48  ;;  %s1825_s28 = smov [#allocation14] }
 0x20a   : >>> { %v594_v56 = vld [vmem:[%s593_s24] sm:$0xff]  ;;  %s623_s24 = smov [#allocation22] }
 0x20b   : >>> { %v818_v58 = vld [vmem:[%s817_s11] sm:$0xff]  ;;  %v605_v59 = vmul.f32 %v601_v49, %v594_v56  ;;  %v608_v60 = vmul.f32 %v602_v50, %v594_v56  ;;  %v612_v61 = vmul.f32 %v603_v51, %v594_v56  ;;  %v615_v62 = vmul.f32 %v604_v52, %v594_v56  ;;  %s1827_s11 = smov [#allocation15] }
 0x20c   : >>> { %v829_v63 = vmul.f32 %v825_v53, %v818_v58  ;;  %v832_v0 = vmul.f32 %v826_v54, %v818_v58  ;;  %v836_v1 = vmul.f32 %v827_v55, %v818_v58  ;;  %v839_v2 = vmul.f32 %v828_v57, %v818_v58  ;;  %v624_v24 = vld [vmem:[%s623_s24] ss:$0 sm:$0xff]  ;;  %s649_s24 = smov [#allocation12] }
 0x20e   : >>> { %v596_v3 = vld [vmem:[%s595_s15] sm:$0xff]  ;;  %s1829_s15 = smov [#allocation12] }
 0x20f   : >>> { %v820_v4 = vld [vmem:[%s819_s26] sm:$0xff]  ;;  %v606_v7 = vmul.f32 %v603_v51, %v596_v3  ;;  %v609_v8 = vmul.f32 %v604_v52, %v596_v3  ;;  %v611_v9 = vmul.f32 %v601_v49, %v596_v3  ;;  %v614_v10 = vmul.f32 %v602_v50, %v596_v3  ;;  %s621_s26 = smov [#allocation21] }
 0x210   : >>> { %v830_v11 = vmul.f32 %v827_v55, %v820_v4  ;;  %v833_v12 = vmul.f32 %v828_v57, %v820_v4  ;;  %v835_v13 = vmul.f32 %v825_v53, %v820_v4  ;;  %v838_v14 = vmul.f32 %v826_v54, %v820_v4  ;;  %v622_v23 = vld [vmem:[%s621_s26] ss:$0 sm:$0xff]  ;;  %s650_s26 = smov [#allocation19] }
 0x211   : >>> { %v607_v15 = vsub.f32 %v605_v59, %v606_v7  ;;  %v610_v16 = vsub.f32 %v608_v60, %v609_v8  ;;  %v613_v17 = vadd.f32 %v612_v61, %v611_v9  ;;  %v616_v18 = vadd.f32 %v615_v62, %v614_v10  ;;  %v657_v59 = vld [vmem:[%s650_s26] ss:$0 sm:$0xff]  ;;  %s769_s26 = smov [#allocation12] }
 0x212   : >>> { %v831_v19 = vsub.f32 %v829_v63, %v830_v11  ;;  %v834_v20 = vsub.f32 %v832_v0, %v833_v12  ;;  %v837_v21 = vadd.f32 %v836_v1, %v835_v13  ;;  %v840_v22 = vadd.f32 %v839_v2, %v838_v14 }
 0x213   : >>> { %618 = vst [vmem:[%s1791_s21] sm:$0x3f] %v610_v16  ;;  %620 = vst [vmem:[%s1795_s29] sm:$0x3f] %v616_v18  ;;  %s691_s21 = smov [#allocation20]  ;;  %s690_s29 = smov [#allocation15] }
 0x214   : >>> { %617 = vst [vmem:[%s1789_s27] sm:$0x3f] %v607_v15  ;;  %619 = vst [vmem:[%s1793_s22] sm:$0x3f] %v613_v17  ;;  %s1842_s27 = smov [#allocation13]  ;;  %s677_s22 = smov [#allocation14]  ;;  %v698_v55 = vld [vmem:[%s691_s21] ss:$0 sm:$0xff] }
 0x215   : >>> { %841 = vst [vmem:[%s1798_s14] sm:$0x3f] %v831_v19  ;;  %842 = vst [vmem:[%s1801_s30] sm:$0x3f] %v834_v20  ;;  %s1832_s14 = smov %s1731_s14  ;;  %s1840_s30 = smov %s1734_s30 }
 0x216   : >>> { %843 = vst [vmem:[%s1804_s17] sm:$0x3f] %v837_v21  ;;  %844 = vst [vmem:[%s1809_s20] sm:$0x3f] %v840_v22  ;;  %s1835_s17 = smov %s1737_s17  ;;  %s1845_s20 = smov %s1740_s20 }
 0x217   : >>> { %s706_s21 = smov [#allocation13] }
 0x21a   : >>> { %v632_v26 = vld [vmem:[%s1827_s11] sm:$0x3f] }
 0x21b   : >>> { %v631_v25 = vld [vmem:[%s1825_s28] sm:$0x3f]  ;;  %v640_v32 = vmul.f32 %v632_v26, %v624_v24  ;;  %v643_v38 = vmul.f32 %v632_v26, %v622_v23 }
 0x21c   : >>> { %v629_v27 = vld [vmem:[%s1829_s15] sm:$0x3f]  ;;  %v639_v31 = vmul.f32 %v631_v25, %v622_v23  ;;  %v642_v33 = vmul.f32 %v631_v25, %v624_v24 }
 0x21d   : >>> { %v847_v28 = vld [vmem:[%s1832_s14] ss:$0 sm:$0xff]  ;;  %v1499_v30 = vld [vmem:[%s1832_s14 + $0x5] ss:$0 sm:$0xff]  ;;  %v633_v44 = vmul.f32 %v629_v27, %v622_v23  ;;  %v636_v45 = vmul.f32 %v629_v27, %v624_v24 }
 0x21e   : >>> { %v1498_v29 = vld [vmem:[%s1832_s14 - $0x1] sm:$0x3e]  ;;  %v1503_v41 = vld [vmem:[%s1840_s30 + $0x5] ss:$0 sm:$0xff]  ;;  %v641_v43 = vsub.f32 %v639_v31, %v640_v32  ;;  %v644_v49 = vadd.f32 %v643_v38, %v642_v33 }
 0x21f   : >>> { %v854_v34 = vsel %vm777_vm14, %v847_v28, %v1498_v29  ;;  %v858_v35 = vld [vmem:[%s1835_s17] ss:$0 sm:$0xff]  ;;  %v1501_v36 = vld [vmem:[%s1835_s17 + $0x1] sm:$0x1f] }
 0x220   : >>> { %v871_v37 = vld [vmem:[%s1840_s30] ss:$0 sm:$0xff]  ;;  %857 = vst [vmem:[%s1832_s14] sm:$0x3f] %v854_v34  ;;  %v866_v39 = vsel %vm789_vm15, %v1499_v30, %v1501_v36  ;;  %v1505_v47 = vld [vmem:[%s1845_s20 + $0x1] sm:$0x1f]  ;;  %647 = vst [vmem:[%s1825_s28] sm:$0x3f] %v641_v43 }
 0x221   : >>> { %v1502_v40 = vld [vmem:[%s1840_s30 - $0x1] sm:$0x3e]  ;;  %1500 = vst [vmem:[%s1832_s14 + $0x1] sm:$0x1] %v858_v35  ;;  %868 = vst [vmem:[%s1835_s17] sm:$0x3f] %v866_v39  ;;  %v890_v50 = vsel %vm789_vm15, %v1503_v41, %v1505_v47  ;;  %s664_s28 = smov [#allocation13] }
 0x222   : >>> { %v882_v42 = vld [vmem:[%s1845_s20] ss:$0 sm:$0xff]  ;;  %v878_v46 = vsel %vm777_vm14, %v871_v37, %v1502_v40  ;;  %648 = vst [vmem:[%s1827_s11] sm:$0x3f] %v644_v49  ;;  %s1887_s11 = smov [#allocation14] }
 0x223   : >>> { %v630_v48 = vld [vmem:[%s1842_s27] sm:$0x3f]  ;;  %881 = vst [vmem:[%s1840_s30] sm:$0x3f] %v878_v46  ;;  %892 = vst [vmem:[%s1845_s20] sm:$0x3f] %v890_v50 }
 0x224   : >>> { %v634_v51 = vmul.f32 %v630_v48, %v624_v24  ;;  %v637_v52 = vmul.f32 %v630_v48, %v622_v23  ;;  %1504 = vst [vmem:[%s1840_s30 + $0x1] sm:$0x1] %v882_v42 }
 0x226   : >>> { %v635_v53 = vsub.f32 %v633_v44, %v634_v51  ;;  %v638_v54 = vadd.f32 %v637_v52, %v636_v45 }
 0x227   : >>> { %v684_v56 = vld [vmem:[%s677_s22] sm:$0x3f] }
 0x228   : >>> { %645 = vst [vmem:[%s1829_s15] sm:$0x3f] %v635_v53  ;;  %646 = vst [vmem:[%s1842_s27] sm:$0x3f] %v638_v54  ;;  %v688_v57 = vsel %vm687_vm0, 0.0, %v684_v56  ;;  %s1620_s15 = smov 1   ;;  %s705_s27 = smov [#allocation12] }
 0x229   : >>> { %v699_v58 = vld [vmem:[%s690_s29] sm:$0x3f]  ;;  %689 = vst [vmem:[%s677_s22] sm:$0x3f] %v688_v57  ;;  %s1621_s22 = smov 127  }
 0x22a   : >>> { %v703_v60 = vsel %vm702_vm1, %v698_v55, %v699_v58 }
 0x22b   : >>> { %704 = vst [vmem:[%s690_s29] sm:$0x3f] %v703_v60  ;;  %s1890_s29 = smov [#allocation15] }
 0x22f   : >>> { %v658_v61 = vld [vmem:[%s649_s24] sm:$0x3f] }
 0x230   : >>> { %v671_v62 = vld [vmem:[%s664_s28] sm:$0x3f]  ;;  %v662_v63 = vsel %vm661_vm3, %v657_v59, %v658_v61 }
 0x231   : >>> { %v675_v0 = vsel %vm674_vm4, 0.0, %v671_v62  ;;  %663 = vst [vmem:[%s649_s24] sm:$0x3f] %v662_v63  ;;  %v743_v1 = vld [vmem:[%s1887_s11] sm:$0x3f]  ;;  %s793_s24 = smov [#allocation13] }
 0x232   : >>> { %676 = vst [vmem:[%s664_s28] sm:$0x3f] %v675_v0  ;;  %744 = vrot.lane.b32.xlu0 %v743_v1, %s1620_s15  ;;  %v739_v7 = vld [vmem:[%s1890_s29] sm:$0x3f]  ;;  %s770_s28 = smov [#allocation14] }
 0x233   : >>> { %v760_v8 = vld [vmem:[%s1890_s29] sm:$0x3f] }
 0x234   : >>> { %v742_v26 = vld [vmem:[%s1887_s11] sm:$0x3f] }
 0x238   : >>> { %v711_v2 = vld [vmem:[%s705_s27] sm:$0x3f] }
 0x239   : >>> { %712 = vrot.lane.b32.xlu1 %v711_v2, %s1620_s15  ;;  %v707_v3 = vld [vmem:[%s706_s21] sm:$0x3f] }
 0x23a   : >>> { %v728_v4 = vld [vmem:[%s706_s21] sm:$0x3f] }
 0x23b   : >>> { %v710_v14 = vld [vmem:[%s705_s27] sm:$0x3f] }
 0x23d   : >>> { %708 = vrot.lane.b32.xlu1 %v707_v3, %s1620_s15 }
 0x241   : >>> { %729 = vrot.lane.b32.xlu1 %v728_v4, %s1621_s22 }
 0x245   : >>> { %740 = vrot.lane.b32.xlu1 %v739_v7, %s1620_s15  ;;  %s794_s15 = smov [#allocation15] }
 0x249   : >>> { %761 = vrot.lane.b32.xlu1 %v760_v8, %s1621_s22  ;;  %s394_s22 = smov (%p450_p9), [#allocation14] }
 0x2a4   : >>> { %v745_v16 = vpop.permute.xlu0 %744 }
 0x2a5   : >>> { %v749_v18 = vsel %vm716_vm5, %v743_v1, %v745_v16 }
 0x2ab   : >>> { %v713_v9 = vpop.permute.xlu1 %712 }
 0x2ac   : >>> { %v717_v10 = vsel %vm716_vm5, %v711_v2, %v713_v9 }
 0x2af   : >>> { %v709_v11 = vpop.permute.xlu1 %708 }
 0x2b0   : >>> { %v721_v12 = vsel %vm720_vm6, %v709_v11, %v717_v10 }
 0x2b1   : >>> { %v727_v13 = vsel %vm1359_vm2, %v721_v12, 0.0 }
 0x2b2   : >>> { %735 = vst [vmem:[%s705_s27] sm:$0x3f] %v727_v13  ;;  %s358_s27 = smov (%p450_p9), [#allocation12] }
 0x2b3   : >>> { %v730_v15 = vpop.permute.xlu1 %729 }
 0x2b4   : >>> { %v734_v17 = vsel %vm733_vm7, %v710_v14, %v730_v15 }
 0x2b5   : >>> { %736 = vst [vmem:[%s706_s21] sm:$0x3f] %v734_v17  ;;  %s377_s21 = smov (%p450_p9), [#allocation13] }
 0x2b7   : >>> { %v741_v19 = vpop.permute.xlu1 %740 }
 0x2b8   : >>> { %v753_v20 = vsel %vm720_vm6, %v741_v19, %v749_v18 }
 0x2b9   : >>> { %v771_v21 = vld [vmem:[%s769_s26] ss:$0 sm:$0xff]  ;;  %v1491_v23 = vld [vmem:[%s769_s26 + $0x5] ss:$0 sm:$0xff]  ;;  %v759_v25 = vsel %vm1359_vm2, %v753_v20, 0.0 }
 0x2ba   : >>> { %v1490_v22 = vld [vmem:[%s769_s26 - $0x1] sm:$0x3e]  ;;  %767 = vst [vmem:[%s1887_s11] sm:$0x3f] %v759_v25  ;;  %s893_s11 = sadd.s32 (%p450_p9), 1, %s1613_s16  }
 0x2bb   : >>> { %v778_v24 = vsel %vm777_vm14, %v771_v21, %v1490_v22  ;;  %v762_v27 = vpop.permute.xlu1 %761  ;;  %p446_p10 = scmp.ge.s32.totalorder (%p450_p9), %s893_s11, 15  ;;  %s2011_s16 = smov (%p450_p9), %s893_s11 }
 0x2bc   : >>> { %781 = vst [vmem:[%s769_s26] sm:$0x3f] %v778_v24  ;;  %v795_v28 = vld [vmem:[%s793_s24] ss:$0 sm:$0xff]  ;;  %v1495_v30 = vld [vmem:[%s793_s24 + $0x5] ss:$0 sm:$0xff]  ;;  %v766_v31 = vsel %vm733_vm7, %v742_v26, %v762_v27 }
 0x2bd   : >>> { %v1494_v29 = vld [vmem:[%s793_s24 - $0x1] sm:$0x3e]  ;;  %768 = vst [vmem:[%s1890_s29] sm:$0x3f] %v766_v31  ;;  %s411_s29 = smov (%p450_p9), [#allocation15] }
 0x2be   : >>> { %v802_v32 = vsel %vm777_vm14, %v795_v28, %v1494_v29 }
 0x2bf   : >>> { %805 = vst [vmem:[%s793_s24] sm:$0x3f] %v802_v32 }
 0x2c1   : >>> { %v782_v33 = vld [vmem:[%s770_s28] ss:$0 sm:$0xff]  ;;  %v1493_v34 = vld [vmem:[%s770_s28 + $0x1] sm:$0x1f] }
 0x2c2   : >>> { %1492 = vst [vmem:[%s769_s26 + $0x1] sm:$0x1] %v782_v33  ;;  %v790_v35 = vsel %vm789_vm15, %v1491_v23, %v1493_v34  ;;  %452 = sbr.rel (!%p450_p9) target bundleno = 274 (0x112), region = 494 }
 0x2c3   : >>> { %792 = vst [vmem:[%s770_s28] sm:$0x3f] %v790_v35 }
 0x2c4   : >>> { %v806_v36 = vld [vmem:[%s794_s15] ss:$0 sm:$0xff]  ;;  %v1497_v37 = vld [vmem:[%s794_s15 + $0x1] sm:$0x1f] }
 0x2c5   : >>> { %1496 = vst [vmem:[%s793_s24 + $0x1] sm:$0x1] %v806_v36  ;;  %v814_v38 = vsel %vm789_vm15, %v1495_v30, %v1497_v37 }
 0x2c6   : >>> { %816 = vst [vmem:[%s794_s15] sm:$0x3f] %v814_v38 }
 0x2c9   : >> { %v364_v39 = vld [vmem:[%s358_s27] sm:$0x3f] }
 0x2ca   : >> { %v365_v41 = vsel %vm1359_vm2, %v364_v39, 0.0  ;;  %v400_v43 = vld [vmem:[%s394_s22] sm:$0x3f] }
 0x2cb   : >> { %v366_v45 = vmul.f32 %v365_v41, %v365_v41  ;;  %v401_v47 = vsel %vm1359_vm2, %v400_v43, 0.0 }
 0x2cc   : >> { %v383_v40 = vld [vmem:[%s377_s21] sm:$0x3f]  ;;  %v402_v49 = vmul.f32 %v401_v47, %v401_v47 }
 0x2cd   : >> { %v384_v42 = vsel %vm1359_vm2, %v383_v40, 0.0  ;;  %v417_v44 = vld [vmem:[%s411_s29] sm:$0x3f]  ;;  %v370_v52 = vsel %vm369_vm8, 0.0, %v366_v45 }
 0x2ce   : >> { %v385_v46 = vmul.f32 %v384_v42, %v384_v42  ;;  %v418_v48 = vsel %vm1359_vm2, %v417_v44, 0.0 }
 0x2cf   : >> { %v419_v51 = vmul.f32 %v418_v48, %v418_v48 }
 0x2d0   : >> { %v387_v50 = vadd.f32 %v385_v46, %v366_v45  ;;  %v386_v53 = vadd.f32 %v385_v46, %v370_v52 }
 0x2d1   : >> { %v423_v56 = vsel %vm422_vm9, 0.0, %v419_v51 }
 0x2d2   : >> { %v404_v54 = vadd.f32 %v402_v49, %v387_v50  ;;  %v403_v55 = vadd.f32 %v402_v49, %v386_v53 }
 0x2d4   : >> { %v425_v57 = vadd.f32 %v419_v51, %v404_v54  ;;  %v424_v58 = vadd.f32 %v423_v56, %v403_v55 }
 0x2d6   : >> { %426 = vadd.xlane.f32.xlu0 %v425_v57 }
 0x2da   : >> { %434 = vadd.xlane.f32.xlu0 %v424_v58 }
 0x363   : >> { %v427_v59 = vpop.xlane.xlu0 %426 }
 0x364   : >> { %v428_v60 = vrot.slane %v427_v59, 4 }
 0x366   : >> { %v429_v61 = vadd.f32 %v428_v60, %v427_v59 }
 0x367   : >> { %v435_v62 = vpop.xlane.xlu0 %434 }
 0x368   : >> { %v430_v63 = vrot.slane %v429_v61, 2  ;;  %v436_v0 = vrot.slane %v435_v62, 4 }
 0x36a   : >> { %v437_v1 = vadd.f32 %v436_v0, %v435_v62  ;;  %v431_v2 = vadd.f32 %v430_v63, %v429_v61 }
 0x36c   : >> { %v438_v3 = vrot.slane %v437_v1, 2  ;;  %v432_v7 = vrot.slane %v431_v2, 1 }
 0x36e   : >> { %v439_v4 = vadd.f32 %v438_v3, %v437_v1  ;;  %v433_v10 = vadd.f32 %v432_v7, %v431_v2 }
 0x370   : >> { %v440_v8 = vrot.slane %v439_v4, 1 }
 0x372   : >> { %v441_v9 = vadd.f32 %v440_v8, %v439_v4 }
 0x374   : >> { %1524 = vpush %v441_v9 }
 0x375   : >> { %1526 = vpush %v433_v10 }
 0x3a5   : >> { %s1525_s23 = spop %1524 }
 0x3a6   : >> { %s1527_s26 = spop %1526 }
 0x3a7   : >> { %s444_s24 = smul.f32 1e-10, %s1527_s26 }
 0x3a9   : >> { %p445_p11 = scmp.le.f32.partialorder %s1525_s23, %s444_s24 }
 0x3ab   : >> { %p447_p12 = por %p446_p10, %p445_p11 }
 0x3ad   : > { %895 = sbr.rel (!%p447_p12) target bundleno = 273 (0x111), region = 505 }
 0x3b4 PF: > { %s900_s28 = smov [#allocation12]  ;;  %v904_v5 = vmov %v1727_v5  ;;  %v907_v6 = vmov %v1729_v6  ;;  %s920_s15 = smov [#allocation15] }
 0x3b5   : > { %v924_v5 = vmov %v1727_v5  ;;  %v927_v6 = vmov %v1729_v6  ;;  %v908_v11 = vld [vmem:[%s900_s28] sm:$0x3f]  ;;  %vm911_vm10 = vcmp.eq.s32.totalorder %v907_v6, %v904_v5  ;;  %s896_s16 = sand.u32 7, %s1688_s12   ;;  %s2012_s21 = scalar_lea.vmem [#allocation7], %s1725_s18 }
 0x3b6   : > { %vm931_vm11 = vcmp.eq.s32.totalorder %v927_v6, %v924_v5  ;;  %v912_v12 = vsel %vm911_vm10, %v908_v11, 0.0  ;;  %v928_v14 = vld [vmem:[%s920_s15] sm:$0x3f]  ;;  %s897_s11 = scalar_lea.vmem [#allocation4], %s896_s16  ;;  %s899_s27 = scalar_lea.vmem [#allocation6], %s896_s16 }
 0x3b7   : > { %v913_v13 = vrot.slane %v912_v12, 4  ;;  %v932_v15 = vsel %vm931_vm11, %v928_v14, 0.0  ;;  %s901_s11 = smov %s897_s11  ;;  %s921_s27 = smov %s899_s27 }
 0x3b8   : > { %v933_v17 = vrot.slane %v932_v15, 4  ;;  %s979_s22 = sshrl.u32 (%p1702_p3), %s1688_s12, 3 }
 0x3b9   : > { %v914_v16 = vadd.f32 %v913_v13, %v912_v12  ;;  %s1512_s29 = sshll.u32 (%p1702_p3), %s979_s22, 1 }
 0x3ba   : > { %v934_v19 = vadd.f32 %v933_v17, %v932_v15  ;;  %s981_s24 = scalar_lea.vmem (%p1702_p3), %s2003_s4, %s1512_s29 }
 0x3bb   : > { %v915_v18 = vrot.slane %v914_v16, 2 }
 0x3bc   : > { %v935_v21 = vrot.slane %v934_v19, 2 }
 0x3bd   : > { %v916_v20 = vadd.f32 %v915_v18, %v914_v16 }
 0x3be   : > { %v936_v23 = vadd.f32 %v935_v21, %v934_v19 }
 0x3bf   : > { %v917_v22 = vrot.slane %v916_v20, 1 }
 0x3c0   : > { %v937_v5 = vrot.slane %v936_v23, 1 }
 0x3c1   : > { %v918_v24 = vadd.f32 %v917_v22, %v916_v20 }
 0x3c2   : > { %v938_v6 = vadd.f32 %v937_v5, %v936_v23 }
 0x3c3   : > { %919 = vst [vmem:[%s901_s11] sm:$0x1] %v918_v24 }
 0x3c4   : > { %939 = vst [vmem:[%s921_s27] sm:$0x1] %v938_v6 }
 0x3c6   : > { %978 = sbr.rel (!%p1702_p3) target bundleno = 980 (0x3d4), region = 174 }
 0x3ca   : > { %v943_v25 = vld [vmem:[#allocation4] sm:$0x3] }
 0x3cb   : > { %945 = vst [vmem:[%s283_s25] sm:$0x3] %v943_v25  ;;  %v949_v26 = vld [vmem:[#allocation6] sm:$0x3] }
 0x3cc   : > { %951 = vst [vmem:[%s2012_s21] sm:$0x3] %v949_v26 }
 0x3d2   : > { %v997_v27 = vld [vmem:[%s283_s25] sm:$0x3] }
 0x3d3   : > { %998 = vst [vmem:[%s981_s24] sm:$0x3] %v997_v27 }
 0x3d4 PF: > { %1015 = sbr.rel (!%p1702_p3) target bundleno = 988 (0x3dc), region = 208  ;;  %s1016_s28 = sshrl.u32 (%p1702_p3), %s1688_s12, 3 }
 0x3d5   : > { %s2013_s15 = scalar_lea.vmem (%p1702_p3), [#allocation7], %s1725_s18  ;;  %s1513_s16 = sshll.u32 (%p1702_p3), %s1016_s28, 1 }
 0x3d6   : > { %s1018_s25 = scalar_lea.vmem (%p1702_p3), %s2004_s5, %s1513_s16 }
 0x3da   : > { %v1034_v28 = vld [vmem:[%s2013_s15] sm:$0x3] (%p1702_p3) }
 0x3db   : > { %1035 = vst [vmem:[%s1018_s25] sm:$0x3] %v1034_v28 }
 0x3dc PF: > { %s1514_s21 = sshll.u32 %s1688_s12, 3  ;;  %v1079_v29 = vld [vmem:[%s1731_s14] sm:$0xff]  ;;  %v1113_v30 = vld [vmem:[%s1734_s30] sm:$0xff] }
 0x3dd   : > { %v1147_v31 = vld [vmem:[%s1737_s17] sm:$0xff]  ;;  %s1051_s18 = scalar_lea.vmem %s2005_s6, %s1514_s21  ;;  %s1085_s26 = scalar_lea.vmem %s2006_s7, %s1514_s21  ;;  %v1181_v32 = vld [vmem:[%s1740_s20] sm:$0xff] }
 0x3de   : > { %1080 = vst [vmem:[%s1051_s18] sm:$0xff] %v1079_v29  ;;  %1114 = vst [vmem:[%s1085_s26] sm:$0xff] %v1113_v30  ;;  %s1119_s15 = scalar_lea.vmem %s2007_s8, %s1514_s21  ;;  %s1153_s14 = scalar_lea.vmem %s2008_s9, %s1514_s21 }
 0x3df   : > { %1148 = vst [vmem:[%s1119_s15] sm:$0xff] %v1147_v31  ;;  %1182 = vst [vmem:[%s1153_s14] sm:$0xff] %v1181_v32 }
 0x3e0 PF: > { %s2014_s17 = sld [smem:[#allocation25_spill]]  ;;  %p13_p13 = scmp.ge.s32.totalorder %s1691_s13, 4  }
 0x3e1   : > { %s2015_s30 = smov %s1605_s10  ;;  %s2017_s11 = smov %s1691_s13 }
 0x3e2   :  { %15 = sbr.rel (!%p13_p13) target bundleno = 2 (0x2), region = 516 }
 0x3e6   : > { %s2016_s10 = smov %s2014_s17 }

// kernel: custom-call.7
= control target key start
LH: loop header
LB: loop body
LE: loop exit
PB: predicated region body
PF: predicated region fallthrough
CT: control target
= control target key end

     0   :  { %s1704_s30 = smov 0   ;;  %s1706_s10 = smov 0   ;;  %s2031_s0 = inlined_call_operand.vmem [shape: f32[2,4,4], index: 0, kind: input, shape index: {}]   ;;  %s2032_s1 = inlined_call_operand.vmem [shape: f32[2,4,4], index: 1, kind: input, shape index: {}]   ;;  %s2033_s2 = inlined_call_operand.vmem [shape: f32[2,4,4], index: 2, kind: input, shape index: {}]   ;;  %s2034_s3 = inlined_call_operand.vmem [shape: f32[2,4,4], index: 3, kind: input, shape index: {}]   ;;  %s2035_s4 = inlined_call_operand.vmem [shape: f32[2,4], index: 4, kind: output, shape index: {0}]   ;;  %s2036_s5 = inlined_call_operand.vmem [shape: f32[2,4], index: 5, kind: output, shape index: {1}]   ;;  %s2037_s6 = inlined_call_operand.vmem [shape: f32[2,4,4], index: 6, kind: output, shape index: {2}]   ;;  %s2038_s7 = inlined_call_operand.vmem [shape: f32[2,4,4], index: 7, kind: output, shape index: {3}]   ;;  %s2039_s8 = inlined_call_operand.vmem [shape: f32[2,4,4], index: 8, kind: output, shape index: {4}]   ;;  %s2040_s9 = inlined_call_operand.vmem [shape: f32[2,4,4], index: 9, kind: output, shape index: {5}]  }
   0x1   :  { %s1708_s11 = smov 0  }
   0x2 LB: > { %s1720_s12 = sadd.s32 4294967295, %s1641_s11   ;;  %s1723_s13 = sadd.s32 1, %s1641_s11   ;;  %s1641_s11 = sphi %s1708_s11, %s2059_s11   ;;  %s1637_s10 = sphi %s1706_s10, %s2058_s10   ;;  %s1633_s30 = sphi %s1704_s30, %s2057_s30  }
   0x3   : > { %s20_s14 = sshrl.u32 %s1641_s11, 3  ;;  %s21_s15 = sshrl.u32 %s1723_s13, 3 }
   0x4   : > { %s22_s16 = ssub.s32 %s20_s14, %s21_s15  ;;  %s25_s17 = sadd.s32 1, %s1637_s10 }
   0x5   : > { %p23_p0 = scmp.eq.s32.totalorder %s22_s16, 0  ;;  %p35_p1 = scmp.ne.s32.totalorder %s1637_s10, %s1633_s30 }
   0x6   : > { %p36_p2 = scmp.eq.s32.totalorder %s1720_s12, 1  ;;  %p1502_p4 = scmp.ge.s32.totalorder %s1641_s11, 2 }
   0x7   : > { %s1732_s18 = scalar_select %p23_p0, %s1637_s10, %s25_s17  }
   0x8   : > { %p1734_p3 = por %p36_p2, %p35_p1  ;;  %86 = sbr.rel (%p1502_p4) target bundleno = 17 (0x11), region = 16 }
   0x9   : > { %2041 = sst [smem:[#allocation33_spill]] %s1732_s18  ;;  %s88_s20 = sand.u32 (!%p1502_p4), 1, %s1641_s11  }
   0xa   : > { %s1504_s21 = sshll.u32 (!%p1502_p4), %s1641_s11, 2  ;;  %s1503_s22 = sshll.u32 (!%p1502_p4), %s88_s20, 2 }
   0xb   : > { %s92_s25 = scalar_lea.vmem (!%p1502_p4), %s2031_s0, %s1504_s21  ;;  %s90_s26 = scalar_lea.vmem (!%p1502_p4), [#allocation1], %s1503_s22 }
   0xc   : > { %v108_v0 = vld [vmem:[%s92_s25] sm:$0xf] (!%p1502_p4)  ;;  %s129_s29 = scalar_lea.vmem (!%p1502_p4), %s2032_s1, %s1504_s21  ;;  %s166_s16 = scalar_lea.vmem (!%p1502_p4), %s2033_s2, %s1504_s21 }
   0xd   : > { %109 = vst [vmem:[%s90_s26] sm:$0xf] (!%p1502_p4), %v108_v0  ;;  %v145_v1 = vld [vmem:[%s129_s29] sm:$0xf] (!%p1502_p4)  ;;  %s127_s17 = scalar_lea.vmem (!%p1502_p4), [#allocation3], %s1503_s22  ;;  %s203_s23 = scalar_lea.vmem (!%p1502_p4), %s2034_s3, %s1504_s21 }
   0xe   : > { %146 = vst [vmem:[%s127_s17] sm:$0xf] (!%p1502_p4), %v145_v1  ;;  %v182_v2 = vld [vmem:[%s166_s16] sm:$0xf] (!%p1502_p4)  ;;  %s164_s24 = scalar_lea.vmem (!%p1502_p4), [#allocation5], %s1503_s22  ;;  %s201_s25 = scalar_lea.vmem (!%p1502_p4), [#allocation7], %s1503_s22 }
   0xf   : > { %183 = vst [vmem:[%s164_s24] sm:$0xf] %v182_v2  ;;  %v219_v3 = vld [vmem:[%s203_s23] sm:$0xf] }
  0x10   : > { %220 = vst [vmem:[%s201_s25] sm:$0xf] %v219_v3 }
  0x11 PF: > { %p1511_p5 = scmp.ge.s32.totalorder %s1641_s11, 1  ;;  %p236_p6 = scmp.lt.s32.totalorder %s1641_s11, 3 }
  0x13   : > { %p237_p7 = pnand %p1511_p5, %p236_p6 }
  0x15   : > { %240 = sbr.rel (%p237_p7) target bundleno = 999 (0x3e7), region = 140 }
  0x1c   : > { %s259_s26 = sand.u32 1, %s1720_s12   ;;  %s277_s27 = sand.u32 1, %s1633_s30   ;;  %v337_v4 = vlaneseq  ;;  %v1651_v5 = vmov 0.0  }
  0x1d   : > { %s1757_s28 = sshll.u32 %s259_s26, 2  ;;  %s1759_s18 = sshll.u32 %s277_s27, 1  ;;  %332 = vst [vmem:[#allocation12] sm:$0xff] %v1651_v5  ;;  %333 = vst [vmem:[#allocation14] sm:$0xff] %v1651_v5 }
  0x1e   : > { %334 = vst [vmem:[#allocation16] sm:$0xff] %v1651_v5  ;;  %335 = vst [vmem:[#allocation18] sm:$0xff] %v1651_v5  ;;  %v1761_v6 = vand.u32 127, %v337_v4  ;;  %v1763_v7 = vshrl.u32 %v337_v4, 7  ;;  %s261_s11 = scalar_lea.vmem [#allocation1], %s1757_s28  ;;  %s265_s30 = scalar_lea.vmem [#allocation3], %s1757_s28 }
  0x1f   : > { %v304_v8 = vld [vmem:[%s261_s11] sm:$0xf]  ;;  %v308_v9 = vld [vmem:[%s265_s30] sm:$0xf]  ;;  %s269_s21 = scalar_lea.vmem [#allocation5], %s1757_s28  ;;  %s273_s22 = scalar_lea.vmem [#allocation7], %s1757_s28 }
  0x20   : > { %305 = vst [vmem:[#allocation0] sm:$0xf] %v304_v8  ;;  %309 = vst [vmem:[#allocation2] sm:$0xf] %v308_v9  ;;  %v312_v10 = vld [vmem:[%s269_s21] sm:$0xf]  ;;  %v339_v6 = vmov %v1761_v6  ;;  %v342_v7 = vmov %v1763_v7 }
  0x21   : > { %v316_v11 = vld [vmem:[%s273_s22] sm:$0xf]  ;;  %313 = vst [vmem:[#allocation4] sm:$0xf] %v312_v10  ;;  %v352_v6 = vmov %v1761_v6  ;;  %v355_v7 = vmov %v1763_v7  ;;  %s320_s29 = smov [#allocation20]  ;;  %s323_s14 = smov [#allocation21]  ;;  %vm346_vm0 = vcmp.eq.s32.totalorder %v342_v7, %v339_v6 }
  0x22   : > { %317 = vst [vmem:[#allocation6] sm:$0xf] %v316_v11  ;;  %vm359_vm1 = vcmp.eq.s32.totalorder %v355_v7, %v352_v6  ;;  %s336_s15 = smov [#allocation12]  ;;  %s349_s16 = smov [#allocation18]  ;;  %vm1391_vm2 = vcmp.lt.s32.totalorder %v1761_v6, 4  ;;  %v1383_v6 = vmov %v1761_v6  ;;  %v1386_v7 = vmov %v1763_v7 }
  0x23   : > { %s326_s17 = smov [#allocation22]  ;;  %s329_s20 = smov [#allocation23]  ;;  %vm1396_vm3 = vcmp.eq.s32.totalorder %v1386_v7, %v1383_v6  ;;  %v1434_v6 = vmov %v1761_v6  ;;  %v1403_v7 = vmov %v1763_v7 }
  0x24   : > { %v343_v12 = vld [vmem:[%s336_s15] sm:$0xf]  ;;  %s1387_s30 = smov [#allocation20]  ;;  %s1404_s21 = smov [#allocation21]  ;;  %v1400_v6 = vmov %v1761_v6  ;;  %v1437_v7 = vmov %v1763_v7 }
  0x25   : > { %v356_v13 = vld [vmem:[%s349_s16] sm:$0xf]  ;;  %v347_v16 = vsel %vm346_vm0, 1.0, %v343_v12  ;;  %s1421_s22 = smov [#allocation22]  ;;  %v1417_v6 = vmov %v1761_v6  ;;  %v1420_v7 = vmov %v1763_v7  ;;  %vm1447_vm4 = vcmp.eq.s32.totalorder %v1437_v7, %v1434_v6 }
  0x26   : > { %v360_v17 = vsel %vm359_vm1, 1.0, %v356_v13  ;;  %348 = vst [vmem:[%s336_s15] sm:$0xf] %v347_v16 }
  0x27   : > { %v321_v14 = vld [vmem:[#allocation0] sm:$0xff]  ;;  %v324_v15 = vld [vmem:[#allocation2] sm:$0xff]  ;;  %361 = vst [vmem:[%s349_s16] sm:$0xf] %v360_v17 }
  0x28   : > { %322 = vst [vmem:[%s320_s29] sm:$0xff] %v321_v14  ;;  %325 = vst [vmem:[%s323_s14] sm:$0xff] %v324_v15  ;;  %v327_v18 = vld [vmem:[#allocation4] sm:$0xff]  ;;  %s1438_s29 = smov [#allocation23] }
  0x29   : > { %v330_v19 = vld [vmem:[#allocation6] sm:$0xff]  ;;  %328 = vst [vmem:[%s326_s17] sm:$0xff] %v327_v18 }
  0x2a   : > { %331 = vst [vmem:[%s329_s20] sm:$0xff] %v330_v19 }
  0x2f   : > { %v1393_v20 = vld [vmem:[%s1387_s30] sm:$0xf] }
  0x30   : > { %v1410_v21 = vld [vmem:[%s1404_s21] sm:$0xf]  ;;  %v1394_v22 = vsel %vm1391_vm2, %v1393_v20, 0.0 }
  0x31   : > { %v1411_v23 = vsel %vm1391_vm2, %v1410_v21, 0.0  ;;  %v1427_v24 = vld [vmem:[%s1421_s22] sm:$0xf]  ;;  %v1395_v26 = vmul.f32 %v1394_v22, %v1394_v22 }
  0x32   : > { %v1444_v25 = vld [vmem:[%s1438_s29] sm:$0xf]  ;;  %v1412_v27 = vmul.f32 %v1411_v23, %v1411_v23  ;;  %v1428_v28 = vsel %vm1391_vm2, %v1427_v24, 0.0 }
  0x33   : > { %v1445_v29 = vsel %vm1391_vm2, %v1444_v25, 0.0  ;;  %v1429_v30 = vmul.f32 %v1428_v28, %v1428_v28  ;;  %v1397_v33 = vsel %vm1396_vm3, 0.0, %v1395_v26 }
  0x34   : > { %v1414_v31 = vadd.f32 %v1412_v27, %v1395_v26  ;;  %v1446_v32 = vmul.f32 %v1445_v29, %v1445_v29  ;;  %v1413_v34 = vadd.f32 %v1412_v27, %v1397_v33 }
  0x36   : > { %v1431_v35 = vadd.f32 %v1429_v30, %v1414_v31  ;;  %v1430_v36 = vadd.f32 %v1429_v30, %v1413_v34  ;;  %v1448_v37 = vsel %vm1447_vm4, 0.0, %v1446_v32 }
  0x38   : > { %v1450_v38 = vadd.f32 %v1446_v32, %v1431_v35  ;;  %v1449_v39 = vadd.f32 %v1448_v37, %v1430_v36 }
  0x3a   : > { %1451 = vadd.xlane.f32.xlu0 %v1450_v38 }
  0x3e   : > { %1459 = vadd.xlane.f32.xlu0 %v1449_v39 }
  0xc7   : > { %v1452_v40 = vpop.xlane.xlu0 %1451 }
  0xc8   : > { %v1453_v41 = vrot.slane %v1452_v40, 4 }
  0xca   : > { %v1454_v42 = vadd.f32 %v1453_v41, %v1452_v40 }
  0xcb   : > { %v1460_v43 = vpop.xlane.xlu0 %1459 }
  0xcc   : > { %v1455_v44 = vrot.slane %v1454_v42, 2  ;;  %v1461_v45 = vrot.slane %v1460_v43, 4 }
  0xce   : > { %v1462_v46 = vadd.f32 %v1461_v45, %v1460_v43  ;;  %v1456_v47 = vadd.f32 %v1455_v44, %v1454_v42 }
  0xd0   : > { %v1463_v48 = vrot.slane %v1462_v46, 2  ;;  %v1457_v50 = vrot.slane %v1456_v47, 1 }
  0xd2   : > { %v1464_v49 = vadd.f32 %v1463_v48, %v1462_v46  ;;  %v1458_v53 = vadd.f32 %v1457_v50, %v1456_v47 }
  0xd4   : > { %v1465_v51 = vrot.slane %v1464_v49, 1 }
  0xd6   : > { %v1466_v52 = vadd.f32 %v1465_v51, %v1464_v49 }
  0xd8   : > { %1552 = vpush %v1466_v52 }
  0xd9   : > { %1554 = vpush %v1458_v53 }
 0x109   : > { %s1553_s14 = spop %1552 }
 0x10a   : > { %s1555_s15 = spop %1554 }
 0x10b   : > { %s1469_s16 = smul.f32 1e-10, %s1555_s15 }
 0x10d   : > { %p1470_p8 = scmp.le.f32.partialorder %s1553_s14, %s1469_s16 }
 0x10e   : > { %s1797_s17 = smov (!%p1470_p8), 0  }
 0x10f   : > { %1473 = sbr.rel (%p1470_p8) target bundleno = 953 (0x3b9), region = 467 }
 0x116 LB: >> { %s1802_s20 = smov 0   ;;  %s1645_s17 = sphi %s1797_s17, %s2043_s17  }
 0x117 LB: >>> { %s466_s30 = smov [#allocation20]  ;;  %v470_v6 = vmov %v1761_v6  ;;  %v473_v7 = vmov %v1763_v7  ;;  %s486_s21 = smov [#allocation21]  ;;  %vm789_vm14 = vcmp.eq.s32.totalorder %v1763_v7, 0  ;;  %vm801_vm15 = vcmp.eq.s32.totalorder %v1763_v7, 3  ;;  %s1649_s20 = sphi %s1802_s20, %s465_s20  }
 0x118   : >>> { %v490_v6 = vmov %v1761_v6  ;;  %v493_v7 = vmov %v1763_v7  ;;  %v474_v54 = vld [vmem:[%s466_s30] sm:$0xf]  ;;  %vm477_vm5 = vcmp.eq.s32.totalorder %v473_v7, %v470_v6  ;;  %s506_s22 = smov [#allocation23]  ;;  %s467_s29 = smov [#allocation24] }
 0x119   : >>> { %vm497_vm6 = vcmp.eq.s32.totalorder %v493_v7, %v490_v6  ;;  %v510_v6 = vmov %v1761_v6  ;;  %v513_v7 = vmov %v1763_v7  ;;  %v478_v55 = vsel %vm477_vm5, %v474_v54, 0.0  ;;  %v494_v56 = vld [vmem:[%s486_s21] sm:$0xf]  ;;  %s487_s14 = smov [#allocation25]  ;;  %s507_s15 = smov [#allocation26] }
 0x11a   : >>> { %vm517_vm7 = vcmp.eq.s32.totalorder %v513_v7, %v510_v6  ;;  %v479_v57 = vrot.slane %v478_v55, 4  ;;  %v498_v58 = vsel %vm497_vm6, %v494_v56, 0.0  ;;  %v514_v59 = vld [vmem:[%s506_s22] sm:$0xf]  ;;  %s530_s16 = smov [#allocation25]  ;;  %s528_s30 = smov [#allocation24]  ;;  %v579_v6 = vmov %v1761_v6 }
 0x11b   : >>> { %v499_v60 = vrot.slane %v498_v58, 4  ;;  %v518_v61 = vsel %vm517_vm7, %v514_v59, 0.0  ;;  %s532_s21 = smov [#allocation26]  ;;  %s567_s22 = smov [#allocation27]  ;;  %v582_v7 = vmov %v1763_v7  ;;  %v594_v6 = vmov %v1761_v6 }
 0x11c   : >>> { %v480_v62 = vadd.f32 %v479_v57, %v478_v55  ;;  %v519_v63 = vrot.slane %v518_v61, 4  ;;  %v597_v7 = vmov %v1763_v7  ;;  %vm584_vm12 = vcmp.eq.s32.totalorder %v582_v7, %v579_v6  ;;  %s1821_s24 = smov [#allocation22]  ;;  %s1827_s23 = smov [#allocation14] }
 0x11d   : >>> { %v500_v0 = vadd.f32 %v499_v60, %v498_v58  ;;  %vm599_vm13 = vcmp.eq.s32.totalorder %v597_v7, %v594_v6  ;;  %s829_s11 = smov [#allocation31]  ;;  %s1833_s27 = smov [#allocation18]  ;;  %v615_v55 = vld [vmem:[%s1821_s24] sm:$0xf]  ;;  %v692_v6 = vmov %v1761_v6  ;;  %v695_v7 = vmov %v1763_v7 }
 0x11e   : >>> { %v481_v1 = vrot.slane %v480_v62, 2  ;;  %v520_v2 = vadd.f32 %v519_v63, %v518_v61  ;;  %v838_v58 = vld [vmem:[%s1827_s23] sm:$0xf]  ;;  %s607_s26 = smov [#allocation32]  ;;  %s831_s25 = smov [#allocation32]  ;;  %v706_v6 = vmov %v1761_v6  ;;  %v709_v7 = vmov %v1763_v7 }
 0x11f   : >>> { %v501_v3 = vrot.slane %v500_v0, 2  ;;  %v840_v61 = vld [vmem:[%s1833_s27] sm:$0xf]  ;;  %vm699_vm0 = vcmp.eq.s32.totalorder %v695_v7, %v692_v6  ;;  %v665_v6 = vmov %v1761_v6  ;;  %v668_v7 = vmov %v1763_v7  ;;  %s465_s20 = sadd.s32 1, %s1649_s20  }
 0x120   : >>> { %v482_v4 = vadd.f32 %v481_v1, %v480_v62  ;;  %v521_v5 = vrot.slane %v520_v2, 2  ;;  %v679_v6 = vmov %v1761_v6  ;;  %v682_v7 = vmov %v1763_v7  ;;  %p462_p9 = scmp.ge.s32.totalorder %s465_s20, 7  }
 0x121   : >>> { %v502_v8 = vadd.f32 %v501_v3, %v500_v0  ;;  %vm714_vm1 = vcmp.eq.s32.totalorder %v709_v7, %v706_v6  ;;  %vm673_vm3 = vcmp.eq.s32.totalorder %v668_v7, %v665_v6  ;;  %vm686_vm4 = vcmp.eq.s32.totalorder %v682_v7, %v679_v6 }
 0x122   : >>> { %v483_v9 = vrot.slane %v482_v4, 1  ;;  %v522_v10 = vadd.f32 %v521_v5, %v520_v2  ;;  %vm728_vm5 = vcmp.eq.s32.totalorder %v1761_v6, 0  ;;  %vm732_vm6 = vcmp.eq.s32.totalorder %v1761_v6, 1 }
 0x123   : >>> { %v503_v11 = vrot.slane %v502_v8, 1  ;;  %vm745_vm7 = vcmp.eq.s32.totalorder %v1761_v6, 3  ;;  %v366_v6 = vmov (%p462_p9), %v1761_v6  ;;  %v369_v7 = vmov (%p462_p9), %v1763_v7 }
 0x124   : >>> { %v484_v12 = vadd.f32 %v483_v9, %v482_v4  ;;  %v523_v13 = vrot.slane %v522_v10, 1  ;;  %v419_v6 = vmov (%p462_p9), %v1761_v6 }
 0x125   : >>> { %v504_v14 = vadd.f32 %v503_v11, %v502_v8 }
 0x126   : >>> { %485 = vst [vmem:[%s467_s29] sm:$0x1] %v484_v12  ;;  %v524_v15 = vadd.f32 %v523_v13, %v522_v10  ;;  %s569_s29 = smov [#allocation28] }
 0x127   : >>> { %505 = vst [vmem:[%s487_s14] sm:$0x1] %v504_v14  ;;  %s526_s14 = smov [#allocation29] }
 0x128   : >>> { %525 = vst [vmem:[%s507_s15] sm:$0x1] %v524_v15  ;;  %s527_s15 = smov [#allocation30]  ;;  %s571_s14 = smov %s526_s14 }
 0x129   : >>> { %s573_s15 = smov %s527_s15 }
 0x12d   : >>> { %v529_v18 = vld [vmem:[%s528_s30] sm:$0xff]  ;;  %s590_s30 = smov [#allocation30] }
 0x12e   : >>> { %v531_v16 = vld [vmem:[%s530_s16] sm:$0xff]  ;;  %v552_v31 = vand.u32 2147483647, %v529_v18  ;;  %s575_s16 = smov [#allocation29] }
 0x12f   : >>> { %v535_v17 = vmul.f32 2.0, %v531_v16  ;;  %v533_v19 = vld [vmem:[%s532_s21] sm:$0xff]  ;;  %v553_v36 = vand.u32 2147483647, %v531_v16  ;;  %s588_s21 = smov [#allocation31] }
 0x130   : >>> { %v534_v20 = vsub.f32 %v533_v19, %v529_v18  ;;  %v554_v32 = vand.u32 2147483647, %v533_v19 }
 0x131   : >>> { %1603 = vrcp.f32 %v535_v17 }
 0x132   : >>> { %v555_v35 = vmin.f32 %v552_v31, %v554_v32 }
 0x134   : >>> { %v556_v37 = vmul.f32 1.1920929e-08, %v555_v35 }
 0x136   : >>> { %vm557_vm11 = vcmp.le.f32.partialorder %v553_v36, %v556_v37 }
 0x13b   : >>> { %v1604_v21 = vpop.eup %1603 }
 0x13c   : >>> { %v537_v22 = vmul.f32 %v1604_v21, %v534_v20 }
 0x13e   : >>> { %v539_v23 = vmul.f32 %v537_v22, %v537_v22  ;;  %vm538_vm10 = vcmp.ge.f32.partialorder %v537_v22, 0.0 }
 0x140   : >>> { %v540_v24 = vadd.f32 1.0, %v539_v23 }
 0x142   : >>> { %1605 = vrsqrt.f32 %v540_v24  ;;  %vm543_vm8 = vcmp.eq.f32.partialorder %v540_v24, inf  ;;  %v546_v26 = vand.u32 2147483648, %v540_v24  ;;  %vm545_vm9 = vcmp.eq.f32.partialorder %v540_v24, 0.0 }
 0x14c   : >>> { %v1606_v25 = vpop.eup %1605 }
 0x14d   : >>> { %v542_v27 = vmul.f32 %v1606_v25, %v540_v24 }
 0x14f   : >>> { %v544_v28 = vsel %vm543_vm8, %v540_v24, %v542_v27  ;;  %vm381_vm8 = vcmp.eq.s32.totalorder (%p462_p9), %v369_v7, %v366_v6  ;;  %v422_v7 = vmov (%p462_p9), %v1763_v7  ;;  %v385_v6 = vmov (%p462_p9), %v1761_v6 }
 0x150   : >>> { %v547_v29 = vsel %vm545_vm9, %v546_v26, %v544_v28  ;;  %v388_v7 = vmov (%p462_p9), %v1763_v7  ;;  %v402_v6 = vmov (%p462_p9), %v1761_v6  ;;  %vm434_vm9 = vcmp.eq.s32.totalorder (%p462_p9), %v422_v7, %v419_v6 }
 0x151   : >>> { %v548_v30 = vxor.u32 2147483648, %v547_v29  ;;  %v405_v7 = vmov (%p462_p9), %v1763_v7 }
 0x153   : >>> { %v549_v33 = vsel %vm538_vm10, %v547_v29, %v548_v30 }
 0x154   : >>> { %v550_v34 = vadd.f32 %v549_v33, %v537_v22 }
 0x156   : >>> { %1607 = vrcp.f32 %v550_v34 }
 0x160   : >>> { %v1608_v38 = vpop.eup %1607 }
 0x161   : >>> { %v558_v39 = vsel %vm557_vm11, 0.0, %v1608_v38 }
 0x162   : >>> { %v559_v40 = vmul.f32 %v558_v39, %v558_v39  ;;  %v563_v41 = vmul.f32 %v558_v39, %v531_v16 }
 0x164   : >>> { %v560_v42 = vadd.f32 1.0, %v559_v40  ;;  %v564_v43 = vsub.f32 %v529_v18, %v563_v41  ;;  %v566_v44 = vadd.f32 %v563_v41, %v533_v19 }
 0x166   : >>> { %1609 = vrsqrt.f32 %v560_v42  ;;  %568 = vst [vmem:[%s567_s22] sm:$0xff] %v564_v43  ;;  %570 = vst [vmem:[%s569_s29] sm:$0xff] %v566_v44  ;;  %s605_s22 = smov [#allocation31]  ;;  %s1817_s29 = smov [#allocation20] }
 0x167   : >>> { %v613_v53 = vld [vmem:[%s1817_s29] sm:$0xf] }
 0x170   : >>> { %v1610_v45 = vpop.eup %1609 }
 0x171   : >>> { %572 = vst [vmem:[%s571_s14] sm:$0xff] %v1610_v45  ;;  %v562_v46 = vmul.f32 %v1610_v45, %v558_v39  ;;  %s603_s14 = smov [#allocation32] }
 0x173   : >>> { %574 = vst [vmem:[%s573_s15] sm:$0xff] %v562_v46  ;;  %s1819_s15 = smov [#allocation21] }
 0x174   : >>> { %v614_v54 = vld [vmem:[%s1819_s15] sm:$0xf] }
 0x178   : >>> { %v576_v47 = vld [vmem:[%s575_s16] ss:$0 sm:$0xff]  ;;  %s1823_s16 = smov [#allocation23] }
 0x179   : >>> { %v585_v48 = vsel %vm584_vm12, %v576_v47, 0.0  ;;  %v616_v56 = vld [vmem:[%s1823_s16] sm:$0xf] }
 0x17a   : >>> { %586 = vadd.xlane.f32.xlu0 %v585_v48  ;;  %v591_v49 = vld [vmem:[%s590_s30] ss:$0 sm:$0xff]  ;;  %s1825_s30 = smov [#allocation12] }
 0x17b   : >>> { %v600_v50 = vsel %vm599_vm13, %v591_v49, 0.0  ;;  %v837_v57 = vld [vmem:[%s1825_s30] sm:$0xf] }
 0x17e   : >>> { %601 = vadd.xlane.f32.xlu0 %v600_v50 }
 0x207   : >>> { %v587_v51 = vpop.xlane.xlu0 %586 }
 0x208   : >>> { %589 = vst [vmem:[%s588_s21] sm:$0xff] %v587_v51  ;;  %s1829_s21 = smov [#allocation16] }
 0x209   : >>> { %v839_v59 = vld [vmem:[%s1829_s21] sm:$0xf] }
 0x20b   : >>> { %v602_v52 = vpop.xlane.xlu0 %601 }
 0x20c   : >>> { %604 = vst [vmem:[%s603_s14] sm:$0xff] %v602_v52  ;;  %s1853_s14 = smov [#allocation23] }
 0x20f   : >>> { %v606_v60 = vld [vmem:[%s605_s22] sm:$0xff]  ;;  %s1851_s22 = smov [#allocation22] }
 0x210   : >>> { %v830_v62 = vld [vmem:[%s829_s11] sm:$0xff]  ;;  %v617_v63 = vmul.f32 %v613_v53, %v606_v60  ;;  %v620_v0 = vmul.f32 %v614_v54, %v606_v60  ;;  %v624_v1 = vmul.f32 %v615_v55, %v606_v60  ;;  %v627_v2 = vmul.f32 %v616_v56, %v606_v60  ;;  %s1849_s11 = smov [#allocation12] }
 0x211   : >>> { %v841_v3 = vmul.f32 %v837_v57, %v830_v62  ;;  %v844_v4 = vmul.f32 %v838_v58, %v830_v62  ;;  %v848_v5 = vmul.f32 %v839_v59, %v830_v62  ;;  %v851_v8 = vmul.f32 %v840_v61, %v830_v62 }
 0x213   : >>> { %v608_v9 = vld [vmem:[%s607_s26] sm:$0xff]  ;;  %s635_s26 = smov [#allocation30] }
 0x214   : >>> { %v832_v10 = vld [vmem:[%s831_s25] sm:$0xff]  ;;  %v618_v11 = vmul.f32 %v615_v55, %v608_v9  ;;  %v621_v12 = vmul.f32 %v616_v56, %v608_v9  ;;  %v623_v13 = vmul.f32 %v613_v53, %v608_v9  ;;  %v626_v14 = vmul.f32 %v614_v54, %v608_v9  ;;  %s633_s25 = smov [#allocation29] }
 0x215   : >>> { %v842_v15 = vmul.f32 %v839_v59, %v832_v10  ;;  %v845_v16 = vmul.f32 %v840_v61, %v832_v10  ;;  %v847_v17 = vmul.f32 %v837_v57, %v832_v10  ;;  %v850_v18 = vmul.f32 %v838_v58, %v832_v10  ;;  %v634_v27 = vld [vmem:[%s633_s25] ss:$0 sm:$0xff]  ;;  %s662_s25 = smov [#allocation27] }
 0x216   : >>> { %v619_v19 = vsub.f32 %v617_v63, %v618_v11  ;;  %v622_v20 = vsub.f32 %v620_v0, %v621_v12  ;;  %v625_v21 = vadd.f32 %v624_v1, %v623_v13  ;;  %v628_v22 = vadd.f32 %v627_v2, %v626_v14  ;;  %v636_v28 = vld [vmem:[%s635_s26] ss:$0 sm:$0xff]  ;;  %s661_s26 = smov [#allocation20] }
 0x217   : >>> { %v843_v23 = vsub.f32 %v841_v3, %v842_v15  ;;  %v846_v24 = vsub.f32 %v844_v4, %v845_v16  ;;  %v849_v25 = vadd.f32 %v848_v5, %v847_v17  ;;  %v852_v26 = vadd.f32 %v851_v8, %v850_v18  ;;  %v669_v63 = vld [vmem:[%s662_s25] ss:$0 sm:$0xff]  ;;  %s905_s25 = sadd.s32 (%p462_p9), 1, %s1645_s17  }
 0x218   : >>> { %630 = vst [vmem:[%s1819_s15] sm:$0xf] %v622_v20  ;;  %632 = vst [vmem:[%s1823_s16] sm:$0xf] %v628_v22  ;;  %s1855_s15 = smov [#allocation20]  ;;  %s703_s16 = smov [#allocation28] }
 0x219   : >>> { %629 = vst [vmem:[%s1817_s29] sm:$0xf] %v619_v19  ;;  %631 = vst [vmem:[%s1821_s24] sm:$0xf] %v625_v21  ;;  %s1857_s24 = smov [#allocation16]  ;;  %s1865_s29 = smov [#allocation21]  ;;  %v710_v59 = vld [vmem:[%s703_s16] ss:$0 sm:$0xff] }
 0x21a   : >>> { %853 = vst [vmem:[%s1825_s30] sm:$0xf] %v843_v23  ;;  %854 = vst [vmem:[%s1827_s23] sm:$0xf] %v846_v24  ;;  %s1859_s23 = smov [#allocation14]  ;;  %s689_s30 = smov [#allocation22] }
 0x21b   : >>> { %855 = vst [vmem:[%s1829_s21] sm:$0xf] %v849_v25  ;;  %856 = vst [vmem:[%s1833_s27] sm:$0xf] %v852_v26  ;;  %s1863_s27 = smov [#allocation18]  ;;  %s702_s21 = smov [#allocation23] }
 0x21c   : >>> { %s805_s16 = smov [#allocation21]  ;;  %p458_p10 = scmp.ge.s32.totalorder (%p462_p9), %s905_s25, 15 }
 0x21d   : >> { %s2043_s17 = smov (%p462_p9), %s905_s25 }
 0x21f   : >>> { %v644_v30 = vld [vmem:[%s1853_s14] sm:$0xf] }
 0x220   : >>> { %v643_v29 = vld [vmem:[%s1851_s22] sm:$0xf]  ;;  %v652_v36 = vmul.f32 %v644_v30, %v636_v28  ;;  %v655_v42 = vmul.f32 %v644_v30, %v634_v27 }
 0x221   : >>> { %v641_v31 = vld [vmem:[%s1855_s15] sm:$0xf]  ;;  %v651_v35 = vmul.f32 %v643_v29, %v634_v27  ;;  %v654_v37 = vmul.f32 %v643_v29, %v636_v28 }
 0x222   : >>> { %v859_v32 = vld [vmem:[%s1849_s11] ss:$0 sm:$0xff]  ;;  %v1531_v34 = vld [vmem:[%s1849_s11 + $0x3] ss:$0 sm:$0xff]  ;;  %v645_v48 = vmul.f32 %v641_v31, %v634_v27  ;;  %v648_v49 = vmul.f32 %v641_v31, %v636_v28 }
 0x223   : >>> { %v1530_v33 = vld [vmem:[%s1849_s11 - $0x1] sm:$0xe]  ;;  %v1535_v45 = vld [vmem:[%s1859_s23 + $0x3] ss:$0 sm:$0xff]  ;;  %v653_v47 = vsub.f32 %v651_v35, %v652_v36  ;;  %v656_v53 = vadd.f32 %v655_v42, %v654_v37 }
 0x224   : >>> { %v866_v38 = vsel %vm789_vm14, %v859_v32, %v1530_v33  ;;  %v870_v39 = vld [vmem:[%s1857_s24] ss:$0 sm:$0xff]  ;;  %v1533_v40 = vld [vmem:[%s1857_s24 + $0x1] sm:$0x7] }
 0x225   : >>> { %v883_v41 = vld [vmem:[%s1859_s23] ss:$0 sm:$0xff]  ;;  %869 = vst [vmem:[%s1849_s11] sm:$0xf] %v866_v38  ;;  %v878_v43 = vsel %vm801_vm15, %v1531_v34, %v1533_v40  ;;  %v1537_v51 = vld [vmem:[%s1863_s27 + $0x1] sm:$0x7]  ;;  %659 = vst [vmem:[%s1851_s22] sm:$0xf] %v653_v47 }
 0x226   : >>> { %v1534_v44 = vld [vmem:[%s1859_s23 - $0x1] sm:$0xe]  ;;  %1532 = vst [vmem:[%s1849_s11 + $0x1] sm:$0x1] %v870_v39  ;;  %880 = vst [vmem:[%s1857_s24] sm:$0xf] %v878_v43  ;;  %v902_v54 = vsel %vm801_vm15, %v1535_v45, %v1537_v51  ;;  %s676_s11 = smov [#allocation21] }
 0x227   : >>> { %v894_v46 = vld [vmem:[%s1863_s27] ss:$0 sm:$0xff]  ;;  %v890_v50 = vsel %vm789_vm14, %v883_v41, %v1534_v44  ;;  %660 = vst [vmem:[%s1853_s14] sm:$0xf] %v656_v53  ;;  %s1907_s22 = smov [#allocation22]  ;;  %s1652_s14 = smov 1  }
 0x228   : >>> { %v642_v52 = vld [vmem:[%s1865_s29] sm:$0xf]  ;;  %893 = vst [vmem:[%s1859_s23] sm:$0xf] %v890_v50  ;;  %904 = vst [vmem:[%s1863_s27] sm:$0xf] %v902_v54  ;;  %s718_s24 = smov [#allocation21]  ;;  %s1910_s27 = smov [#allocation23] }
 0x229   : >>> { %v646_v55 = vmul.f32 %v642_v52, %v636_v28  ;;  %v649_v56 = vmul.f32 %v642_v52, %v634_v27  ;;  %1536 = vst [vmem:[%s1859_s23 + $0x1] sm:$0x1] %v894_v46  ;;  %s1653_s23 = smov 127  }
 0x22b   : >>> { %v647_v57 = vsub.f32 %v645_v48, %v646_v55  ;;  %v650_v58 = vadd.f32 %v649_v56, %v648_v49 }
 0x22c   : >>> { %v696_v60 = vld [vmem:[%s689_s30] sm:$0xf] }
 0x22d   : >>> { %657 = vst [vmem:[%s1855_s15] sm:$0xf] %v647_v57  ;;  %658 = vst [vmem:[%s1865_s29] sm:$0xf] %v650_v58  ;;  %v700_v61 = vsel %vm699_vm0, 0.0, %v696_v60  ;;  %s717_s15 = smov [#allocation20]  ;;  %s781_s29 = smov [#allocation20] }
 0x22e   : >>> { %v711_v62 = vld [vmem:[%s702_s21] sm:$0xf]  ;;  %701 = vst [vmem:[%s689_s30] sm:$0xf] %v700_v61  ;;  %s782_s30 = smov [#allocation22] }
 0x22f   : >>> { %v715_v0 = vsel %vm714_vm1, %v710_v59, %v711_v62 }
 0x230   : >>> { %716 = vst [vmem:[%s702_s21] sm:$0xf] %v715_v0  ;;  %s806_s21 = smov [#allocation23] }
 0x234   : >>> { %v670_v1 = vld [vmem:[%s661_s26] sm:$0xf] }
 0x235   : >>> { %v683_v2 = vld [vmem:[%s676_s11] sm:$0xf]  ;;  %v674_v3 = vsel %vm673_vm3, %v669_v63, %v670_v1 }
 0x236   : >>> { %v687_v4 = vsel %vm686_vm4, 0.0, %v683_v2  ;;  %675 = vst [vmem:[%s661_s26] sm:$0xf] %v674_v3  ;;  %v755_v5 = vld [vmem:[%s1907_s22] sm:$0xf]  ;;  %s370_s26 = smov (%p462_p9), [#allocation20] }
 0x237   : >>> { %688 = vst [vmem:[%s676_s11] sm:$0xf] %v687_v4  ;;  %756 = vrot.lane.b32.xlu0 %v755_v5, %s1652_s14  ;;  %v751_v11 = vld [vmem:[%s1910_s27] sm:$0xf]  ;;  %s389_s11 = smov (%p462_p9), [#allocation21] }
 0x238   : >>> { %v772_v12 = vld [vmem:[%s1910_s27] sm:$0xf] }
 0x239   : >>> { %v754_v30 = vld [vmem:[%s1907_s22] sm:$0xf] }
 0x23d   : >>> { %v723_v8 = vld [vmem:[%s717_s15] sm:$0xf] }
 0x23e   : >>> { %724 = vrot.lane.b32.xlu1 %v723_v8, %s1652_s14  ;;  %v719_v9 = vld [vmem:[%s718_s24] sm:$0xf] }
 0x23f   : >>> { %v740_v10 = vld [vmem:[%s718_s24] sm:$0xf] }
 0x240   : >>> { %v722_v18 = vld [vmem:[%s717_s15] sm:$0xf] }
 0x242   : >>> { %720 = vrot.lane.b32.xlu1 %v719_v9, %s1652_s14 }
 0x246   : >>> { %741 = vrot.lane.b32.xlu1 %v740_v10, %s1653_s23 }
 0x24a   : >>> { %752 = vrot.lane.b32.xlu1 %v751_v11, %s1652_s14  ;;  %s423_s14 = smov (%p462_p9), [#allocation23] }
 0x24e   : >>> { %773 = vrot.lane.b32.xlu1 %v772_v12, %s1653_s23 }
 0x2a9   : >>> { %v757_v20 = vpop.permute.xlu0 %756 }
 0x2aa   : >>> { %v761_v22 = vsel %vm728_vm5, %v755_v5, %v757_v20 }
 0x2b0   : >>> { %v725_v13 = vpop.permute.xlu1 %724 }
 0x2b1   : >>> { %v729_v14 = vsel %vm728_vm5, %v723_v8, %v725_v13 }
 0x2b4   : >>> { %v721_v15 = vpop.permute.xlu1 %720 }
 0x2b5   : >>> { %v733_v16 = vsel %vm732_vm6, %v721_v15, %v729_v14 }
 0x2b6   : >>> { %v739_v17 = vsel %vm1391_vm2, %v733_v16, 0.0 }
 0x2b7   : >>> { %747 = vst [vmem:[%s717_s15] sm:$0xf] %v739_v17 }
 0x2b8   : >>> { %v742_v19 = vpop.permute.xlu1 %741 }
 0x2b9   : >>> { %v746_v21 = vsel %vm745_vm7, %v722_v18, %v742_v19 }
 0x2ba   : >>> { %748 = vst [vmem:[%s718_s24] sm:$0xf] %v746_v21 }
 0x2bc   : >>> { %v753_v23 = vpop.permute.xlu1 %752 }
 0x2bd   : >>> { %v765_v24 = vsel %vm732_vm6, %v753_v23, %v761_v22 }
 0x2be   : >>> { %v783_v25 = vld [vmem:[%s781_s29] ss:$0 sm:$0xff]  ;;  %v1523_v27 = vld [vmem:[%s781_s29 + $0x3] ss:$0 sm:$0xff]  ;;  %v771_v29 = vsel %vm1391_vm2, %v765_v24, 0.0 }
 0x2bf   : >>> { %v1522_v26 = vld [vmem:[%s781_s29 - $0x1] sm:$0xe]  ;;  %779 = vst [vmem:[%s1907_s22] sm:$0xf] %v771_v29  ;;  %s406_s22 = smov (%p462_p9), [#allocation22] }
 0x2c0   : >>> { %v790_v28 = vsel %vm789_vm14, %v783_v25, %v1522_v26  ;;  %v774_v31 = vpop.permute.xlu1 %773 }
 0x2c1   : >>> { %793 = vst [vmem:[%s781_s29] sm:$0xf] %v790_v28  ;;  %v807_v32 = vld [vmem:[%s805_s16] ss:$0 sm:$0xff]  ;;  %v1527_v34 = vld [vmem:[%s805_s16 + $0x3] ss:$0 sm:$0xff]  ;;  %v778_v35 = vsel %vm745_vm7, %v754_v30, %v774_v31 }
 0x2c2   : >>> { %v1526_v33 = vld [vmem:[%s805_s16 - $0x1] sm:$0xe]  ;;  %780 = vst [vmem:[%s1910_s27] sm:$0xf] %v778_v35 }
 0x2c3   : >>> { %v814_v36 = vsel %vm789_vm14, %v807_v32, %v1526_v33 }
 0x2c4   : >>> { %817 = vst [vmem:[%s805_s16] sm:$0xf] %v814_v36 }
 0x2c6   : >>> { %v794_v37 = vld [vmem:[%s782_s30] ss:$0 sm:$0xff]  ;;  %v1525_v38 = vld [vmem:[%s782_s30 + $0x1] sm:$0x7] }
 0x2c7   : >>> { %1524 = vst [vmem:[%s781_s29 + $0x1] sm:$0x1] %v794_v37  ;;  %v802_v39 = vsel %vm801_vm15, %v1523_v27, %v1525_v38  ;;  %464 = sbr.rel (!%p462_p9) target bundleno = 279 (0x117), region = 462 }
 0x2c8   : >>> { %804 = vst [vmem:[%s782_s30] sm:$0xf] %v802_v39 }
 0x2c9   : >>> { %v818_v40 = vld [vmem:[%s806_s21] ss:$0 sm:$0xff]  ;;  %v1529_v41 = vld [vmem:[%s806_s21 + $0x1] sm:$0x7] }
 0x2ca   : >>> { %1528 = vst [vmem:[%s805_s16 + $0x1] sm:$0x1] %v818_v40  ;;  %v826_v42 = vsel %vm801_vm15, %v1527_v34, %v1529_v41 }
 0x2cb   : >>> { %828 = vst [vmem:[%s806_s21] sm:$0xf] %v826_v42 }
 0x2ce   : >> { %v376_v43 = vld [vmem:[%s370_s26] sm:$0xf] }
 0x2cf   : >> { %v377_v45 = vsel %vm1391_vm2, %v376_v43, 0.0  ;;  %v412_v47 = vld [vmem:[%s406_s22] sm:$0xf] }
 0x2d0   : >> { %v378_v49 = vmul.f32 %v377_v45, %v377_v45  ;;  %v413_v51 = vsel %vm1391_vm2, %v412_v47, 0.0 }
 0x2d1   : >> { %v395_v44 = vld [vmem:[%s389_s11] sm:$0xf]  ;;  %v414_v53 = vmul.f32 %v413_v51, %v413_v51 }
 0x2d2   : >> { %v396_v46 = vsel %vm1391_vm2, %v395_v44, 0.0  ;;  %v429_v48 = vld [vmem:[%s423_s14] sm:$0xf]  ;;  %v382_v56 = vsel %vm381_vm8, 0.0, %v378_v49 }
 0x2d3   : >> { %v397_v50 = vmul.f32 %v396_v46, %v396_v46  ;;  %v430_v52 = vsel %vm1391_vm2, %v429_v48, 0.0 }
 0x2d4   : >> { %v431_v55 = vmul.f32 %v430_v52, %v430_v52 }
 0x2d5   : >> { %v399_v54 = vadd.f32 %v397_v50, %v378_v49  ;;  %v398_v57 = vadd.f32 %v397_v50, %v382_v56 }
 0x2d6   : >> { %v435_v60 = vsel %vm434_vm9, 0.0, %v431_v55 }
 0x2d7   : >> { %v416_v58 = vadd.f32 %v414_v53, %v399_v54  ;;  %v415_v59 = vadd.f32 %v414_v53, %v398_v57 }
 0x2d9   : >> { %v437_v61 = vadd.f32 %v431_v55, %v416_v58  ;;  %v436_v62 = vadd.f32 %v435_v60, %v415_v59 }
 0x2db   : >> { %438 = vadd.xlane.f32.xlu0 %v437_v61 }
 0x2df   : >> { %446 = vadd.xlane.f32.xlu0 %v436_v62 }
 0x368   : >> { %v439_v63 = vpop.xlane.xlu0 %438 }
 0x369   : >> { %v440_v0 = vrot.slane %v439_v63, 4 }
 0x36b   : >> { %v441_v1 = vadd.f32 %v440_v0, %v439_v63 }
 0x36c   : >> { %v447_v2 = vpop.xlane.xlu0 %446 }
 0x36d   : >> { %v442_v3 = vrot.slane %v441_v1, 2  ;;  %v448_v4 = vrot.slane %v447_v2, 4 }
 0x36f   : >> { %v449_v5 = vadd.f32 %v448_v4, %v447_v2  ;;  %v443_v8 = vadd.f32 %v442_v3, %v441_v1 }
 0x371   : >> { %v450_v9 = vrot.slane %v449_v5, 2  ;;  %v444_v11 = vrot.slane %v443_v8, 1 }
 0x373   : >> { %v451_v10 = vadd.f32 %v450_v9, %v449_v5  ;;  %v445_v14 = vadd.f32 %v444_v11, %v443_v8 }
 0x375   : >> { %v452_v12 = vrot.slane %v451_v10, 1 }
 0x377   : >> { %v453_v13 = vadd.f32 %v452_v12, %v451_v10 }
 0x379   : >> { %1556 = vpush %v453_v13 }
 0x37a   : >> { %1558 = vpush %v445_v14 }
 0x3aa   : >> { %s1557_s20 = spop %1556 }
 0x3ab   : >> { %s1559_s15 = spop %1558 }
 0x3ac   : >> { %s456_s24 = smul.f32 1e-10, %s1559_s15 }
 0x3ae   : >> { %p457_p11 = scmp.le.f32.partialorder %s1557_s20, %s456_s24 }
 0x3b0   : >> { %p459_p12 = por %p458_p10, %p457_p11 }
 0x3b2   : > { %907 = sbr.rel (!%p459_p12) target bundleno = 278 (0x116), region = 473 }
 0x3b9 PF: > { %s912_s23 = smov [#allocation20]  ;;  %v916_v6 = vmov %v1761_v6  ;;  %v919_v7 = vmov %v1763_v7  ;;  %v967_v15 = vld [vmem:[#allocation12] sm:$0xf]  ;;  %v973_v16 = vld [vmem:[#allocation14] sm:$0xf]  ;;  %s2044_s17 = scalar_lea.vmem [#allocation13], %s1757_s28 }
 0x3ba   : > { %v936_v6 = vmov %v1761_v6  ;;  %v939_v7 = vmov %v1763_v7  ;;  %v920_v17 = vld [vmem:[%s912_s23] sm:$0xf]  ;;  %vm923_vm10 = vcmp.eq.s32.totalorder %v919_v7, %v916_v6  ;;  %969 = vst [vmem:[%s2044_s17] sm:$0xf] %v967_v15  ;;  %s2045_s27 = scalar_lea.vmem [#allocation15], %s1757_s28  ;;  %v979_v18 = vld [vmem:[#allocation16] sm:$0xf] }
 0x3bb   : > { %vm943_vm11 = vcmp.eq.s32.totalorder %v939_v7, %v936_v6  ;;  %975 = vst [vmem:[%s2045_s27] sm:$0xf] %v973_v16  ;;  %v924_v19 = vsel %vm923_vm10, %v920_v17, 0.0  ;;  %s932_s29 = smov [#allocation23]  ;;  %s2046_s16 = scalar_lea.vmem [#allocation17], %s1757_s28  ;;  %v985_v20 = vld [vmem:[#allocation18] sm:$0xf] }
 0x3bc   : > { %981 = vst [vmem:[%s2046_s16] sm:$0xf] %v979_v18  ;;  %v925_v21 = vrot.slane %v924_v19, 4  ;;  %v940_v22 = vld [vmem:[%s932_s29] sm:$0xf]  ;;  %s2047_s30 = scalar_lea.vmem [#allocation19], %s1757_s28  ;;  %s908_s21 = sand.u32 7, %s1720_s12  }
 0x3bd   : > { %987 = vst [vmem:[%s2047_s30] sm:$0xf] %v985_v20  ;;  %v944_v23 = vsel %vm943_vm11, %v940_v22, 0.0  ;;  %s909_s25 = scalar_lea.vmem [#allocation8], %s908_s21  ;;  %s911_s26 = scalar_lea.vmem [#allocation10], %s908_s21 }
 0x3be   : > { %v926_v24 = vadd.f32 %v925_v21, %v924_v19  ;;  %v945_v25 = vrot.slane %v944_v23, 4  ;;  %s913_s25 = smov %s909_s25  ;;  %s933_s26 = smov %s911_s26 }
 0x3bf   : > { %s2048_s11 = scalar_lea.vmem [#allocation9], %s1759_s18  ;;  %s2049_s22 = scalar_lea.vmem [#allocation11], %s1759_s18 }
 0x3c0   : > { %v927_v26 = vrot.slane %v926_v24, 2  ;;  %v946_v6 = vadd.f32 %v945_v25, %v944_v23  ;;  %s1015_s14 = sshrl.u32 (%p1734_p3), %s1720_s12, 3  ;;  %s2050_s20 = scalar_lea.vmem (%p1734_p3), [#allocation9], %s1759_s18 }
 0x3c1   : > { %s1544_s15 = sshll.u32 (%p1734_p3), %s1015_s14, 1 }
 0x3c2   : > { %v928_v7 = vadd.f32 %v927_v26, %v926_v24  ;;  %v947_v27 = vrot.slane %v946_v6, 2  ;;  %s1017_s17 = scalar_lea.vmem (%p1734_p3), %s2035_s4, %s1544_s15 }
 0x3c4   : > { %v929_v28 = vrot.slane %v928_v7, 1  ;;  %v948_v29 = vadd.f32 %v947_v27, %v946_v6 }
 0x3c6   : > { %v930_v30 = vadd.f32 %v929_v28, %v928_v7  ;;  %v949_v31 = vrot.slane %v948_v29, 1 }
 0x3c8   : > { %931 = vst [vmem:[%s913_s25] sm:$0x1] %v930_v30  ;;  %v950_v32 = vadd.f32 %v949_v31, %v948_v29 }
 0x3ca   : > { %951 = vst [vmem:[%s933_s26] sm:$0x1] %v950_v32 }
 0x3cc   : > { %1014 = sbr.rel (!%p1734_p3) target bundleno = 985 (0x3d9), region = 158 }
 0x3cf   : > { %v955_v33 = vld [vmem:[#allocation8] sm:$0x3] }
 0x3d0   : > { %957 = vst [vmem:[%s2048_s11] sm:$0x3] %v955_v33 }
 0x3d1   : > { %v961_v34 = vld [vmem:[#allocation10] sm:$0x3] }
 0x3d2   : > { %963 = vst [vmem:[%s2049_s22] sm:$0x3] %v961_v34 }
 0x3d7   : > { %v1033_v35 = vld [vmem:[%s2050_s20] sm:$0x3] }
 0x3d8   : > { %1034 = vst [vmem:[%s1017_s17] sm:$0x3] %v1033_v35 }
 0x3d9 PF: > { %1051 = sbr.rel (!%p1734_p3) target bundleno = 993 (0x3e1), region = 192  ;;  %s1052_s27 = sshrl.u32 (%p1734_p3), %s1720_s12, 3 }
 0x3da   : > { %s2051_s29 = scalar_lea.vmem (%p1734_p3), [#allocation11], %s1759_s18  ;;  %s1545_s16 = sshll.u32 (%p1734_p3), %s1052_s27, 1 }
 0x3db   : > { %s1054_s25 = scalar_lea.vmem (%p1734_p3), %s2036_s5, %s1545_s16 }
 0x3df   : > { %v1070_v36 = vld [vmem:[%s2051_s29] sm:$0x3] (%p1734_p3) }
 0x3e0   : > { %1071 = vst [vmem:[%s1054_s25] sm:$0x3] %v1070_v36 }
 0x3e1 PF: > { %s1546_s26 = sshll.u32 %s1720_s12, 2  ;;  %s2052_s19 = scalar_lea.vmem [#allocation13], %s1757_s28 }
 0x3e2   : > { %v1103_v37 = vld [vmem:[%s2052_s19] sm:$0xf]  ;;  %s2053_s11 = scalar_lea.vmem [#allocation15], %s1757_s28  ;;  %s1087_s14 = scalar_lea.vmem %s2037_s6, %s1546_s26 }
 0x3e3   : > { %v1136_v38 = vld [vmem:[%s2053_s11] sm:$0xf]  ;;  %s1120_s24 = scalar_lea.vmem %s2038_s7, %s1546_s26  ;;  %s2054_s23 = scalar_lea.vmem [#allocation17], %s1757_s28  ;;  %1104 = vst [vmem:[%s1087_s14] sm:$0xf] %v1103_v37 }
 0x3e4   : > { %v1169_v39 = vld [vmem:[%s2054_s23] sm:$0xf]  ;;  %s2055_s17 = scalar_lea.vmem [#allocation19], %s1757_s28  ;;  %1137 = vst [vmem:[%s1120_s24] sm:$0xf] %v1136_v38  ;;  %s1153_s29 = scalar_lea.vmem %s2039_s8, %s1546_s26 }
 0x3e5   : > { %v1202_v40 = vld [vmem:[%s2055_s17] sm:$0xf]  ;;  %s1186_s21 = scalar_lea.vmem %s2040_s9, %s1546_s26  ;;  %1170 = vst [vmem:[%s1153_s29] sm:$0xf] %v1169_v39 }
 0x3e6   : > { %1203 = vst [vmem:[%s1186_s21] sm:$0xf] %v1202_v40 }
 0x3e7 PF: > { %s2056_s25 = sld [smem:[#allocation33_spill]]  ;;  %p13_p13 = scmp.ge.s32.totalorder %s1723_s13, 4  }
 0x3e8   : > { %s2057_s30 = smov %s1637_s10  ;;  %s2059_s11 = smov %s1723_s13 }
 0x3e9   :  { %15 = sbr.rel (!%p13_p13) target bundleno = 2 (0x2), region = 484 }
 0x3ed   : > { %s2058_s10 = smov %s2056_s25 }

// kernel: spdnet_forward.4
= control target key start
LH: loop header
LB: loop body
LE: loop exit
PB: predicated region body
PF: predicated region fallthrough
CT: control target
= control target key end

     0   :  { %vm20_vm0 = vcmask 130048   ;;  %vm203_vm1 = vcmask 93184   ;;  %vm201_vm2 = vcmask 97280   ;;  %s411_s1 = inlined_call_operand.vmem [shape: f32[16,12], index: 1, kind: input, shape index: {}]   ;;  %s412_s0 = inlined_call_operand.vmem [shape: f32[32,16], index: 0, kind: input, shape index: {}]   ;;  %s413_s2 = inlined_call_operand.vmem [shape: f32[12,16], index: 2, kind: input, shape index: {}]   ;;  %s414_s3 = inlined_call_operand.vmem [shape: f32[2,12,12], index: 3, kind: output, shape index: {}]  }
   0x1   :  { %v18_v0 = vld [vmem:[%s411_s1] sm:$0xff]  ;;  %v19_v1 = vld [vmem:[%s411_s1 + $0x8] sm:$0xff]  ;;  %v16_v5 = vld [vmem:[%s412_s0 + $0x10] sm:$0xff] }
   0x2   :  { %v14_v2 = vld [vmem:[%s412_s0] sm:$0xff]  ;;  %v335_v3 = vpack.c.bf16 %v19_v1, %v18_v0  ;;  %v15_v4 = vld [vmem:[%s412_s0 + $0x8] sm:$0xff]  ;;  %v17_v6 = vld [vmem:[%s412_s0 + $0x18] sm:$0xff] }
   0x3   :  { %315 = vmatprep.mubr.msk.f32.mxu0 %vm20_vm0, %v14_v2  ;;  %v118_v7 = vld [vmem:[%s413_s2] sm:$0xff]  ;;  %v119_v13 = vld [vmem:[%s413_s2 + $0x8] sm:$0xf] }
   0x4   :  { %336 = vmatprep.subr.bf16.mxu0 %v335_v3  ;;  %325 = vmatprep.mubr.msk.f32.mxu1 %vm20_vm0, %v118_v7 }
   0x5   :  { %338 = vmatpush3.bf16.msra.mxu0 %v335_v3 }
   0x8   :  { %316 = vmatmul.mubr.msk.f32.vlgmr.msra.gmra.mrb[0].mxu0 %vm20_vm0, %v15_v4 }
   0x9   :  { %318 = vmatprep.mubr.msk.f32.mxu0 %vm20_vm0, %v16_v5 }
   0xc   :  { %319 = vmatmul.mubr.msk.f32.gmra.mrb[2].mxu0 %vm20_vm0, %v17_v6 }
  0xdb   :  { %v317_v8 = vpop.f32.mrb[0].mxu0 }
  0xdc   :  { %v99_v9 = vpop.f32.mrb[1].mxu0 }
  0xdd   :  { %v339_v10 = vpack.c.bf16 %v317_v8, %v99_v9 }
  0xdf   :  { %v320_v11 = vpop.f32.mrb[2].mxu0  ;;  %340 = vmatprep.subr.bf16.mxu1 %v339_v10 }
  0xe0   :  { %v109_v12 = vpop.f32.mrb[3].mxu0  ;;  %342 = vmatpush3.bf16.msra.mxu1 %v339_v10 }
  0xe1   :  { %v343_v14 = vpack.c.bf16 %v320_v11, %v109_v12 }
  0xe3   :  { %326 = vmatmul.mubr.msk.f32.vlgmr.msra.gmra.mrb[0].mxu1 %vm20_vm0, %v119_v13  ;;  %344 = vmatprep.subr.bf16.mxu1 %v343_v14 }
  0xe4   :  { %346 = vmatpush3.bf16.msra.mxu1 %v343_v14  ;;  %332 = vmatprep.mubr.msk.f32.mxu1 %vm20_vm0, %v118_v7 }
  0xe7   :  { %333 = vmatmul.mubr.msk.f32.vlgmr.msra.gmra.mrb[2].mxu1 %vm20_vm0, %v119_v13 }
 0x1b6   :  { %v327_v15 = vpop.f32.mrb[0].mxu1 }
 0x1b7   :  { %204 = vst.msk [vmem:[%s414_s3 + $0x8] sm:$0xf] %vm203_vm1, %v327_v15  ;;  %v192_v16 = vpop.f32.mrb[1].mxu1 }
 0x1b8   :  { %202 = vst.msk [vmem:[%s414_s3] sm:$0xff] %vm201_vm2, %v192_v16 }
 0x1ba   :  { %v334_v17 = vpop.f32.mrb[2].mxu1 }
 0x1bb   :  { %296 = vst.msk [vmem:[%s414_s3 + $0x18] sm:$0xf] %vm203_vm1, %v334_v17  ;;  %v271_v18 = vpop.f32.mrb[3].mxu1 }
 0x1bc   :  { %295 = vst.msk [vmem:[%s414_s3 + $0x10] sm:$0xff] %vm201_vm2, %v271_v18 }

// kernel: custom-call.8
= control target key start
LH: loop header
LB: loop body
LE: loop exit
PB: predicated region body
PF: predicated region fallthrough
CT: control target
= control target key end

     0   :  { %s1704_s30 = smov 0   ;;  %s1706_s10 = smov 0   ;;  %s2031_s0 = inlined_call_operand.vmem [shape: f32[2,3,3], index: 0, kind: input, shape index: {}]   ;;  %s2032_s1 = inlined_call_operand.vmem [shape: f32[2,3,3], index: 1, kind: input, shape index: {}]   ;;  %s2033_s2 = inlined_call_operand.vmem [shape: f32[2,3,3], index: 2, kind: input, shape index: {}]   ;;  %s2034_s3 = inlined_call_operand.vmem [shape: f32[2,3,3], index: 3, kind: input, shape index: {}]   ;;  %s2035_s4 = inlined_call_operand.vmem [shape: f32[2,3], index: 4, kind: output, shape index: {0}]   ;;  %s2036_s5 = inlined_call_operand.vmem [shape: f32[2,3], index: 5, kind: output, shape index: {1}]   ;;  %s2037_s6 = inlined_call_operand.vmem [shape: f32[2,3,3], index: 6, kind: output, shape index: {2}]   ;;  %s2038_s7 = inlined_call_operand.vmem [shape: f32[2,3,3], index: 7, kind: output, shape index: {3}]   ;;  %s2039_s8 = inlined_call_operand.vmem [shape: f32[2,3,3], index: 8, kind: output, shape index: {4}]   ;;  %s2040_s9 = inlined_call_operand.vmem [shape: f32[2,3,3], index: 9, kind: output, shape index: {5}]  }
   0x1   :  { %s1708_s11 = smov 0  }
   0x2 LB: > { %s1720_s12 = sadd.s32 4294967295, %s1641_s11   ;;  %s1723_s13 = sadd.s32 1, %s1641_s11   ;;  %s1641_s11 = sphi %s1708_s11, %s2059_s11   ;;  %s1637_s10 = sphi %s1706_s10, %s2058_s10   ;;  %s1633_s30 = sphi %s1704_s30, %s2057_s30  }
   0x3   : > { %s20_s14 = sshrl.u32 %s1641_s11, 3  ;;  %s21_s15 = sshrl.u32 %s1723_s13, 3 }
   0x4   : > { %s22_s16 = ssub.s32 %s20_s14, %s21_s15  ;;  %s25_s17 = sadd.s32 1, %s1637_s10 }
   0x5   : > { %p23_p0 = scmp.eq.s32.totalorder %s22_s16, 0  ;;  %p35_p1 = scmp.ne.s32.totalorder %s1637_s10, %s1633_s30 }
   0x6   : > { %p36_p2 = scmp.eq.s32.totalorder %s1720_s12, 1  ;;  %p1502_p4 = scmp.ge.s32.totalorder %s1641_s11, 2 }
   0x7   : > { %s1732_s18 = scalar_select %p23_p0, %s1637_s10, %s25_s17  }
   0x8   : > { %p1734_p3 = por %p36_p2, %p35_p1  ;;  %86 = sbr.rel (%p1502_p4) target bundleno = 17 (0x11), region = 16 }
   0x9   : > { %2041 = sst [smem:[#allocation33_spill]] %s1732_s18  ;;  %s88_s20 = sand.u32 (!%p1502_p4), 1, %s1641_s11  }
   0xa   : > { %s1504_s21 = sshll.u32 (!%p1502_p4), %s1641_s11, 2  ;;  %s1503_s22 = sshll.u32 (!%p1502_p4), %s88_s20, 2 }
   0xb   : > { %s92_s25 = scalar_lea.vmem (!%p1502_p4), %s2031_s0, %s1504_s21  ;;  %s90_s26 = scalar_lea.vmem (!%p1502_p4), [#allocation1], %s1503_s22 }
   0xc   : > { %v108_v0 = vld [vmem:[%s92_s25] sm:$0xf] (!%p1502_p4)  ;;  %s129_s29 = scalar_lea.vmem (!%p1502_p4), %s2032_s1, %s1504_s21  ;;  %s166_s16 = scalar_lea.vmem (!%p1502_p4), %s2033_s2, %s1504_s21 }
   0xd   : > { %109 = vst [vmem:[%s90_s26] sm:$0xf] (!%p1502_p4), %v108_v0  ;;  %v145_v1 = vld [vmem:[%s129_s29] sm:$0xf] (!%p1502_p4)  ;;  %s127_s17 = scalar_lea.vmem (!%p1502_p4), [#allocation3], %s1503_s22  ;;  %s203_s23 = scalar_lea.vmem (!%p1502_p4), %s2034_s3, %s1504_s21 }
   0xe   : > { %146 = vst [vmem:[%s127_s17] sm:$0xf] (!%p1502_p4), %v145_v1  ;;  %v182_v2 = vld [vmem:[%s166_s16] sm:$0xf] (!%p1502_p4)  ;;  %s164_s24 = scalar_lea.vmem (!%p1502_p4), [#allocation5], %s1503_s22  ;;  %s201_s25 = scalar_lea.vmem (!%p1502_p4), [#allocation7], %s1503_s22 }
   0xf   : > { %183 = vst [vmem:[%s164_s24] sm:$0xf] %v182_v2  ;;  %v219_v3 = vld [vmem:[%s203_s23] sm:$0xf] }
  0x10   : > { %220 = vst [vmem:[%s201_s25] sm:$0xf] %v219_v3 }
  0x11 PF: > { %p1511_p5 = scmp.ge.s32.totalorder %s1641_s11, 1  ;;  %p236_p6 = scmp.lt.s32.totalorder %s1641_s11, 3 }
  0x13   : > { %p237_p7 = pnand %p1511_p5, %p236_p6 }
  0x15   : > { %240 = sbr.rel (%p237_p7) target bundleno = 999 (0x3e7), region = 140 }
  0x1c   : > { %s259_s26 = sand.u32 1, %s1720_s12   ;;  %s277_s27 = sand.u32 1, %s1633_s30   ;;  %v337_v4 = vlaneseq  ;;  %v1651_v5 = vmov 0.0  }
  0x1d   : > { %s1757_s28 = sshll.u32 %s259_s26, 2  ;;  %s1759_s18 = sshll.u32 %s277_s27, 1  ;;  %332 = vst [vmem:[#allocation12] sm:$0xff] %v1651_v5  ;;  %333 = vst [vmem:[#allocation14] sm:$0xff] %v1651_v5 }
  0x1e   : > { %334 = vst [vmem:[#allocation16] sm:$0xff] %v1651_v5  ;;  %335 = vst [vmem:[#allocation18] sm:$0xff] %v1651_v5  ;;  %v1761_v6 = vand.u32 127, %v337_v4  ;;  %v1763_v7 = vshrl.u32 %v337_v4, 7  ;;  %s261_s11 = scalar_lea.vmem [#allocation1], %s1757_s28  ;;  %s265_s30 = scalar_lea.vmem [#allocation3], %s1757_s28 }
  0x1f   : > { %v304_v8 = vld [vmem:[%s261_s11] sm:$0xf]  ;;  %v308_v9 = vld [vmem:[%s265_s30] sm:$0xf]  ;;  %s269_s21 = scalar_lea.vmem [#allocation5], %s1757_s28  ;;  %s273_s22 = scalar_lea.vmem [#allocation7], %s1757_s28 }
  0x20   : > { %305 = vst [vmem:[#allocation0] sm:$0xf] %v304_v8  ;;  %309 = vst [vmem:[#allocation2] sm:$0xf] %v308_v9  ;;  %v312_v10 = vld [vmem:[%s269_s21] sm:$0xf]  ;;  %v339_v6 = vmov %v1761_v6  ;;  %v342_v7 = vmov %v1763_v7 }
  0x21   : > { %v316_v11 = vld [vmem:[%s273_s22] sm:$0xf]  ;;  %313 = vst [vmem:[#allocation4] sm:$0xf] %v312_v10  ;;  %v352_v6 = vmov %v1761_v6  ;;  %v355_v7 = vmov %v1763_v7  ;;  %s320_s29 = smov [#allocation20]  ;;  %s323_s14 = smov [#allocation21]  ;;  %vm346_vm0 = vcmp.eq.s32.totalorder %v342_v7, %v339_v6 }
  0x22   : > { %317 = vst [vmem:[#allocation6] sm:$0xf] %v316_v11  ;;  %vm359_vm1 = vcmp.eq.s32.totalorder %v355_v7, %v352_v6  ;;  %s336_s15 = smov [#allocation12]  ;;  %s349_s16 = smov [#allocation18]  ;;  %vm1391_vm2 = vcmp.lt.s32.totalorder %v1761_v6, 3  ;;  %v1383_v6 = vmov %v1761_v6  ;;  %v1386_v7 = vmov %v1763_v7 }
  0x23   : > { %s326_s17 = smov [#allocation22]  ;;  %s329_s20 = smov [#allocation23]  ;;  %vm1396_vm3 = vcmp.eq.s32.totalorder %v1386_v7, %v1383_v6  ;;  %v1434_v6 = vmov %v1761_v6  ;;  %v1403_v7 = vmov %v1763_v7 }
  0x24   : > { %v343_v12 = vld [vmem:[%s336_s15] sm:$0x7]  ;;  %s1387_s30 = smov [#allocation20]  ;;  %s1404_s21 = smov [#allocation21]  ;;  %v1400_v6 = vmov %v1761_v6  ;;  %v1437_v7 = vmov %v1763_v7 }
  0x25   : > { %v356_v13 = vld [vmem:[%s349_s16] sm:$0x7]  ;;  %v347_v16 = vsel %vm346_vm0, 1.0, %v343_v12  ;;  %s1421_s22 = smov [#allocation22]  ;;  %v1417_v6 = vmov %v1761_v6  ;;  %v1420_v7 = vmov %v1763_v7  ;;  %vm1447_vm4 = vcmp.eq.s32.totalorder %v1437_v7, %v1434_v6 }
  0x26   : > { %v360_v17 = vsel %vm359_vm1, 1.0, %v356_v13  ;;  %348 = vst [vmem:[%s336_s15] sm:$0x7] %v347_v16 }
  0x27   : > { %v321_v14 = vld [vmem:[#allocation0] sm:$0xff]  ;;  %v324_v15 = vld [vmem:[#allocation2] sm:$0xff]  ;;  %361 = vst [vmem:[%s349_s16] sm:$0x7] %v360_v17 }
  0x28   : > { %322 = vst [vmem:[%s320_s29] sm:$0xff] %v321_v14  ;;  %325 = vst [vmem:[%s323_s14] sm:$0xff] %v324_v15  ;;  %v327_v18 = vld [vmem:[#allocation4] sm:$0xff]  ;;  %s1438_s29 = smov [#allocation23] }
  0x29   : > { %v330_v19 = vld [vmem:[#allocation6] sm:$0xff]  ;;  %328 = vst [vmem:[%s326_s17] sm:$0xff] %v327_v18 }
  0x2a   : > { %331 = vst [vmem:[%s329_s20] sm:$0xff] %v330_v19 }
  0x2f   : > { %v1393_v20 = vld [vmem:[%s1387_s30] sm:$0x7] }
  0x30   : > { %v1410_v21 = vld [vmem:[%s1404_s21] sm:$0x7]  ;;  %v1394_v22 = vsel %vm1391_vm2, %v1393_v20, 0.0 }
  0x31   : > { %v1411_v23 = vsel %vm1391_vm2, %v1410_v21, 0.0  ;;  %v1427_v24 = vld [vmem:[%s1421_s22] sm:$0x7]  ;;  %v1395_v26 = vmul.f32 %v1394_v22, %v1394_v22 }
  0x32   : > { %v1444_v25 = vld [vmem:[%s1438_s29] sm:$0x7]  ;;  %v1412_v27 = vmul.f32 %v1411_v23, %v1411_v23  ;;  %v1428_v28 = vsel %vm1391_vm2, %v1427_v24, 0.0 }
  0x33   : > { %v1445_v29 = vsel %vm1391_vm2, %v1444_v25, 0.0  ;;  %v1429_v30 = vmul.f32 %v1428_v28, %v1428_v28  ;;  %v1397_v33 = vsel %vm1396_vm3, 0.0, %v1395_v26 }
  0x34   : > { %v1414_v31 = vadd.f32 %v1412_v27, %v1395_v26  ;;  %v1446_v32 = vmul.f32 %v1445_v29, %v1445_v29  ;;  %v1413_v34 = vadd.f32 %v1412_v27, %v1397_v33 }
  0x36   : > { %v1431_v35 = vadd.f32 %v1429_v30, %v1414_v31  ;;  %v1430_v36 = vadd.f32 %v1429_v30, %v1413_v34  ;;  %v1448_v37 = vsel %vm1447_vm4, 0.0, %v1446_v32 }
  0x38   : > { %v1450_v38 = vadd.f32 %v1446_v32, %v1431_v35  ;;  %v1449_v39 = vadd.f32 %v1448_v37, %v1430_v36 }
  0x3a   : > { %1451 = vadd.xlane.f32.xlu0 %v1450_v38 }
  0x3e   : > { %1459 = vadd.xlane.f32.xlu0 %v1449_v39 }
  0xc7   : > { %v1452_v40 = vpop.xlane.xlu0 %1451 }
  0xc8   : > { %v1453_v41 = vrot.slane %v1452_v40, 4 }
  0xca   : > { %v1454_v42 = vadd.f32 %v1453_v41, %v1452_v40 }
  0xcb   : > { %v1460_v43 = vpop.xlane.xlu0 %1459 }
  0xcc   : > { %v1455_v44 = vrot.slane %v1454_v42, 2  ;;  %v1461_v45 = vrot.slane %v1460_v43, 4 }
  0xce   : > { %v1462_v46 = vadd.f32 %v1461_v45, %v1460_v43  ;;  %v1456_v47 = vadd.f32 %v1455_v44, %v1454_v42 }
  0xd0   : > { %v1463_v48 = vrot.slane %v1462_v46, 2  ;;  %v1457_v50 = vrot.slane %v1456_v47, 1 }
  0xd2   : > { %v1464_v49 = vadd.f32 %v1463_v48, %v1462_v46  ;;  %v1458_v53 = vadd.f32 %v1457_v50, %v1456_v47 }
  0xd4   : > { %v1465_v51 = vrot.slane %v1464_v49, 1 }
  0xd6   : > { %v1466_v52 = vadd.f32 %v1465_v51, %v1464_v49 }
  0xd8   : > { %1552 = vpush %v1466_v52 }
  0xd9   : > { %1554 = vpush %v1458_v53 }
 0x109   : > { %s1553_s14 = spop %1552 }
 0x10a   : > { %s1555_s15 = spop %1554 }
 0x10b   : > { %s1469_s16 = smul.f32 1e-10, %s1555_s15 }
 0x10d   : > { %p1470_p8 = scmp.le.f32.partialorder %s1553_s14, %s1469_s16 }
 0x10e   : > { %s1797_s17 = smov (!%p1470_p8), 0  }
 0x10f   : > { %1473 = sbr.rel (%p1470_p8) target bundleno = 953 (0x3b9), region = 467 }
 0x116 LB: >> { %s1802_s20 = smov 0   ;;  %s1645_s17 = sphi %s1797_s17, %s2043_s17  }
 0x117 LB: >>> { %s466_s30 = smov [#allocation20]  ;;  %v470_v6 = vmov %v1761_v6  ;;  %v473_v7 = vmov %v1763_v7  ;;  %s486_s21 = smov [#allocation21]  ;;  %vm789_vm14 = vcmp.eq.s32.totalorder %v1763_v7, 0  ;;  %vm801_vm15 = vcmp.eq.s32.totalorder %v1763_v7, 2  ;;  %s1649_s20 = sphi %s1802_s20, %s465_s20  }
 0x118   : >>> { %v490_v6 = vmov %v1761_v6  ;;  %v493_v7 = vmov %v1763_v7  ;;  %v474_v54 = vld [vmem:[%s466_s30] sm:$0x7]  ;;  %vm477_vm5 = vcmp.eq.s32.totalorder %v473_v7, %v470_v6  ;;  %s506_s22 = smov [#allocation23]  ;;  %s467_s29 = smov [#allocation24] }
 0x119   : >>> { %vm497_vm6 = vcmp.eq.s32.totalorder %v493_v7, %v490_v6  ;;  %v510_v6 = vmov %v1761_v6  ;;  %v513_v7 = vmov %v1763_v7  ;;  %v478_v55 = vsel %vm477_vm5, %v474_v54, 0.0  ;;  %v494_v56 = vld [vmem:[%s486_s21] sm:$0x7]  ;;  %s487_s14 = smov [#allocation25]  ;;  %s507_s15 = smov [#allocation26] }
 0x11a   : >>> { %vm517_vm7 = vcmp.eq.s32.totalorder %v513_v7, %v510_v6  ;;  %v479_v57 = vrot.slane %v478_v55, 4  ;;  %v498_v58 = vsel %vm497_vm6, %v494_v56, 0.0  ;;  %v514_v59 = vld [vmem:[%s506_s22] sm:$0x7]  ;;  %s530_s16 = smov [#allocation25]  ;;  %s528_s30 = smov [#allocation24]  ;;  %v579_v6 = vmov %v1761_v6 }
 0x11b   : >>> { %v499_v60 = vrot.slane %v498_v58, 4  ;;  %v518_v61 = vsel %vm517_vm7, %v514_v59, 0.0  ;;  %s532_s21 = smov [#allocation26]  ;;  %s567_s22 = smov [#allocation27]  ;;  %v582_v7 = vmov %v1763_v7  ;;  %v594_v6 = vmov %v1761_v6 }
 0x11c   : >>> { %v480_v62 = vadd.f32 %v479_v57, %v478_v55  ;;  %v519_v63 = vrot.slane %v518_v61, 4  ;;  %v597_v7 = vmov %v1763_v7  ;;  %vm584_vm12 = vcmp.eq.s32.totalorder %v582_v7, %v579_v6  ;;  %s1821_s24 = smov [#allocation22]  ;;  %s1827_s23 = smov [#allocation14] }
 0x11d   : >>> { %v500_v0 = vadd.f32 %v499_v60, %v498_v58  ;;  %vm599_vm13 = vcmp.eq.s32.totalorder %v597_v7, %v594_v6  ;;  %s829_s11 = smov [#allocation31]  ;;  %s1833_s27 = smov [#allocation18]  ;;  %v615_v55 = vld [vmem:[%s1821_s24] sm:$0x7]  ;;  %v692_v6 = vmov %v1761_v6  ;;  %v695_v7 = vmov %v1763_v7 }
 0x11e   : >>> { %v481_v1 = vrot.slane %v480_v62, 2  ;;  %v520_v2 = vadd.f32 %v519_v63, %v518_v61  ;;  %v838_v58 = vld [vmem:[%s1827_s23] sm:$0x7]  ;;  %s607_s26 = smov [#allocation32]  ;;  %s831_s25 = smov [#allocation32]  ;;  %v706_v6 = vmov %v1761_v6  ;;  %v709_v7 = vmov %v1763_v7 }
 0x11f   : >>> { %v501_v3 = vrot.slane %v500_v0, 2  ;;  %v840_v61 = vld [vmem:[%s1833_s27] sm:$0x7]  ;;  %vm699_vm0 = vcmp.eq.s32.totalorder %v695_v7, %v692_v6  ;;  %v665_v6 = vmov %v1761_v6  ;;  %v668_v7 = vmov %v1763_v7  ;;  %s465_s20 = sadd.s32 1, %s1649_s20  }
 0x120   : >>> { %v482_v4 = vadd.f32 %v481_v1, %v480_v62  ;;  %v521_v5 = vrot.slane %v520_v2, 2  ;;  %v679_v6 = vmov %v1761_v6  ;;  %v682_v7 = vmov %v1763_v7  ;;  %p462_p9 = scmp.ge.s32.totalorder %s465_s20, 5  }
 0x121   : >>> { %v502_v8 = vadd.f32 %v501_v3, %v500_v0  ;;  %vm714_vm1 = vcmp.eq.s32.totalorder %v709_v7, %v706_v6  ;;  %vm673_vm3 = vcmp.eq.s32.totalorder %v668_v7, %v665_v6  ;;  %vm686_vm4 = vcmp.eq.s32.totalorder %v682_v7, %v679_v6 }
 0x122   : >>> { %v483_v9 = vrot.slane %v482_v4, 1  ;;  %v522_v10 = vadd.f32 %v521_v5, %v520_v2  ;;  %vm728_vm5 = vcmp.eq.s32.totalorder %v1761_v6, 0  ;;  %vm732_vm6 = vcmp.eq.s32.totalorder %v1761_v6, 1 }
 0x123   : >>> { %v503_v11 = vrot.slane %v502_v8, 1  ;;  %vm745_vm7 = vcmp.eq.s32.totalorder %v1761_v6, 2  ;;  %v366_v6 = vmov (%p462_p9), %v1761_v6  ;;  %v369_v7 = vmov (%p462_p9), %v1763_v7 }
 0x124   : >>> { %v484_v12 = vadd.f32 %v483_v9, %v482_v4  ;;  %v523_v13 = vrot.slane %v522_v10, 1  ;;  %v419_v6 = vmov (%p462_p9), %v1761_v6 }
 0x125   : >>> { %v504_v14 = vadd.f32 %v503_v11, %v502_v8 }
 0x126   : >>> { %485 = vst [vmem:[%s467_s29] sm:$0x1] %v484_v12  ;;  %v524_v15 = vadd.f32 %v523_v13, %v522_v10  ;;  %s569_s29 = smov [#allocation28] }
 0x127   : >>> { %505 = vst [vmem:[%s487_s14] sm:$0x1] %v504_v14  ;;  %s526_s14 = smov [#allocation29] }
 0x128   : >>> { %525 = vst [vmem:[%s507_s15] sm:$0x1] %v524_v15  ;;  %s527_s15 = smov [#allocation30]  ;;  %s571_s14 = smov %s526_s14 }
 0x129   : >>> { %s573_s15 = smov %s527_s15 }
 0x12d   : >>> { %v529_v18 = vld [vmem:[%s528_s30] sm:$0xff]  ;;  %s590_s30 = smov [#allocation30] }
 0x12e   : >>> { %v531_v16 = vld [vmem:[%s530_s16] sm:$0xff]  ;;  %v552_v31 = vand.u32 2147483647, %v529_v18  ;;  %s575_s16 = smov [#allocation29] }
 0x12f   : >>> { %v535_v17 = vmul.f32 2.0, %v531_v16  ;;  %v533_v19 = vld [vmem:[%s532_s21] sm:$0xff]  ;;  %v553_v36 = vand.u32 2147483647, %v531_v16  ;;  %s588_s21 = smov [#allocation31] }
 0x130   : >>> { %v534_v20 = vsub.f32 %v533_v19, %v529_v18  ;;  %v554_v32 = vand.u32 2147483647, %v533_v19 }
 0x131   : >>> { %1603 = vrcp.f32 %v535_v17 }
 0x132   : >>> { %v555_v35 = vmin.f32 %v552_v31, %v554_v32 }
 0x134   : >>> { %v556_v37 = vmul.f32 1.1920929e-08, %v555_v35 }
 0x136   : >>> { %vm557_vm11 = vcmp.le.f32.partialorder %v553_v36, %v556_v37 }
 0x13b   : >>> { %v1604_v21 = vpop.eup %1603 }
 0x13c   : >>> { %v537_v22 = vmul.f32 %v1604_v21, %v534_v20 }
 0x13e   : >>> { %v539_v23 = vmul.f32 %v537_v22, %v537_v22  ;;  %vm538_vm10 = vcmp.ge.f32.partialorder %v537_v22, 0.0 }
 0x140   : >>> { %v540_v24 = vadd.f32 1.0, %v539_v23 }
 0x142   : >>> { %1605 = vrsqrt.f32 %v540_v24  ;;  %vm543_vm8 = vcmp.eq.f32.partialorder %v540_v24, inf  ;;  %v546_v26 = vand.u32 2147483648, %v540_v24  ;;  %vm545_vm9 = vcmp.eq.f32.partialorder %v540_v24, 0.0 }
 0x14c   : >>> { %v1606_v25 = vpop.eup %1605 }
 0x14d   : >>> { %v542_v27 = vmul.f32 %v1606_v25, %v540_v24 }
 0x14f   : >>> { %v544_v28 = vsel %vm543_vm8, %v540_v24, %v542_v27  ;;  %vm381_vm8 = vcmp.eq.s32.totalorder (%p462_p9), %v369_v7, %v366_v6  ;;  %v422_v7 = vmov (%p462_p9), %v1763_v7  ;;  %v385_v6 = vmov (%p462_p9), %v1761_v6 }
 0x150   : >>> { %v547_v29 = vsel %vm545_vm9, %v546_v26, %v544_v28  ;;  %v388_v7 = vmov (%p462_p9), %v1763_v7  ;;  %v402_v6 = vmov (%p462_p9), %v1761_v6  ;;  %vm434_vm9 = vcmp.eq.s32.totalorder (%p462_p9), %v422_v7, %v419_v6 }
 0x151   : >>> { %v548_v30 = vxor.u32 2147483648, %v547_v29  ;;  %v405_v7 = vmov (%p462_p9), %v1763_v7 }
 0x153   : >>> { %v549_v33 = vsel %vm538_vm10, %v547_v29, %v548_v30 }
 0x154   : >>> { %v550_v34 = vadd.f32 %v549_v33, %v537_v22 }
 0x156   : >>> { %1607 = vrcp.f32 %v550_v34 }
 0x160   : >>> { %v1608_v38 = vpop.eup %1607 }
 0x161   : >>> { %v558_v39 = vsel %vm557_vm11, 0.0, %v1608_v38 }
 0x162   : >>> { %v559_v40 = vmul.f32 %v558_v39, %v558_v39  ;;  %v563_v41 = vmul.f32 %v558_v39, %v531_v16 }
 0x164   : >>> { %v560_v42 = vadd.f32 1.0, %v559_v40  ;;  %v564_v43 = vsub.f32 %v529_v18, %v563_v41  ;;  %v566_v44 = vadd.f32 %v563_v41, %v533_v19 }
 0x166   : >>> { %1609 = vrsqrt.f32 %v560_v42  ;;  %568 = vst [vmem:[%s567_s22] sm:$0xff] %v564_v43  ;;  %570 = vst [vmem:[%s569_s29] sm:$0xff] %v566_v44  ;;  %s605_s22 = smov [#allocation31]  ;;  %s1817_s29 = smov [#allocation20] }
 0x167   : >>> { %v613_v53 = vld [vmem:[%s1817_s29] sm:$0x7] }
 0x170   : >>> { %v1610_v45 = vpop.eup %1609 }
 0x171   : >>> { %572 = vst [vmem:[%s571_s14] sm:$0xff] %v1610_v45  ;;  %v562_v46 = vmul.f32 %v1610_v45, %v558_v39  ;;  %s603_s14 = smov [#allocation32] }
 0x173   : >>> { %574 = vst [vmem:[%s573_s15] sm:$0xff] %v562_v46  ;;  %s1819_s15 = smov [#allocation21] }
 0x174   : >>> { %v614_v54 = vld [vmem:[%s1819_s15] sm:$0x7] }
 0x178   : >>> { %v576_v47 = vld [vmem:[%s575_s16] ss:$0 sm:$0xff]  ;;  %s1823_s16 = smov [#allocation23] }
 0x179   : >>> { %v585_v48 = vsel %vm584_vm12, %v576_v47, 0.0  ;;  %v616_v56 = vld [vmem:[%s1823_s16] sm:$0x7] }
 0x17a   : >>> { %586 = vadd.xlane.f32.xlu0 %v585_v48  ;;  %v591_v49 = vld [vmem:[%s590_s30] ss:$0 sm:$0xff]  ;;  %s1825_s30 = smov [#allocation12] }
 0x17b   : >>> { %v600_v50 = vsel %vm599_vm13, %v591_v49, 0.0  ;;  %v837_v57 = vld [vmem:[%s1825_s30] sm:$0x7] }
 0x17e   : >>> { %601 = vadd.xlane.f32.xlu0 %v600_v50 }
 0x207   : >>> { %v587_v51 = vpop.xlane.xlu0 %586 }
 0x208   : >>> { %589 = vst [vmem:[%s588_s21] sm:$0xff] %v587_v51  ;;  %s1829_s21 = smov [#allocation16] }
 0x209   : >>> { %v839_v59 = vld [vmem:[%s1829_s21] sm:$0x7] }
 0x20b   : >>> { %v602_v52 = vpop.xlane.xlu0 %601 }
 0x20c   : >>> { %604 = vst [vmem:[%s603_s14] sm:$0xff] %v602_v52  ;;  %s1853_s14 = smov [#allocation23] }
 0x20f   : >>> { %v606_v60 = vld [vmem:[%s605_s22] sm:$0xff]  ;;  %s1851_s22 = smov [#allocation22] }
 0x210   : >>> { %v830_v62 = vld [vmem:[%s829_s11] sm:$0xff]  ;;  %v617_v63 = vmul.f32 %v613_v53, %v606_v60  ;;  %v620_v0 = vmul.f32 %v614_v54, %v606_v60  ;;  %v624_v1 = vmul.f32 %v615_v55, %v606_v60  ;;  %v627_v2 = vmul.f32 %v616_v56, %v606_v60  ;;  %s1849_s11 = smov [#allocation12] }
 0x211   : >>> { %v841_v3 = vmul.f32 %v837_v57, %v830_v62  ;;  %v844_v4 = vmul.f32 %v838_v58, %v830_v62  ;;  %v848_v5 = vmul.f32 %v839_v59, %v830_v62  ;;  %v851_v8 = vmul.f32 %v840_v61, %v830_v62 }
 0x213   : >>> { %v608_v9 = vld [vmem:[%s607_s26] sm:$0xff]  ;;  %s635_s26 = smov [#allocation30] }
 0x214   : >>> { %v832_v10 = vld [vmem:[%s831_s25] sm:$0xff]  ;;  %v618_v11 = vmul.f32 %v615_v55, %v608_v9  ;;  %v621_v12 = vmul.f32 %v616_v56, %v608_v9  ;;  %v623_v13 = vmul.f32 %v613_v53, %v608_v9  ;;  %v626_v14 = vmul.f32 %v614_v54, %v608_v9  ;;  %s633_s25 = smov [#allocation29] }
 0x215   : >>> { %v842_v15 = vmul.f32 %v839_v59, %v832_v10  ;;  %v845_v16 = vmul.f32 %v840_v61, %v832_v10  ;;  %v847_v17 = vmul.f32 %v837_v57, %v832_v10  ;;  %v850_v18 = vmul.f32 %v838_v58, %v832_v10  ;;  %v634_v27 = vld [vmem:[%s633_s25] ss:$0 sm:$0xff]  ;;  %s662_s25 = smov [#allocation27] }
 0x216   : >>> { %v619_v19 = vsub.f32 %v617_v63, %v618_v11  ;;  %v622_v20 = vsub.f32 %v620_v0, %v621_v12  ;;  %v625_v21 = vadd.f32 %v624_v1, %v623_v13  ;;  %v628_v22 = vadd.f32 %v627_v2, %v626_v14  ;;  %v636_v28 = vld [vmem:[%s635_s26] ss:$0 sm:$0xff]  ;;  %s661_s26 = smov [#allocation20] }
 0x217   : >>> { %v843_v23 = vsub.f32 %v841_v3, %v842_v15  ;;  %v846_v24 = vsub.f32 %v844_v4, %v845_v16  ;;  %v849_v25 = vadd.f32 %v848_v5, %v847_v17  ;;  %v852_v26 = vadd.f32 %v851_v8, %v850_v18  ;;  %v669_v63 = vld [vmem:[%s662_s25] ss:$0 sm:$0xff]  ;;  %s905_s25 = sadd.s32 (%p462_p9), 1, %s1645_s17  }
 0x218   : >>> { %630 = vst [vmem:[%s1819_s15] sm:$0x7] %v622_v20  ;;  %632 = vst [vmem:[%s1823_s16] sm:$0x7] %v628_v22  ;;  %s1855_s15 = smov [#allocation20]  ;;  %s703_s16 = smov [#allocation28] }
 0x219   : >>> { %629 = vst [vmem:[%s1817_s29] sm:$0x7] %v619_v19  ;;  %631 = vst [vmem:[%s1821_s24] sm:$0x7] %v625_v21  ;;  %s1857_s24 = smov [#allocation16]  ;;  %s1865_s29 = smov [#allocation21]  ;;  %v710_v59 = vld [vmem:[%s703_s16] ss:$0 sm:$0xff] }
 0x21a   : >>> { %853 = vst [vmem:[%s1825_s30] sm:$0x7] %v843_v23  ;;  %854 = vst [vmem:[%s1827_s23] sm:$0x7] %v846_v24  ;;  %s1859_s23 = smov [#allocation14]  ;;  %s689_s30 = smov [#allocation22] }
 0x21b   : >>> { %855 = vst [vmem:[%s1829_s21] sm:$0x7] %v849_v25  ;;  %856 = vst [vmem:[%s1833_s27] sm:$0x7] %v852_v26  ;;  %s1863_s27 = smov [#allocation18]  ;;  %s702_s21 = smov [#allocation23] }
 0x21c   : >>> { %s805_s16 = smov [#allocation21]  ;;  %p458_p10 = scmp.ge.s32.totalorder (%p462_p9), %s905_s25, 15 }
 0x21d   : >> { %s2043_s17 = smov (%p462_p9), %s905_s25 }
 0x21f   : >>> { %v644_v30 = vld [vmem:[%s1853_s14] sm:$0x7] }
 0x220   : >>> { %v643_v29 = vld [vmem:[%s1851_s22] sm:$0x7]  ;;  %v652_v36 = vmul.f32 %v644_v30, %v636_v28  ;;  %v655_v42 = vmul.f32 %v644_v30, %v634_v27 }
 0x221   : >>> { %v641_v31 = vld [vmem:[%s1855_s15] sm:$0x7]  ;;  %v651_v35 = vmul.f32 %v643_v29, %v634_v27  ;;  %v654_v37 = vmul.f32 %v643_v29, %v636_v28 }
 0x222   : >>> { %v859_v32 = vld [vmem:[%s1849_s11] ss:$0 sm:$0xff]  ;;  %v1531_v34 = vld [vmem:[%s1849_s11 + $0x2] ss:$0 sm:$0xff]  ;;  %v645_v48 = vmul.f32 %v641_v31, %v634_v27  ;;  %v648_v49 = vmul.f32 %v641_v31, %v636_v28 }
 0x223   : >>> { %v1530_v33 = vld [vmem:[%s1849_s11 - $0x1] sm:$0x6]  ;;  %v1535_v45 = vld [vmem:[%s1859_s23 + $0x2] ss:$0 sm:$0xff]  ;;  %v653_v47 = vsub.f32 %v651_v35, %v652_v36  ;;  %v656_v53 = vadd.f32 %v655_v42, %v654_v37 }
 0x224   : >>> { %v866_v38 = vsel %vm789_vm14, %v859_v32, %v1530_v33  ;;  %v870_v39 = vld [vmem:[%s1857_s24] ss:$0 sm:$0xff]  ;;  %v1533_v40 = vld [vmem:[%s1857_s24 + $0x1] sm:$0x3] }
 0x225   : >>> { %v883_v41 = vld [vmem:[%s1859_s23] ss:$0 sm:$0xff]  ;;  %869 = vst [vmem:[%s1849_s11] sm:$0x7] %v866_v38  ;;  %v878_v43 = vsel %vm801_vm15, %v1531_v34, %v1533_v40  ;;  %v1537_v51 = vld [vmem:[%s1863_s27 + $0x1] sm:$0x3]  ;;  %659 = vst [vmem:[%s1851_s22] sm:$0x7] %v653_v47 }
 0x226   : >>> { %v1534_v44 = vld [vmem:[%s1859_s23 - $0x1] sm:$0x6]  ;;  %1532 = vst [vmem:[%s1849_s11 + $0x1] sm:$0x1] %v870_v39  ;;  %880 = vst [vmem:[%s1857_s24] sm:$0x7] %v878_v43  ;;  %v902_v54 = vsel %vm801_vm15, %v1535_v45, %v1537_v51  ;;  %s676_s11 = smov [#allocation21] }
 0x227   : >>> { %v894_v46 = vld [vmem:[%s1863_s27] ss:$0 sm:$0xff]  ;;  %v890_v50 = vsel %vm789_vm14, %v883_v41, %v1534_v44  ;;  %660 = vst [vmem:[%s1853_s14] sm:$0x7] %v656_v53  ;;  %s1907_s22 = smov [#allocation22]  ;;  %s1652_s14 = smov 1  }
 0x228   : >>> { %v642_v52 = vld [vmem:[%s1865_s29] sm:$0x7]  ;;  %893 = vst [vmem:[%s1859_s23] sm:$0x7] %v890_v50  ;;  %904 = vst [vmem:[%s1863_s27] sm:$0x7] %v902_v54  ;;  %s718_s24 = smov [#allocation21]  ;;  %s1910_s27 = smov [#allocation23] }
 0x229   : >>> { %v646_v55 = vmul.f32 %v642_v52, %v636_v28  ;;  %v649_v56 = vmul.f32 %v642_v52, %v634_v27  ;;  %1536 = vst [vmem:[%s1859_s23 + $0x1] sm:$0x1] %v894_v46  ;;  %s1653_s23 = smov 127  }
 0x22b   : >>> { %v647_v57 = vsub.f32 %v645_v48, %v646_v55  ;;  %v650_v58 = vadd.f32 %v649_v56, %v648_v49 }
 0x22c   : >>> { %v696_v60 = vld [vmem:[%s689_s30] sm:$0x7] }
 0x22d   : >>> { %657 = vst [vmem:[%s1855_s15] sm:$0x7] %v647_v57  ;;  %658 = vst [vmem:[%s1865_s29] sm:$0x7] %v650_v58  ;;  %v700_v61 = vsel %vm699_vm0, 0.0, %v696_v60  ;;  %s717_s15 = smov [#allocation20]  ;;  %s781_s29 = smov [#allocation20] }
 0x22e   : >>> { %v711_v62 = vld [vmem:[%s702_s21] sm:$0x7]  ;;  %701 = vst [vmem:[%s689_s30] sm:$0x7] %v700_v61  ;;  %s782_s30 = smov [#allocation22] }
 0x22f   : >>> { %v715_v0 = vsel %vm714_vm1, %v710_v59, %v711_v62 }
 0x230   : >>> { %716 = vst [vmem:[%s702_s21] sm:$0x7] %v715_v0  ;;  %s806_s21 = smov [#allocation23] }
 0x234   : >>> { %v670_v1 = vld [vmem:[%s661_s26] sm:$0x7] }
 0x235   : >>> { %v683_v2 = vld [vmem:[%s676_s11] sm:$0x7]  ;;  %v674_v3 = vsel %vm673_vm3, %v669_v63, %v670_v1 }
 0x236   : >>> { %v687_v4 = vsel %vm686_vm4, 0.0, %v683_v2  ;;  %675 = vst [vmem:[%s661_s26] sm:$0x7] %v674_v3  ;;  %v755_v5 = vld [vmem:[%s1907_s22] sm:$0x7]  ;;  %s370_s26 = smov (%p462_p9), [#allocation20] }
 0x237   : >>> { %688 = vst [vmem:[%s676_s11] sm:$0x7] %v687_v4  ;;  %756 = vrot.lane.b32.xlu0 %v755_v5, %s1652_s14  ;;  %v751_v11 = vld [vmem:[%s1910_s27] sm:$0x7]  ;;  %s389_s11 = smov (%p462_p9), [#allocation21] }
 0x238   : >>> { %v772_v12 = vld [vmem:[%s1910_s27] sm:$0x7] }
 0x239   : >>> { %v754_v30 = vld [vmem:[%s1907_s22] sm:$0x7] }
 0x23d   : >>> { %v723_v8 = vld [vmem:[%s717_s15] sm:$0x7] }
 0x23e   : >>> { %724 = vrot.lane.b32.xlu1 %v723_v8, %s1652_s14  ;;  %v719_v9 = vld [vmem:[%s718_s24] sm:$0x7] }
 0x23f   : >>> { %v740_v10 = vld [vmem:[%s718_s24] sm:$0x7] }
 0x240   : >>> { %v722_v18 = vld [vmem:[%s717_s15] sm:$0x7] }
 0x242   : >>> { %720 = vrot.lane.b32.xlu1 %v719_v9, %s1652_s14 }
 0x246   : >>> { %741 = vrot.lane.b32.xlu1 %v740_v10, %s1653_s23 }
 0x24a   : >>> { %752 = vrot.lane.b32.xlu1 %v751_v11, %s1652_s14  ;;  %s423_s14 = smov (%p462_p9), [#allocation23] }
 0x24e   : >>> { %773 = vrot.lane.b32.xlu1 %v772_v12, %s1653_s23 }
 0x2a9   : >>> { %v757_v20 = vpop.permute.xlu0 %756 }
 0x2aa   : >>> { %v761_v22 = vsel %vm728_vm5, %v755_v5, %v757_v20 }
 0x2b0   : >>> { %v725_v13 = vpop.permute.xlu1 %724 }
 0x2b1   : >>> { %v729_v14 = vsel %vm728_vm5, %v723_v8, %v725_v13 }
 0x2b4   : >>> { %v721_v15 = vpop.permute.xlu1 %720 }
 0x2b5   : >>> { %v733_v16 = vsel %vm732_vm6, %v721_v15, %v729_v14 }
 0x2b6   : >>> { %v739_v17 = vsel %vm1391_vm2, %v733_v16, 0.0 }
 0x2b7   : >>> { %747 = vst [vmem:[%s717_s15] sm:$0x7] %v739_v17 }
 0x2b8   : >>> { %v742_v19 = vpop.permute.xlu1 %741 }
 0x2b9   : >>> { %v746_v21 = vsel %vm745_vm7, %v722_v18, %v742_v19 }
 0x2ba   : >>> { %748 = vst [vmem:[%s718_s24] sm:$0x7] %v746_v21 }
 0x2bc   : >>> { %v753_v23 = vpop.permute.xlu1 %752 }
 0x2bd   : >>> { %v765_v24 = vsel %vm732_vm6, %v753_v23, %v761_v22 }
 0x2be   : >>> { %v783_v25 = vld [vmem:[%s781_s29] ss:$0 sm:$0xff]  ;;  %v1523_v27 = vld [vmem:[%s781_s29 + $0x2] ss:$0 sm:$0xff]  ;;  %v771_v29 = vsel %vm1391_vm2, %v765_v24, 0.0 }
 0x2bf   : >>> { %v1522_v26 = vld [vmem:[%s781_s29 - $0x1] sm:$0x6]  ;;  %779 = vst [vmem:[%s1907_s22] sm:$0x7] %v771_v29  ;;  %s406_s22 = smov (%p462_p9), [#allocation22] }
 0x2c0   : >>> { %v790_v28 = vsel %vm789_vm14, %v783_v25, %v1522_v26  ;;  %v774_v31 = vpop.permute.xlu1 %773 }
 0x2c1   : >>> { %793 = vst [vmem:[%s781_s29] sm:$0x7] %v790_v28  ;;  %v807_v32 = vld [vmem:[%s805_s16] ss:$0 sm:$0xff]  ;;  %v1527_v34 = vld [vmem:[%s805_s16 + $0x2] ss:$0 sm:$0xff]  ;;  %v778_v35 = vsel %vm745_vm7, %v754_v30, %v774_v31 }
 0x2c2   : >>> { %v1526_v33 = vld [vmem:[%s805_s16 - $0x1] sm:$0x6]  ;;  %780 = vst [vmem:[%s1910_s27] sm:$0x7] %v778_v35 }
 0x2c3   : >>> { %v814_v36 = vsel %vm789_vm14, %v807_v32, %v1526_v33 }
 0x2c4   : >>> { %817 = vst [vmem:[%s805_s16] sm:$0x7] %v814_v36 }
 0x2c6   : >>> { %v794_v37 = vld [vmem:[%s782_s30] ss:$0 sm:$0xff]  ;;  %v1525_v38 = vld [vmem:[%s782_s30 + $0x1] sm:$0x3] }
 0x2c7   : >>> { %1524 = vst [vmem:[%s781_s29 + $0x1] sm:$0x1] %v794_v37  ;;  %v802_v39 = vsel %vm801_vm15, %v1523_v27, %v1525_v38  ;;  %464 = sbr.rel (!%p462_p9) target bundleno = 279 (0x117), region = 462 }
 0x2c8   : >>> { %804 = vst [vmem:[%s782_s30] sm:$0x7] %v802_v39 }
 0x2c9   : >>> { %v818_v40 = vld [vmem:[%s806_s21] ss:$0 sm:$0xff]  ;;  %v1529_v41 = vld [vmem:[%s806_s21 + $0x1] sm:$0x3] }
 0x2ca   : >>> { %1528 = vst [vmem:[%s805_s16 + $0x1] sm:$0x1] %v818_v40  ;;  %v826_v42 = vsel %vm801_vm15, %v1527_v34, %v1529_v41 }
 0x2cb   : >>> { %828 = vst [vmem:[%s806_s21] sm:$0x7] %v826_v42 }
 0x2ce   : >> { %v376_v43 = vld [vmem:[%s370_s26] sm:$0x7] }
 0x2cf   : >> { %v377_v45 = vsel %vm1391_vm2, %v376_v43, 0.0  ;;  %v412_v47 = vld [vmem:[%s406_s22] sm:$0x7] }
 0x2d0   : >> { %v378_v49 = vmul.f32 %v377_v45, %v377_v45  ;;  %v413_v51 = vsel %vm1391_vm2, %v412_v47, 0.0 }
 0x2d1   : >> { %v395_v44 = vld [vmem:[%s389_s11] sm:$0x7]  ;;  %v414_v53 = vmul.f32 %v413_v51, %v413_v51 }
 0x2d2   : >> { %v396_v46 = vsel %vm1391_vm2, %v395_v44, 0.0  ;;  %v429_v48 = vld [vmem:[%s423_s14] sm:$0x7]  ;;  %v382_v56 = vsel %vm381_vm8, 0.0, %v378_v49 }
 0x2d3   : >> { %v397_v50 = vmul.f32 %v396_v46, %v396_v46  ;;  %v430_v52 = vsel %vm1391_vm2, %v429_v48, 0.0 }
 0x2d4   : >> { %v431_v55 = vmul.f32 %v430_v52, %v430_v52 }
 0x2d5   : >> { %v399_v54 = vadd.f32 %v397_v50, %v378_v49  ;;  %v398_v57 = vadd.f32 %v397_v50, %v382_v56 }
 0x2d6   : >> { %v435_v60 = vsel %vm434_vm9, 0.0, %v431_v55 }
 0x2d7   : >> { %v416_v58 = vadd.f32 %v414_v53, %v399_v54  ;;  %v415_v59 = vadd.f32 %v414_v53, %v398_v57 }
 0x2d9   : >> { %v437_v61 = vadd.f32 %v431_v55, %v416_v58  ;;  %v436_v62 = vadd.f32 %v435_v60, %v415_v59 }
 0x2db   : >> { %438 = vadd.xlane.f32.xlu0 %v437_v61 }
 0x2df   : >> { %446 = vadd.xlane.f32.xlu0 %v436_v62 }
 0x368   : >> { %v439_v63 = vpop.xlane.xlu0 %438 }
 0x369   : >> { %v440_v0 = vrot.slane %v439_v63, 4 }
 0x36b   : >> { %v441_v1 = vadd.f32 %v440_v0, %v439_v63 }
 0x36c   : >> { %v447_v2 = vpop.xlane.xlu0 %446 }
 0x36d   : >> { %v442_v3 = vrot.slane %v441_v1, 2  ;;  %v448_v4 = vrot.slane %v447_v2, 4 }
 0x36f   : >> { %v449_v5 = vadd.f32 %v448_v4, %v447_v2  ;;  %v443_v8 = vadd.f32 %v442_v3, %v441_v1 }
 0x371   : >> { %v450_v9 = vrot.slane %v449_v5, 2  ;;  %v444_v11 = vrot.slane %v443_v8, 1 }
 0x373   : >> { %v451_v10 = vadd.f32 %v450_v9, %v449_v5  ;;  %v445_v14 = vadd.f32 %v444_v11, %v443_v8 }
 0x375   : >> { %v452_v12 = vrot.slane %v451_v10, 1 }
 0x377   : >> { %v453_v13 = vadd.f32 %v452_v12, %v451_v10 }
 0x379   : >> { %1556 = vpush %v453_v13 }
 0x37a   : >> { %1558 = vpush %v445_v14 }
 0x3aa   : >> { %s1557_s20 = spop %1556 }
 0x3ab   : >> { %s1559_s15 = spop %1558 }
 0x3ac   : >> { %s456_s24 = smul.f32 1e-10, %s1559_s15 }
 0x3ae   : >> { %p457_p11 = scmp.le.f32.partialorder %s1557_s20, %s456_s24 }
 0x3b0   : >> { %p459_p12 = por %p458_p10, %p457_p11 }
 0x3b2   : > { %907 = sbr.rel (!%p459_p12) target bundleno = 278 (0x116), region = 473 }
 0x3b9 PF: > { %s912_s23 = smov [#allocation20]  ;;  %v916_v6 = vmov %v1761_v6  ;;  %v919_v7 = vmov %v1763_v7  ;;  %v967_v15 = vld [vmem:[#allocation12] sm:$0xf]  ;;  %v973_v16 = vld [vmem:[#allocation14] sm:$0xf]  ;;  %s2044_s17 = scalar_lea.vmem [#allocation13], %s1757_s28 }
 0x3ba   : > { %v936_v6 = vmov %v1761_v6  ;;  %v939_v7 = vmov %v1763_v7  ;;  %v920_v17 = vld [vmem:[%s912_s23] sm:$0x7]  ;;  %vm923_vm10 = vcmp.eq.s32.totalorder %v919_v7, %v916_v6  ;;  %969 = vst [vmem:[%s2044_s17] sm:$0xf] %v967_v15  ;;  %s2045_s27 = scalar_lea.vmem [#allocation15], %s1757_s28  ;;  %v979_v18 = vld [vmem:[#allocation16] sm:$0xf] }
 0x3bb   : > { %vm943_vm11 = vcmp.eq.s32.totalorder %v939_v7, %v936_v6  ;;  %975 = vst [vmem:[%s2045_s27] sm:$0xf] %v973_v16  ;;  %v924_v19 = vsel %vm923_vm10, %v920_v17, 0.0  ;;  %s932_s29 = smov [#allocation23]  ;;  %s2046_s16 = scalar_lea.vmem [#allocation17], %s1757_s28  ;;  %v985_v20 = vld [vmem:[#allocation18] sm:$0xf] }
 0x3bc   : > { %981 = vst [vmem:[%s2046_s16] sm:$0xf] %v979_v18  ;;  %v925_v21 = vrot.slane %v924_v19, 4  ;;  %v940_v22 = vld [vmem:[%s932_s29] sm:$0x7]  ;;  %s2047_s30 = scalar_lea.vmem [#allocation19], %s1757_s28  ;;  %s908_s21 = sand.u32 7, %s1720_s12  }
 0x3bd   : > { %987 = vst [vmem:[%s2047_s30] sm:$0xf] %v985_v20  ;;  %v944_v23 = vsel %vm943_vm11, %v940_v22, 0.0  ;;  %s909_s25 = scalar_lea.vmem [#allocation8], %s908_s21  ;;  %s911_s26 = scalar_lea.vmem [#allocation10], %s908_s21 }
 0x3be   : > { %v926_v24 = vadd.f32 %v925_v21, %v924_v19  ;;  %v945_v25 = vrot.slane %v944_v23, 4  ;;  %s913_s25 = smov %s909_s25  ;;  %s933_s26 = smov %s911_s26 }
 0x3bf   : > { %s2048_s11 = scalar_lea.vmem [#allocation9], %s1759_s18  ;;  %s2049_s22 = scalar_lea.vmem [#allocation11], %s1759_s18 }
 0x3c0   : > { %v927_v26 = vrot.slane %v926_v24, 2  ;;  %v946_v6 = vadd.f32 %v945_v25, %v944_v23  ;;  %s1015_s14 = sshrl.u32 (%p1734_p3), %s1720_s12, 3  ;;  %s2050_s20 = scalar_lea.vmem (%p1734_p3), [#allocation9], %s1759_s18 }
 0x3c1   : > { %s1544_s15 = sshll.u32 (%p1734_p3), %s1015_s14, 1 }
 0x3c2   : > { %v928_v7 = vadd.f32 %v927_v26, %v926_v24  ;;  %v947_v27 = vrot.slane %v946_v6, 2  ;;  %s1017_s17 = scalar_lea.vmem (%p1734_p3), %s2035_s4, %s1544_s15 }
 0x3c4   : > { %v929_v28 = vrot.slane %v928_v7, 1  ;;  %v948_v29 = vadd.f32 %v947_v27, %v946_v6 }
 0x3c6   : > { %v930_v30 = vadd.f32 %v929_v28, %v928_v7  ;;  %v949_v31 = vrot.slane %v948_v29, 1 }
 0x3c8   : > { %931 = vst [vmem:[%s913_s25] sm:$0x1] %v930_v30  ;;  %v950_v32 = vadd.f32 %v949_v31, %v948_v29 }
 0x3ca   : > { %951 = vst [vmem:[%s933_s26] sm:$0x1] %v950_v32 }
 0x3cc   : > { %1014 = sbr.rel (!%p1734_p3) target bundleno = 985 (0x3d9), region = 158 }
 0x3cf   : > { %v955_v33 = vld [vmem:[#allocation8] sm:$0x3] }
 0x3d0   : > { %957 = vst [vmem:[%s2048_s11] sm:$0x3] %v955_v33 }
 0x3d1   : > { %v961_v34 = vld [vmem:[#allocation10] sm:$0x3] }
 0x3d2   : > { %963 = vst [vmem:[%s2049_s22] sm:$0x3] %v961_v34 }
 0x3d7   : > { %v1033_v35 = vld [vmem:[%s2050_s20] sm:$0x3] }
 0x3d8   : > { %1034 = vst [vmem:[%s1017_s17] sm:$0x3] %v1033_v35 }
 0x3d9 PF: > { %1051 = sbr.rel (!%p1734_p3) target bundleno = 993 (0x3e1), region = 192  ;;  %s1052_s27 = sshrl.u32 (%p1734_p3), %s1720_s12, 3 }
 0x3da   : > { %s2051_s29 = scalar_lea.vmem (%p1734_p3), [#allocation11], %s1759_s18  ;;  %s1545_s16 = sshll.u32 (%p1734_p3), %s1052_s27, 1 }
 0x3db   : > { %s1054_s25 = scalar_lea.vmem (%p1734_p3), %s2036_s5, %s1545_s16 }
 0x3df   : > { %v1070_v36 = vld [vmem:[%s2051_s29] sm:$0x3] (%p1734_p3) }
 0x3e0   : > { %1071 = vst [vmem:[%s1054_s25] sm:$0x3] %v1070_v36 }
 0x3e1 PF: > { %s1546_s26 = sshll.u32 %s1720_s12, 2  ;;  %s2052_s19 = scalar_lea.vmem [#allocation13], %s1757_s28 }
 0x3e2   : > { %v1103_v37 = vld [vmem:[%s2052_s19] sm:$0xf]  ;;  %s2053_s11 = scalar_lea.vmem [#allocation15], %s1757_s28  ;;  %s1087_s14 = scalar_lea.vmem %s2037_s6, %s1546_s26 }
 0x3e3   : > { %v1136_v38 = vld [vmem:[%s2053_s11] sm:$0xf]  ;;  %s1120_s24 = scalar_lea.vmem %s2038_s7, %s1546_s26  ;;  %s2054_s23 = scalar_lea.vmem [#allocation17], %s1757_s28  ;;  %1104 = vst [vmem:[%s1087_s14] sm:$0xf] %v1103_v37 }
 0x3e4   : > { %v1169_v39 = vld [vmem:[%s2054_s23] sm:$0xf]  ;;  %s2055_s17 = scalar_lea.vmem [#allocation19], %s1757_s28  ;;  %1137 = vst [vmem:[%s1120_s24] sm:$0xf] %v1136_v38  ;;  %s1153_s29 = scalar_lea.vmem %s2039_s8, %s1546_s26 }
 0x3e5   : > { %v1202_v40 = vld [vmem:[%s2055_s17] sm:$0xf]  ;;  %s1186_s21 = scalar_lea.vmem %s2040_s9, %s1546_s26  ;;  %1170 = vst [vmem:[%s1153_s29] sm:$0xf] %v1169_v39 }
 0x3e6   : > { %1203 = vst [vmem:[%s1186_s21] sm:$0xf] %v1202_v40 }
 0x3e7 PF: > { %s2056_s25 = sld [smem:[#allocation33_spill]]  ;;  %p13_p13 = scmp.ge.s32.totalorder %s1723_s13, 4  }
 0x3e8   : > { %s2057_s30 = smov %s1637_s10  ;;  %s2059_s11 = smov %s1723_s13 }
 0x3e9   :  { %15 = sbr.rel (!%p13_p13) target bundleno = 2 (0x2), region = 484 }
 0x3ed   : > { %s2058_s10 = smov %s2056_s25 }

// kernel: spdnet_forward.5
= control target key start
LH: loop header
LB: loop body
LE: loop exit
PB: predicated region body
PF: predicated region fallthrough
CT: control target
= control target key end

     0   :  { %vm29_vm0 = vcmask 1043456   ;;  %v438_v0 = vmov 0.0|0.0   ;;  %vm439_vm1 = vmmov 1   ;;  %vm440_vm3 = vmmov 0   ;;  %s516_s2 = inlined_call_operand.vmem [shape: f32[12,8], index: 2, kind: input, shape index: {}]   ;;  %s517_s1 = inlined_call_operand.vmem [shape: f32[24,1], index: 1, kind: input, shape index: {}]   ;;  %s518_s0 = inlined_call_operand.vmem [shape: f32[24,12], index: 0, kind: input, shape index: {}]   ;;  %s519_s3 = inlined_call_operand.vmem [shape: f32[2,8,8], index: 3, kind: output, shape index: {}]  }
   0x1   :  { %419 = vmatprep.subr.bf16.mxu0 %v438_v0  ;;  %v17_v1 = vld [vmem:[%s516_s2] sm:$0xff]  ;;  %v18_v2 = vld [vmem:[%s516_s2 + $0x8] sm:$0xf]  ;;  %vm470_vm2 = vmpackc.low %vm29_vm0, %vm439_vm1  ;;  %423 = vmatprep.subr.bf16.mxu1 %v438_v0  ;;  %v441_v5 = vmov 0.0   ;;  %v442_v6 = vmov 0   ;;  %vm19_vm4 = vcmask 97280  }
   0x2   :  { %v420_v4 = vpack.c.bf16 %v18_v2, %v17_v1  ;;  %396 = vmatprep.mubr.msk.f32.mxu0 %vm440_vm3, %v441_v5  ;;  %436 = vset.pattern.permute.xlu0 %v442_v6  ;;  %v113_v7 = vld [vmem:[%s517_s1] sm:$0xff]  ;;  %v114_v8 = vld [vmem:[%s517_s1 + $0x8] sm:$0xff]  ;;  %v115_v9 = vld [vmem:[%s517_s1 + $0x10] sm:$0xff]  ;;  %vm245_vm5 = vcmask 64512  }
   0x3   :  { %437 = vset.pattern.permute.xlu1 %v442_v6  ;;  %409 = vmatprep.mubr.msk.f32.mxu1 %vm440_vm3, %v441_v5  ;;  %v14_v10 = vld [vmem:[%s518_s0] sm:$0xff]  ;;  %v116_v11 = vmax.f32 %v113_v7, 0.0001  ;;  %v118_v12 = vmax.f32 %v115_v9, 0.0001  ;;  %v15_v14 = vld [vmem:[%s518_s0 + $0x8] sm:$0xff] }
   0x4   :  { %422 = vmatpush3.bf16.msk.msra.mxu0 %vm470_vm2, %v420_v4  ;;  %v117_v13 = vmax.f32 %v114_v8, 0.0001  ;;  %v16_v15 = vld [vmem:[%s518_s0 + $0x10] sm:$0xff] }
   0x5   :  { %121 = vperm.xlu0 %436, %v116_v11   ;;  %131 = vperm.xlu1 %437, %v118_v12  }
   0x7   :  { %397 = vmatmul.mubr.msk.f32.vlgmr.msra.gmra.mrb[0].mxu0 %vm19_vm4, %v14_v10 }
   0x8   :  { %399 = vmatprep.mubr.msk.f32.mxu0 %vm440_vm3, %v441_v5 }
   0x9   :  { %126 = vperm.xlu0 %436, %v117_v13  }
   0xb   :  { %400 = vmatmul.mubr.msk.f32.gmra.mrb[2].mxu0 %vm19_vm4, %v15_v14 }
   0xc   :  { %402 = vmatprep.mubr.msk.f32.mxu0 %vm440_vm3, %v441_v5 }
   0xf   :  { %403 = vmatmul.mubr.msk.f32.gmra.mrb[4].mxu0 %vm19_vm4, %v16_v15 }
  0x84   :  { %v122_v16 = vpop.permute.xlu0 %121  ;;  %v132_v24 = vpop.permute.xlu1 %131 }
  0x88   :  { %v127_v19 = vpop.permute.xlu0 %126 }
  0xda   :  { %v99_v17 = vpop.f32.mrb[0].mxu0 }
  0xdb   :  { %137 = vxpose.xlu1.b32.start [1/2] (short) (narrow) %v99_v17, 8  ;;  %v398_v18 = vpop.f32.mrb[1].mxu0  ;;  %v134_v21 = vmul.f32 %v122_v16, %v99_v17 }
  0xde   :  { %v104_v20 = vpop.f32.mrb[2].mxu0 }
  0xdf   :  { %v135_v22 = vmul.f32 %v127_v19, %v104_v20  ;;  %138 = vxpose.xlu1.b32.end [2/2] (short) (narrow) %v104_v20, 8  ;;  %v401_v23 = vpop.f32.mrb[3].mxu0  ;;  %v249_v27 = vrot.slane %v104_v20, 4 }
  0xe1   :  { %v424_v25 = vpack.c.bf16 %v135_v22, %v134_v21  ;;  %v287_v31 = vrot.slane %v135_v22, 4 }
  0xe2   :  { %v109_v26 = vpop.f32.mrb[4].mxu0 }
  0xe3   :  { %v136_v28 = vmul.f32 %v132_v24, %v109_v26  ;;  %v250_v29 = vrot.slane %v109_v26, 4  ;;  %v404_v30 = vpop.f32.mrb[5].mxu0  ;;  %426 = vmatpush3.bf16.msk.msra.mxu1 %vm470_vm2, %v424_v25 }
  0xe4   :  { %427 = vmatprep.subr.bf16.mxu1 %v438_v0 }
  0xe5   :  { %v288_v32 = vrot.slane %v136_v28, 4  ;;  %v251_v33 = vsel %vm29_vm0, %v249_v27, %v250_v29 }
  0xe6   :  { %254 = vxpose.xlu0.b32.start [1/2] (short) (narrow) %v251_v33, 8 }
  0xe7   :  { %v289_v34 = vsel %vm29_vm0, %v287_v31, %v288_v32 }
  0xe8   :  { %v428_v35 = vpack.c.bf16 %v288_v32, %v289_v34 }
  0xea   :  { %255 = vxpose.xlu0.b32.end [2/2] (short) (narrow) %v250_v29, 8 }
 0x15b   :  { %v153_v36 = vpop.trf.xlu1 }
 0x15c   :  { %410 = vmatmul.mubr.msk.f32.vlgmr.msra.gmra.mrb[0].mxu1 %vm19_vm4, %v153_v36 }
 0x15d   :  { %430 = vmatpush3.bf16.msk.msra.mxu1 %vm470_vm2, %v428_v35  ;;  %416 = vmatprep.mubr.msk.f32.mxu1 %vm440_vm3, %v441_v5 }
 0x166   :  { %v270_v37 = vpop.trf.xlu0 }
 0x167   :  { %417 = vmatmul.mubr.msk.f32.vlgmr.msra.gmra.mrb[2].mxu1 %vm19_vm4, %v270_v37 }
 0x22f   :  { %v241_v38 = vpop.f32.mrb[0].mxu1 }
 0x230   :  { %246 = vst.msk [vmem:[%s519_s3] sm:$0xff] %vm245_vm5, %v241_v38  ;;  %v411_v39 = vpop.f32.mrb[1].mxu1 }
 0x23a   :  { %v362_v40 = vpop.f32.mrb[2].mxu1 }
 0x23b   :  { %380 = vst.msk [vmem:[%s519_s3 + $0x8] sm:$0xff] %vm245_vm5, %v362_v40  ;;  %v418_v41 = vpop.f32.mrb[3].mxu1 }

// kernel: spdnet_forward.6
= control target key start
LH: loop header
LB: loop body
LE: loop exit
PB: predicated region body
PF: predicated region fallthrough
CT: control target
= control target key end

     0   :  { %vm17_vm0 = vcmask 64512   ;;  %v364_v3 = vmov 0   ;;  %v365_v8 = vmov 0.0   ;;  %vm366_vm1 = vmmov 0   ;;  %s412_s2 = inlined_call_operand.vmem [shape: f32[8,6], index: 2, kind: input, shape index: {}]   ;;  %s413_s0 = inlined_call_operand.vmem [shape: f32[16,8], index: 0, kind: input, shape index: {}]   ;;  %s414_s1 = inlined_call_operand.vmem [shape: f32[16,1], index: 1, kind: input, shape index: {}]   ;;  %s415_s3 = inlined_call_operand.vmem [shape: f32[2,6,6], index: 3, kind: output, shape index: {}]  }
   0x1   :  { %v16_v0 = vld [vmem:[%s412_s2] sm:$0xff]  ;;  %v15_v2 = vld [vmem:[%s413_s0 + $0x8] sm:$0xff]  ;;  %363 = vset.pattern.permute.xlu0 %v364_v3  ;;  %350 = vmatprep.subr.mxu1 %v365_v8  ;;  %vm220_vm2 = vcmask 46080  }
   0x2   :  { %v14_v1 = vld [vmem:[%s413_s0] sm:$0xff]  ;;  %345 = vmatprep.subr.mxu0 %v16_v0  ;;  %v100_v5 = vld [vmem:[%s414_s1 + $0x8] sm:$0xff]  ;;  %352 = vmatprep.mubr.msk.f32.mxu1 %vm366_vm1, %v365_v8 }
   0x3   :  { %347 = vmatprep.mubr.msk.f32.mxu0 %vm17_vm0, %v14_v1  ;;  %v99_v4 = vld [vmem:[%s414_s1] sm:$0xff]  ;;  %346 = vmatpush3.msra.mxu0 %v16_v0  ;;  %v102_v7 = vmax.f32 %v100_v5, 0.0001 }
   0x4   :  { %v101_v6 = vmax.f32 %v99_v4, 0.0001  ;;  %348 = vmatmul.mubr.msk.f32.vlgmr.msra.gmra.mrb[0].mxu0 %vm17_vm0, %v15_v2  ;;  %355 = vmatprep.subr.mxu0 %v365_v8 }
   0x5   :  { %357 = vmatprep.mubr.msk.f32.mxu0 %vm366_vm1, %v365_v8 }
   0x6   :  { %105 = vperm.xlu0 %363, %v101_v6  }
   0xa   :  { %110 = vperm.xlu0 %363, %v102_v7  }
  0x85   :  { %v106_v9 = vpop.permute.xlu0 %105 }
  0x89   :  { %v111_v10 = vpop.permute.xlu0 %110 }
  0xd7   :  { %v349_v11 = vpop.f32.mrb[0].mxu0 }
  0xd8   :  { %v114_v12 = vmul.f32 %v349_v11, %v111_v10  ;;  %v90_v13 = vpop.f32.mrb[1].mxu0 }
  0xd9   :  { %115 = vxpose.xlu1.b32.start.end [1/1] (short) (narrow) %v90_v13, 8  ;;  %v113_v14 = vmul.f32 %v106_v9, %v90_v13 }
  0xda   :  { %356 = vmatpush3.msra.mxu0 %v114_v12 }
  0xdb   :  { %351 = vmatpush3.msra.mxu1 %v113_v14 }
  0xdd   :  { %222 = vxpose.xlu1.b32.start.end [1/1] (short) (narrow) %v349_v11, 8 }
 0x159   :  { %v131_v15 = vpop.trf.xlu1 }
 0x15a   :  { %353 = vmatmul.mubr.msk.f32.vlgmr.msra.gmra.mrb[0].mxu1 %vm17_vm0, %v131_v15 }
 0x15d   :  { %v238_v16 = vpop.trf.xlu1 }
 0x15e   :  { %358 = vmatmul.mubr.msk.f32.vlgmr.msra.gmra.mrb[2].mxu0 %vm17_vm0, %v238_v16 }
 0x22d   :  { %v216_v17 = vpop.f32.mrb[0].mxu1 }
 0x22e   :  { %221 = vst.msk [vmem:[%s415_s3] sm:$0x3f] %vm220_vm2, %v216_v17  ;;  %v354_v18 = vpop.f32.mrb[1].mxu1 }
 0x231   :  { %v323_v19 = vpop.f32.mrb[2].mxu0 }
 0x232   :  { %337 = vst.msk [vmem:[%s415_s3 + $0x8] sm:$0x3f] %vm220_vm2, %v323_v19  ;;  %v359_v20 = vpop.f32.mrb[3].mxu0 }

// kernel: spdnet_forward.7
= control target key start
LH: loop header
LB: loop body
LE: loop exit
PB: predicated region body
PF: predicated region fallthrough
CT: control target
= control target key end

     0   :  { %v1378_v3 = vmov 0   ;;  %vm156_vm0 = vcmask 1041408   ;;  %s1515_s0 = inlined_call_operand.vmem [shape: f32[12,6], index: 0, kind: input, shape index: {}]   ;;  %s1516_s1 = inlined_call_operand.vmem [shape: f32[12,1], index: 1, kind: input, shape index: {}]   ;;  %s1517_s2 = inlined_call_operand.vmem [shape: f32[36,7], index: 2, kind: input, shape index: {}]   ;;  %s1518_s3 = inlined_call_operand.hbm [shape: f32[2,7], index: 3, kind: output, shape index: {}]  }
   0x1   :  { %v17_v0 = vld [vmem:[%s1516_s1] sm:$0xff]  ;;  %v18_v2 = vld [vmem:[%s1516_s1 + $0x8] sm:$0xf]  ;;  %1349 = vset.pattern.permute.xlu0 %v1378_v3 }
   0x2   :  { %v15_v1 = vld [vmem:[%s1515_s0] sm:$0xff]  ;;  %v19_v4 = vmax.f32 %v17_v0, 1e-12  ;;  %v20_v6 = vmax.f32 %v18_v2, 1e-12 }
   0x3   :  { %42 = vxpose.xlu1.b32.start.end [1/1] (short) (narrow) %v15_v1, 8  ;;  %v627_v5 = vrot.slane %v15_v1, 6  ;;  %v16_v7 = vld [vmem:[%s1515_s0 + $0x8] sm:$0xf] }
   0x4   :  { %8 = vsyncpa [#allocation3], 0  ;;  %1350 = vlog2.f32 %v19_v4  ;;  %v628_v8 = vrot.slane %v16_v7, 6  ;;  %v1379_v14 = vmov 0.0   ;;  %vm1380_vm1 = vmmov 0   ;;  %v37_v24 = vld [vmem:[%s1517_s2] sm:$0xff] }
   0x5   :  { %1352 = vlog2.f32 %v20_v6  ;;  %1255 = vmatprep.subr.mxu1 %v1379_v14  ;;  %1290 = vmatprep.subr.mxu0 %v1379_v14  ;;  %vm78_vm2 = vcmask 1045504   ;;  %vm74_vm3 = vcmask 48128   ;;  %v38_v25 = vld [vmem:[%s1517_s2 + $0x8] sm:$0xff]  ;;  %v157_v26 = vrot.slane %v37_v24, 6  ;;  %v39_v32 = vld [vmem:[%s1517_s2 + $0x10] sm:$0xff]  ;;  %v40_v43 = vld [vmem:[%s1517_s2 + $0x18] sm:$0xff] }
   0x6   :  { %v629_v9 = vsel %vm156_vm0, %v627_v5, %v628_v8  ;;  %1257 = vmatprep.mubr.msk.f32.mxu1 %vm1380_vm1, %v1379_v14  ;;  %1292 = vmatprep.mubr.msk.f32.mxu0 %vm1380_vm1, %v1379_v14  ;;  %v158_v27 = vrot.slane %v38_v25, 6  ;;  %v311_v33 = vrot.slane %v38_v25, 4  ;;  %v312_v34 = vrot.slane %v39_v32, 4  ;;  %v41_v44 = vld [vmem:[%s1517_s2 + $0x20] sm:$0xf]  ;;  %s1381_s2 = smov [#allocation2]  }
   0x7   :  { %631 = vxpose.xlu1.b32.start.end [1/1] (short) (narrow) %v629_v9, 8  ;;  %vm310_vm4 = vcmask 1043456   ;;  %v390_v40 = vrot.slane %v39_v32, 2  ;;  %v545_v45 = vrot.slane %v40_v43, 6  ;;  %v546_v46 = vrot.slane %v41_v44, 6  ;;  %s1191_s28 = sshll.u32 %s1381_s2, 4  ;;  %s1192_s28 = int_to_ptr.vmem [resolvable:$true] %s1191_s28 }
   0x8   :  { %v159_v28 = vsel %vm156_vm0, %v157_v26, %v158_v27  ;;  %v313_v38 = vsel %vm310_vm4, %v311_v33, %v312_v34  ;;  %vm623_vm5 = vcmask 49152   ;;  %s1354_s29 = scalar_lea.vmem %s1192_s28, 32  ;;  %p1359_p1 = scmp.lt.s32.totalorder %s1192_s28, %s1192_s28 }
   0x9   :  { %v547_v49 = vsel %vm156_vm0, %v545_v45, %v546_v46  ;;  %p1355_p0 = scmp.ne.s32.totalorder %s1192_s28, %s1354_s29  ;;  %p1360_p2 = scmp.lt.s32.totalorder %s1354_s29, %s1354_s29 }
   0xb   :  { %p1361_p3 = por %p1360_p2, %p1359_p1 }
   0xd   :  { %p1362_p4 = pnand %p1361_p3, %p1355_p0 }
   0xe   :  { %v1351_v10 = vpop.eup %1350 }
   0xf   :  { %v1353_v11 = vpop.eup %1352  ;;  %v22_v12 = vmul.f32 0.6931472, %v1351_v10 }
  0x10   :  { %v24_v13 = vmul.f32 0.6931472, %v1353_v11 }
  0x11   :  { %27 = vperm.xlu0 %1349, %v22_v12  }
  0x15   :  { %32 = vperm.xlu0 %1349, %v24_v13  }
  0x83   :  { %v58_v17 = vpop.trf.xlu1 }
  0x87   :  { %v647_v22 = vpop.trf.xlu1 }
  0x90   :  { %v28_v15 = vpop.permute.xlu0 %27 }
  0x91   :  { %v35_v16 = vmul.f32 %v28_v15, %v15_v1 }
  0x93   :  { %1256 = vmatpush3.msk.msra.mxu1 %vm78_vm2, %v35_v16  ;;  %v664_v20 = vrot.slane %v35_v16, 6 }
  0x94   :  { %v33_v18 = vpop.permute.xlu0 %32  ;;  %1258 = vmatmul.mubr.msk.f32.vlgmr.msra.gmra.mrb[0].mxu1 %vm74_vm3, %v58_v17  ;;  %1260 = vmatprep.subr.mxu1 %v1379_v14 }
  0x95   :  { %v36_v19 = vmul.f32 %v33_v18, %v16_v7  ;;  %1262 = vmatprep.mubr.msk.f32.mxu1 %vm1380_vm1, %v1379_v14  ;;  %1261 = vmatpush3.msk.msra.mxu1 %vm78_vm2, %v159_v28 }
  0x96   :  { %1265 = vmatprep.subr.mxu1 %v1379_v14 }
  0x97   :  { %v665_v21 = vrot.slane %v36_v19, 6 }
  0x99   :  { %v666_v23 = vsel %vm156_vm0, %v664_v20, %v665_v21 }
  0x9a   :  { %1291 = vmatpush3.msk.msra.mxu0 %vm78_vm2, %v666_v23 }
  0x9b   :  { %1293 = vmatmul.mubr.msk.f32.vlgmr.msra.gmra.mrb[0].mxu0 %vm74_vm3, %v647_v22  ;;  %1295 = vmatprep.subr.mxu0 %v1379_v14 }
  0x9c   :  { %1297 = vmatprep.mubr.msk.f32.mxu0 %vm1380_vm1, %v1379_v14  ;;  %1296 = vmatpush3.msk.msra.mxu0 %vm78_vm2, %v159_v28 }
  0x9d   :  { %1300 = vmatprep.subr.mxu0 %v1379_v14 }
 0x167   :  { %v148_v29 = vpop.f32.mrb[0].mxu1 }
 0x168   :  { %v153_v30 = vrot.slane %v148_v29, 1  ;;  %v1259_v31 = vpop.f32.mrb[1].mxu1  ;;  %v308_v39 = vrot.slane %v148_v29, 2  ;;  %v389_v42 = vrot.slane %v148_v29, 3  ;;  %v466_v48 = vrot.slane %v148_v29, 4 }
 0x169   :  { %v543_v51 = vrot.slane %v148_v29, 5 }
 0x16a   :  { %1263 = vmatmul.mubr.msk.f32.vlgmr.msra.gmra.mrb[2].mxu1 %vm74_vm3, %v153_v30 }
 0x16b   :  { %1266 = vmatpush3.msk.msra.mxu1 %vm78_vm2, %v37_v24  ;;  %1267 = vmatprep.mubr.msk.f32.mxu1 %vm1380_vm1, %v1379_v14 }
 0x16c   :  { %1270 = vmatprep.subr.mxu1 %v1379_v14 }
 0x16e   :  { %v738_v35 = vpop.f32.mrb[0].mxu0 }
 0x16f   :  { %v743_v36 = vrot.slane %v738_v35, 1  ;;  %v1294_v37 = vpop.f32.mrb[1].mxu0  ;;  %v888_v41 = vrot.slane %v738_v35, 2  ;;  %v962_v47 = vrot.slane %v738_v35, 3  ;;  %v1036_v50 = vrot.slane %v738_v35, 4 }
 0x170   :  { %v1110_v52 = vrot.slane %v738_v35, 5 }
 0x171   :  { %1298 = vmatmul.mubr.msk.f32.vlgmr.msra.gmra.mrb[2].mxu0 %vm74_vm3, %v743_v36 }
 0x172   :  { %1301 = vmatpush3.msk.msra.mxu0 %vm78_vm2, %v37_v24  ;;  %1268 = vmatmul.mubr.msk.f32.vlgmr.msra.gmra.mrb[2].mxu1 %vm74_vm3, %v148_v29 }
 0x173   :  { %1302 = vmatprep.mubr.msk.f32.mxu0 %vm1380_vm1, %v1379_v14  ;;  %1305 = vmatprep.subr.mxu0 %v1379_v14 }
 0x174   :  { %1271 = vmatpush3.msk.msra.mxu1 %vm78_vm2, %v313_v38  ;;  %1272 = vmatprep.mubr.msk.f32.mxu1 %vm1380_vm1, %v1379_v14 }
 0x175   :  { %1275 = vmatprep.subr.mxu1 %v1379_v14 }
 0x179   :  { %1303 = vmatmul.mubr.msk.f32.vlgmr.msra.gmra.mrb[2].mxu0 %vm74_vm3, %v738_v35 }
 0x17a   :  { %1306 = vmatpush3.msk.msra.mxu0 %vm78_vm2, %v313_v38  ;;  %1273 = vmatmul.mubr.msk.f32.vlgmr.msra.gmra.mrb[2].mxu1 %vm74_vm3, %v308_v39 }
 0x17b   :  { %1307 = vmatprep.mubr.msk.f32.mxu0 %vm1380_vm1, %v1379_v14  ;;  %1310 = vmatprep.subr.mxu0 %v1379_v14 }
 0x17c   :  { %1276 = vmatpush3.msk.msra.mxu1 %vm78_vm2, %v390_v40  ;;  %1277 = vmatprep.mubr.msk.f32.mxu1 %vm1380_vm1, %v1379_v14 }
 0x17d   :  { %1280 = vmatprep.subr.mxu1 %v1379_v14 }
 0x181   :  { %1308 = vmatmul.mubr.msk.f32.vlgmr.msra.gmra.mrb[2].mxu0 %vm74_vm3, %v888_v41 }
 0x182   :  { %1311 = vmatpush3.msk.msra.mxu0 %vm78_vm2, %v390_v40  ;;  %1278 = vmatmul.mubr.msk.f32.vlgmr.msra.gmra.mrb[2].mxu1 %vm74_vm3, %v389_v42 }
 0x183   :  { %1312 = vmatprep.mubr.msk.f32.mxu0 %vm1380_vm1, %v1379_v14  ;;  %1315 = vmatprep.subr.mxu0 %v1379_v14 }
 0x184   :  { %1281 = vmatpush3.msk.msra.mxu1 %vm78_vm2, %v40_v43  ;;  %1282 = vmatprep.mubr.msk.f32.mxu1 %vm1380_vm1, %v1379_v14 }
 0x185   :  { %1285 = vmatprep.subr.mxu1 %v1379_v14 }
 0x189   :  { %1313 = vmatmul.mubr.msk.f32.vlgmr.msra.gmra.mrb[2].mxu0 %vm74_vm3, %v962_v47 }
 0x18a   :  { %1316 = vmatpush3.msk.msra.mxu0 %vm78_vm2, %v40_v43  ;;  %1283 = vmatmul.mubr.msk.f32.vlgmr.msra.gmra.mrb[2].mxu1 %vm74_vm3, %v466_v48 }
 0x18b   :  { %1317 = vmatprep.mubr.msk.f32.mxu0 %vm1380_vm1, %v1379_v14  ;;  %1320 = vmatprep.subr.mxu0 %v1379_v14 }
 0x18c   :  { %1286 = vmatpush3.msk.msra.mxu1 %vm78_vm2, %v547_v49  ;;  %1287 = vmatprep.mubr.msk.f32.mxu1 %vm1380_vm1, %v1379_v14 }
 0x191   :  { %1318 = vmatmul.mubr.msk.f32.vlgmr.msra.gmra.mrb[2].mxu0 %vm74_vm3, %v1036_v50 }
 0x192   :  { %1321 = vmatpush3.msk.msra.mxu0 %vm78_vm2, %v547_v49  ;;  %1288 = vmatmul.mubr.msk.f32.vlgmr.msra.gmra.mrb[2].mxu1 %vm74_vm3, %v543_v51 }
 0x193   :  { %1322 = vmatprep.mubr.msk.f32.mxu0 %vm1380_vm1, %v1379_v14 }
 0x199   :  { %1323 = vmatmul.mubr.msk.f32.vlgmr.msra.gmra.mrb[2].mxu0 %vm74_vm3, %v1110_v52 }
 0x265   :  { %v618_v53 = vpop.f32.mrb[2].mxu1 }
 0x266   :  { %624 = vst.msk [vmem:[#allocation2] sm:$0x1] %vm623_vm5, %v618_v53  ;;  %v1289_v54 = vpop.f32.mrb[3].mxu1 }
 0x26c   :  { %v1179_v55 = vpop.f32.mrb[2].mxu0 }
 0x26d   :  { %1184 = vst.msk [vmem:[#allocation2 + $0x1] sm:$0x1] %vm623_vm5, %v1179_v55  ;;  %v1324_v56 = vpop.f32.mrb[3].mxu0 }
 0x26e   :  { %1365 = shalt.err (!%p1362_p4)
}
 0x26f   :  { %s1366_s5 = scalar_lea.hbm %s1518_s3, 32 }
 0x270   :  { %p1367_p5 = scmp.ne.s32.totalorder %s1518_s3, %s1366_s5  ;;  %p1370_p6 = scmp.lt.u32.totalorder %s1366_s5, %s1518_s3 }
 0x272   :  { %p1372_p7 = pnand %p1370_p6, %p1367_p5 }
 0x274   :  { %1375 = shalt.err (!%p1372_p7)
}
 0x275   :  { %1194 = dma.vmem_to_hbm [thread:$0]  %s1192_s28, 32, %s1518_s3, [#allocation3]  }
 0x276   :  { %1376 = dma.done.wait [#allocation3], 32  }
 0x277   :  { %1377 = vsyncadd [#allocation3], 4294967264 }
 0x278   :  { %1198 = vsyncpa [#allocation3], 1 }

</bundles_post_ra>
